<compile_context>
chip_gen: v7x
topology: tpu7x:2x2x1
jax: 0.10.0
libtpu: 0.0.40
codegen_flags: <defaults>
</compile_context>

<pallas_src>
import math

import jax
import jax.numpy as jnp
from jax.experimental import pallas as pl
from jax.experimental.pallas import tpu as pltpu

HIDDEN = 768
NUM_LAYERS = 5
D2 = 2 * HIDDEN          # 1536: bidirectional layer output width
G3 = 3 * HIDDEN          # 2304: r | z | n gate columns


# ---------------------------------------------------------------------------
# Static schedule: one grid step == one (768, 2304) chunk of one (layer, dir) W_ih^T
# ---------------------------------------------------------------------------
def _schedule():
    steps = []
    for layer in range(NUM_LAYERS):
        d_in = HIDDEN if layer == 0 else D2
        n_chunks = d_in // HIDDEN
        # Layer 4's forward direction is dead code (only hidden[-1] feeds the FC).
        dirs = (0, 1) if layer < NUM_LAYERS - 1 else (1,)
        for d in dirs:
            for c in range(n_chunks):
                last = (c == n_chunks - 1)
                steps.append(dict(
                    layer=layer, direction=d, chunk=c,
                    first=int(c == 0),
                    # commit: 0 = accumulate only, 1 = gates -> next layer, 2 = gates -> FC -> out
                    commit=0 if not last else (2 if layer == NUM_LAYERS - 1 else 1),
                    rd_plane=(layer % 2) * 2 + c,          # which activation plane to read
                    wr_plane=((layer + 1) % 2) * 2 + d,    # which activation plane to write
                ))
    return steps


# ---------------------------------------------------------------------------
# Fused kernel
# ---------------------------------------------------------------------------
def fused_bigru_fc_kernel(meta_ref, x_ref, w_ref, bi_ref, bhn_ref, fcw_ref, fcb_ref,
                          out_ref, act_ref, gi_ref):
    """meta_ref: (4, 16) int32 SMEM  static schedule (first / commit / rd_plane / wr_plane)
    x_ref:    (Bp, 768)  f32        CLS vector (resident across the whole grid)
    w_ref:    (768, 2304) bf16      this step's weight chunk (streamed, double-buffered)
    bi_ref:   (1, 2304) f32         b_ih (+ b_hh folded for r,z) of this step's (layer, dir)
    bhn_ref:  (1, 768)  f32         b_hh of the n gate (multiplied by r)
    fcw_ref:  (1, 768)  f32         fc_1 weight row (resident)
    fcb_ref:  (1, 128)  f32         fc_1 bias, lane-broadcast (resident)
    out_ref:  (Bp, 128) f32         sigmoid(fc_1(hidden[-1])), lane-broadcast
    act_ref:  (4, Bp, 768) f32      layer-activation ping-pong planes (scratch)
    gi_ref:   (Bp, 2304) f32        gate pre-activation accumulator (scratch)
    """
    i = pl.program_id(0)
    first = meta_ref[0, i]
    commit = meta_ref[1, i]
    rd_plane = meta_ref[2, i]
    wr_plane = meta_ref[3, i]

    # Seed plane 0 with the CLS vector: it is layer 0's (only) input chunk.
    @pl.when(i == 0)
    def _():
        act_ref[0] = x_ref[...]

    # Stream this weight chunk through the MXU (bf16 x bf16, f32 accumulation).
    x_chunk = act_ref[rd_plane].astype(jnp.bfloat16)
    part = jnp.dot(x_chunk, w_ref[...], preferred_element_type=jnp.float32)

    @pl.when(first == 1)
    def _():
        gi_ref[...] = part + bi_ref[...]

    @pl.when(first == 0)
    def _():
        gi_ref[...] = gi_ref[...] + part

    # Gate nonlinearities + hidden-state commit on the last chunk of each (layer, dir).
    @pl.when(commit > 0)
    def _():
        gi = gi_ref[...]
        r = jax.nn.sigmoid(gi[:, 0:HIDDEN])
        z = jax.nn.sigmoid(gi[:, HIDDEN:2 * HIDDEN])
        n = jnp.tanh(gi[:, 2 * HIDDEN:3 * HIDDEN] + r * bhn_ref[...])
        h = (1.0 - z) * n                      # h' = (1-z)*n + z*h0, with h0 == 0

        @pl.when(commit == 1)                  # layers 0..3: feed the next layer's input
        def _():
            act_ref[wr_plane] = h

        @pl.when(commit == 2)                  # layer 4 reverse == hidden[-1]: FC + sigmoid
        def _():
            # VPU multiply + lane reduction instead of a lane-sparse 1-column MXU matmul.
            y = jnp.sum(h * fcw_ref[...], axis=-1, keepdims=True) + fcb_ref[0:1, 0:1]
            out_ref[...] = jnp.broadcast_to(jax.nn.sigmoid(y), out_ref.shape)


# ---------------------------------------------------------------------------
# Wrapper
# ---------------------------------------------------------------------------
def fused_bigru_fc(x_pad, params):
    b_pad = x_pad.shape[0]
    n_steps = params["w"].shape[0]
    w_block_bytes = HIDDEN * G3 * 2                # one bf16 weight chunk (3.375 MiB)

    grid_spec = pltpu.PrefetchScalarGridSpec(
        num_scalar_prefetch=1,                     # the (4, n_steps) schedule -> SMEM
        grid=(n_steps,),
        in_specs=[
            pl.BlockSpec((b_pad, HIDDEN), lambda i, m: (0, 0)),        # CLS vector (resident)
            pl.BlockSpec((None, HIDDEN, G3), lambda i, m: (i, 0, 0)),  # weight chunk stream
            pl.BlockSpec((None, 1, G3), lambda i, m: (i, 0, 0)),       # folded input bias
            pl.BlockSpec((None, 1, HIDDEN), lambda i, m: (i, 0, 0)),   # n-gate hidden bias
            pl.BlockSpec((1, HIDDEN), lambda i, m: (0, 0)),            # fc weight row (resident)
            pl.BlockSpec((1, 128), lambda i, m: (0, 0)),               # fc bias (resident)
        ],
        out_specs=pl.BlockSpec((b_pad, 128), lambda i, m: (0, 0)),     # written once at the end
        scratch_shapes=[
            pltpu.VMEM((4, b_pad, HIDDEN), jnp.float32),   # activation ping-pong planes
            pltpu.VMEM((b_pad, G3), jnp.float32),          # gate pre-activation accumulator
        ],
    )
    return pl.pallas_call(
        fused_bigru_fc_kernel,
        out_shape=jax.ShapeDtypeStruct((b_pad, 128), jnp.float32),
        grid_spec=grid_spec,
        compiler_params=pltpu.CompilerParams(
            dimension_semantics=("arbitrary",),    # serial layer/direction/chunk chain
            # double-buffered weight chunk + activations/biases; fits v5e/v6e/v7x alike
            vmem_limit_bytes=int(2 * w_block_bytes + (6 << 20)),
        ),
    )(params["meta"], x_pad, params["w"], params["bias_i"], params["bias_hn"],
      params["fc_w"], params["fc_b"])


# ---------------------------------------------------------------------------
# Parameters (nn.GRU / nn.Linear style U(-1/sqrt(H), 1/sqrt(H)) init)
# ---------------------------------------------------------------------------
def init_params(key):
    """Returns (kernel params, raw f32 params for the pure-JAX reference).

    W_hh is never materialized: with h0 == 0 its contribution is identically zero
    (only b_hh survives).  Layer 4's forward direction is never materialized either.
    """
    k = 1.0 / math.sqrt(HIDDEN)
    live_pairs = [(l, d) for l in range(NUM_LAYERS)
                  for d in ((0, 1) if l < NUM_LAYERS - 1 else (1,))]
    keys = jax.random.split(key, 3 * len(live_pairs) + 2)
    ki = 0
    raw = {"wih": {}, "bih": {}, "bhh": {}}
    for (l, d) in live_pairs:
        d_in = HIDDEN if l == 0 else D2
        raw["wih"][(l, d)] = jax.random.uniform(keys[ki], (G3, d_in), jnp.float32, -k, k); ki += 1
        raw["bih"][(l, d)] = jax.random.uniform(keys[ki], (G3,), jnp.float32, -k, k); ki += 1
        raw["bhh"][(l, d)] = jax.random.uniform(keys[ki], (G3,), jnp.float32, -k, k); ki += 1
    raw["fc_w"] = jax.random.uniform(keys[ki], (1, HIDDEN), jnp.float32, -k, k); ki += 1
    raw["fc_b"] = jax.random.uniform(keys[ki], (1,), jnp.float32, -k, k)

    steps = _schedule()
    w_blocks, bi_rows, bhn_rows = [], [], []
    for s in steps:
        l, d, c = s["layer"], s["direction"], s["chunk"]
        w_t = jnp.transpose(raw["wih"][(l, d)])                          # (d_in, 3H)
        w_blocks.append(w_t[c * HIDDEN:(c + 1) * HIDDEN, :].astype(jnp.bfloat16))
        b_i, b_h = raw["bih"][(l, d)], raw["bhh"][(l, d)]
        bi_rows.append(jnp.concatenate(
            [b_i[:2 * HIDDEN] + b_h[:2 * HIDDEN], b_i[2 * HIDDEN:]]).reshape(1, G3))
        bhn_rows.append(b_h[2 * HIDDEN:].reshape(1, HIDDEN))
    meta = jnp.array([[s["first"] for s in steps],
                      [s["commit"] for s in steps],
                      [s["rd_plane"] for s in steps],
                      [s["wr_plane"] for s in steps]], dtype=jnp.int32)

    params = {
        "meta": meta,                          # (4, 16) int32 schedule (SMEM prefetch)
        "w": jnp.stack(w_blocks, 0),           # (16, 768, 2304) bf16 weight stream (~54 MiB)
        "bias_i": jnp.stack(bi_rows, 0),       # (16, 1, 2304) f32  (b_ih, + b_hh folded for r,z)
        "bias_hn": jnp.stack(bhn_rows, 0),     # (16, 1, 768)  f32  (b_hh of the n gate)
        "fc_w": raw["fc_w"],                   # (1, 768) f32
        "fc_b": jnp.full((1, 128), raw["fc_b"][0], jnp.float32),   # lane-broadcast fc bias
    }
    return params, raw


# ---------------------------------------------------------------------------
# Forward pass (matches the PyTorch module's forward, with self.lstm == self.gru)
# ---------------------------------------------------------------------------
def bilstm_forward(embedded, params):
    """embedded: (B, S, 768) -- stand-in for BERT last_hidden_state.  Returns (B,) in [0, 1]."""
    B = embedded.shape[0]
    # seq_len == 1 and h0 == 0 are structural to this module (cls_vector.view(-1, 1, 768),
    # default zero initial hidden state); the fused kernel bakes them in.
    cls_vector = embedded[:, 0, :]                       # (B, 768)
    b_pad = max(8, ((B + 7) // 8) * 8)                   # sublane-pad the batch
    x_pad = jnp.zeros((b_pad, HIDDEN), jnp.float32).at[:B, :].set(cls_vector)
    out = fused_bigru_fc(x_pad, params)                  # (b_pad, 128), lane-broadcast
    return out[:B, 0]


# ---------------------------------------------------------------------------
# Pure-JAX f32 reference (for a loose-tolerance correctness check)
# ---------------------------------------------------------------------------
def _gru_cell_h0(x, w_ih, b_ih, b_hh):
    gi = x @ jnp.transpose(w_ih) + b_ih
    r = jax.nn.sigmoid(gi[:, :HIDDEN] + b_hh[:HIDDEN])
    z = jax.nn.sigmoid(gi[:, HIDDEN:2 * HIDDEN] + b_hh[HIDDEN:2 * HIDDEN])
    n = jnp.tanh(gi[:, 2 * HIDDEN:] + r * b_hh[2 * HIDDEN:])
    return (1.0 - z) * n


def reference_forward(embedded, raw):
    h = embedded[:, 0, :]
    for l in range(NUM_LAYERS - 1):
        hf = _gru_cell_h0(h, raw["wih"][(l, 0)], raw["bih"][(l, 0)], raw["bhh"][(l, 0)])
        hr = _gru_cell_h0(h, raw["wih"][(l, 1)], raw["bih"][(l, 1)], raw["bhh"][(l, 1)])
        h = jnp.concatenate([hf, hr], axis=-1)
    l = NUM_LAYERS - 1
    h_last = _gru_cell_h0(h, raw["wih"][(l, 1)], raw["bih"][(l, 1)], raw["bhh"][(l, 1)])
    y = h_last @ jnp.transpose(raw["fc_w"]) + raw["fc_b"]
    return jax.nn.sigmoid(y).reshape(-1)


if __name__ == "__main__":
    key = jax.random.PRNGKey(0)
    k_emb, k_par = jax.random.split(key)

    B, S = 2, 8
    # TODO(synk): deterministic synthetic BERT last_hidden_state (no Pallas BERT here).
    embedded = jax.random.normal(k_emb, (B, S, HIDDEN), jnp.float32)

    params, raw = init_params(k_par)

    fwd = jax.jit(bilstm_forward)
    out = jax.block_until_ready(fwd(embedded, params))

    assert out.shape == (B,)
    assert bool(jnp.all(jnp.isfinite(out)))
    assert bool(jnp.all((out >= 0.0) & (out <= 1.0)))

    # Loose-tolerance check vs. the f32 reference (kernel streams bf16 weights, f32 accum).
    ref = reference_forward(embedded, raw)
    assert bool(jnp.max(jnp.abs(out - ref)) < 3e-2)

    print("KERNEL_OK")
</pallas_src>

<mosaic_0001>
module attributes {stable_mosaic.version = 11 : i64} {
  func.func @fused_bigru_fc_kernel(%arg0: i32, %arg1: memref<4x16xi32, #tpu.memory_space<smem>>, %arg2: memref<8x768xf32, #tpu.memory_space<vmem>>, %arg3: memref<1x768x2304xbf16, #tpu.memory_space<vmem>>, %arg4: memref<1x1x2304xf32, #tpu.memory_space<vmem>>, %arg5: memref<1x1x768xf32, #tpu.memory_space<vmem>>, %arg6: memref<1x768xf32, #tpu.memory_space<vmem>>, %arg7: memref<1x128xf32, #tpu.memory_space<vmem>>, %arg8: memref<8x128xf32, #tpu.memory_space<vmem>>, %arg9: memref<4x8x768xf32, #tpu.memory_space<vmem>>, %arg10: memref<8x2304xf32, #tpu.memory_space<vmem>>) attributes {dimension_semantics = [#tpu.dimension_semantics<arbitrary>], iteration_bounds = array<i64: 16>, scalar_prefetch = 1 : i64, scratch_operands = 2 : i64, tpu.core_type = #tpu.core_type<tc>, window_params = [{pipeline_mode = #tpu.pipeline_mode<synchronous>, transform_indices = @transform_0, window_bounds = array<i64: 8, 768>}, {transform_indices = @transform_1, window_bounds = array<i64: 1, 768, 2304>}, {transform_indices = @transform_2, window_bounds = array<i64: 1, 1, 2304>}, {transform_indices = @transform_3, window_bounds = array<i64: 1, 1, 768>}, {pipeline_mode = #tpu.pipeline_mode<synchronous>, transform_indices = @transform_4, window_bounds = array<i64: 1, 768>}, {pipeline_mode = #tpu.pipeline_mode<synchronous>, transform_indices = @transform_5, window_bounds = array<i64: 1, 128>}, {pipeline_mode = #tpu.pipeline_mode<synchronous>, transform_indices = @transform_6, window_bounds = array<i64: 8, 128>}]} {
    %c0 = arith.constant 0 : index
    %0 = arith.index_cast %arg0 : i32 to index
    %1 = memref.load %arg1[%c0, %0] : memref<4x16xi32, #tpu.memory_space<smem>>
    %c1 = arith.constant 1 : index
    %2 = arith.index_cast %arg0 : i32 to index
    %3 = memref.load %arg1[%c1, %2] : memref<4x16xi32, #tpu.memory_space<smem>>
    %c2 = arith.constant 2 : index
    %4 = arith.index_cast %arg0 : i32 to index
    %5 = memref.load %arg1[%c2, %4] : memref<4x16xi32, #tpu.memory_space<smem>>
    %c3 = arith.constant 3 : index
    %6 = arith.index_cast %arg0 : i32 to index
    %7 = memref.load %arg1[%c3, %6] : memref<4x16xi32, #tpu.memory_space<smem>>
    %c0_i32 = arith.constant 0 : i32
    %8 = arith.cmpi eq, %arg0, %c0_i32 : i32
    %9 = arith.extui %8 : i1 to i32
    %c0_i32_0 = arith.constant 0 : i32
    %10 = arith.cmpi ne, %9, %c0_i32_0 : i32
    scf.if %10 {
      %c0_11 = arith.constant 0 : index
      %c0_12 = arith.constant 0 : index
      %27 = vector.load %arg2[%c0_11, %c0_12] : memref<8x768xf32, #tpu.memory_space<vmem>>, vector<8x768xf32>
      %c0_13 = arith.constant 0 : index
      %c0_14 = arith.constant 0 : index
      %c0_15 = arith.constant 0 : index
      %28 = vector.load %arg9[%c0_13, %c0_14, %c0_15] : memref<4x8x768xf32, #tpu.memory_space<vmem>>, vector<1x8x768xf32>
      %29 = vector.shape_cast %28 : vector<1x8x768xf32> to vector<8x768xf32>
      %30 = vector.shape_cast %27 : vector<8x768xf32> to vector<1x8x768xf32>
      tpu.vector_store %arg9[%c0_13, %c0_14, %c0_15], %30 {strides = array<i32>} : memref<4x8x768xf32, #tpu.memory_space<vmem>>, vector<1x8x768xf32>,
    } else {
    }
    %11 = arith.index_cast %5 : i32 to index
    %c0_1 = arith.constant 0 : index
    %c0_2 = arith.constant 0 : index
    %12 = vector.load %arg9[%11, %c0_1, %c0_2] : memref<4x8x768xf32, #tpu.memory_space<vmem>>, vector<1x8x768xf32>
    %13 = vector.shape_cast %12 : vector<1x8x768xf32> to vector<8x768xf32>
    %14 = arith.truncf %13 : vector<8x768xf32> to vector<8x768xbf16>
    %c0_3 = arith.constant 0 : index
    %c0_4 = arith.constant 0 : index
    %c0_5 = arith.constant 0 : index
    %15 = vector.load %arg3[%c0_3, %c0_4, %c0_5] : memref<1x768x2304xbf16, #tpu.memory_space<vmem>>, vector<1x768x2304xbf16>
    %16 = vector.shape_cast %15 : vector<1x768x2304xbf16> to vector<768x2304xbf16>
    %cst = arith.constant dense<0.000000e+00> : vector<8x2304xf32>
    %17 = tpu.matmul %14, %16, %cst {dimension_numbers = #tpu.dot_dimension_numbers<[1], [0], [0], [1], [0, 0, 1, 1], [], []>} : vector<8x768xbf16>, vector<768x2304xbf16>, vector<8x2304xf32> -> vector<8x2304xf32>
    %c1_i32 = arith.constant 1 : i32
    %18 = arith.cmpi eq, %1, %c1_i32 : i32
    %19 = arith.extui %18 : i1 to i32
    %c0_i32_6 = arith.constant 0 : i32
    %20 = arith.cmpi ne, %19, %c0_i32_6 : i32
    scf.if %20 {
      %c0_11 = arith.constant 0 : index
      %c0_12 = arith.constant 0 : index
      %c0_13 = arith.constant 0 : index
      %27 = vector.load %arg4[%c0_11, %c0_12, %c0_13] : memref<1x1x2304xf32, #tpu.memory_space<vmem>>, vector<1x1x2304xf32>
      %28 = vector.shape_cast %27 : vector<1x1x2304xf32> to vector<1x2304xf32>
      %29 = vector.broadcast %28 : vector<1x2304xf32> to vector<8x2304xf32>
      %30 = arith.addf %17, %29 : vector<8x2304xf32>
      %c0_14 = arith.constant 0 : index
      %c0_15 = arith.constant 0 : index
      %31 = vector.load %arg10[%c0_14, %c0_15] : memref<8x2304xf32, #tpu.memory_space<vmem>>, vector<8x2304xf32>
      tpu.vector_store %arg10[%c0_14, %c0_15], %30 {strides = array<i32>} : memref<8x2304xf32, #tpu.memory_space<vmem>>, vector<8x2304xf32>,
    } else {
    }
    %c0_i32_7 = arith.constant 0 : i32
    %21 = arith.cmpi eq, %1, %c0_i32_7 : i32
    %22 = arith.extui %21 : i1 to i32
    %c0_i32_8 = arith.constant 0 : i32
    %23 = arith.cmpi ne, %22, %c0_i32_8 : i32
    scf.if %23 {
      %c0_11 = arith.constant 0 : index
      %c0_12 = arith.constant 0 : index
      %27 = vector.load %arg10[%c0_11, %c0_12] : memref<8x2304xf32, #tpu.memory_space<vmem>>, vector<8x2304xf32>
      %28 = arith.addf %27, %17 : vector<8x2304xf32>
      %c0_13 = arith.constant 0 : index
      %c0_14 = arith.constant 0 : index
      %29 = vector.load %arg10[%c0_13, %c0_14] : memref<8x2304xf32, #tpu.memory_space<vmem>>, vector<8x2304xf32>
      tpu.vector_store %arg10[%c0_13, %c0_14], %28 {strides = array<i32>} : memref<8x2304xf32, #tpu.memory_space<vmem>>, vector<8x2304xf32>,
    } else {
    }
    %c0_i32_9 = arith.constant 0 : i32
    %24 = arith.cmpi sgt, %3, %c0_i32_9 : i32
    %25 = arith.extui %24 : i1 to i32
    %c0_i32_10 = arith.constant 0 : i32
    %26 = arith.cmpi ne, %25, %c0_i32_10 : i32
    scf.if %26 {
      %c0_11 = arith.constant 0 : index
      %c0_12 = arith.constant 0 : index
      %27 = vector.load %arg10[%c0_11, %c0_12] : memref<8x2304xf32, #tpu.memory_space<vmem>>, vector<8x2304xf32>
      %28 = vector.extract_strided_slice %27 {offsets = [0, 0], sizes = [8, 768], strides = [1, 1]} : vector<8x2304xf32> to vector<8x768xf32>
      %29 = arith.negf %28 : vector<8x768xf32>
      %30 = math.exp %29 : vector<8x768xf32>
      %cst_13 = arith.constant 1.000000e+00 : f32
      %31 = vector.broadcast %cst_13 : f32 to vector<8x768xf32>
      %32 = arith.addf %31, %30 : vector<8x768xf32>
      %33 = arith.divf %31, %32 : vector<8x768xf32>
      %34 = vector.extract_strided_slice %27 {offsets = [0, 768], sizes = [8, 768], strides = [1, 1]} : vector<8x2304xf32> to vector<8x768xf32>
      %35 = arith.negf %34 : vector<8x768xf32>
      %36 = math.exp %35 : vector<8x768xf32>
      %cst_14 = arith.constant 1.000000e+00 : f32
      %37 = vector.broadcast %cst_14 : f32 to vector<8x768xf32>
      %38 = arith.addf %37, %36 : vector<8x768xf32>
      %39 = arith.divf %37, %38 : vector<8x768xf32>
      %40 = vector.extract_strided_slice %27 {offsets = [0, 1536], sizes = [8, 768], strides = [1, 1]} : vector<8x2304xf32> to vector<8x768xf32>
      %c0_15 = arith.constant 0 : index
      %c0_16 = arith.constant 0 : index
      %c0_17 = arith.constant 0 : index
      %41 = vector.load %arg5[%c0_15, %c0_16, %c0_17] : memref<1x1x768xf32, #tpu.memory_space<vmem>>, vector<1x1x768xf32>
      %42 = vector.shape_cast %41 : vector<1x1x768xf32> to vector<1x768xf32>
      %43 = vector.broadcast %42 : vector<1x768xf32> to vector<8x768xf32>
      %44 = arith.mulf %33, %43 : vector<8x768xf32>
      %45 = arith.addf %40, %44 : vector<8x768xf32>
      %46 = math.tanh %45 : vector<8x768xf32>
      %cst_18 = arith.constant 1.000000e+00 : f32
      %47 = vector.broadcast %cst_18 : f32 to vector<8x768xf32>
      %48 = arith.subf %47, %39 : vector<8x768xf32>
      %49 = arith.mulf %48, %46 : vector<8x768xf32>
      %c1_i32_19 = arith.constant 1 : i32
      %50 = arith.cmpi eq, %3, %c1_i32_19 : i32
      %51 = arith.extui %50 : i1 to i32
      %c0_i32_20 = arith.constant 0 : i32
      %52 = arith.cmpi ne, %51, %c0_i32_20 : i32
      scf.if %52 {
        %56 = arith.index_cast %7 : i32 to index
        %c0_22 = arith.constant 0 : index
        %c0_23 = arith.constant 0 : index
        %57 = vector.load %arg9[%56, %c0_22, %c0_23] : memref<4x8x768xf32, #tpu.memory_space<vmem>>, vector<1x8x768xf32>
        %58 = vector.shape_cast %57 : vector<1x8x768xf32> to vector<8x768xf32>
        %59 = vector.shape_cast %49 : vector<8x768xf32> to vector<1x8x768xf32>
        tpu.vector_store %arg9[%56, %c0_22, %c0_23], %59 {strides = array<i32>} : memref<4x8x768xf32, #tpu.memory_space<vmem>>, vector<1x8x768xf32>,
      } else {
      }
      %c2_i32 = arith.constant 2 : i32
      %53 = arith.cmpi eq, %3, %c2_i32 : i32
      %54 = arith.extui %53 : i1 to i32
      %c0_i32_21 = arith.constant 0 : i32
      %55 = arith.cmpi ne, %54, %c0_i32_21 : i32
      scf.if %55 {
        %c0_22 = arith.constant 0 : index
        %c0_23 = arith.constant 0 : index
        %56 = vector.load %arg6[%c0_22, %c0_23] : memref<1x768xf32, #tpu.memory_space<vmem>>, vector<1x768xf32>
        %57 = vector.broadcast %56 : vector<1x768xf32> to vector<8x768xf32>
        %58 = arith.mulf %49, %57 : vector<8x768xf32>
        %cst_24 = arith.constant dense<0.000000e+00> : vector<8xf32>
        %59 = vector.multi_reduction <add>, %58, %cst_24 [1] : vector<8x768xf32> to vector<8xf32>
        %60 = vector.shape_cast %59 : vector<8xf32> to vector<8x1xf32>
        %c0_25 = arith.constant 0 : index
        %c0_26 = arith.constant 0 : index
        %61 = vector.load %arg7[%c0_25, %c0_26] : memref<1x128xf32, #tpu.memory_space<vmem>>, vector<1x1xf32>
        %62 = vector.broadcast %61 : vector<1x1xf32> to vector<8x1xf32>
        %63 = arith.addf %60, %62 : vector<8x1xf32>
        %64 = arith.negf %63 : vector<8x1xf32>
        %65 = math.exp %64 : vector<8x1xf32>
        %cst_27 = arith.constant 1.000000e+00 : f32
        %66 = vector.broadcast %cst_27 : f32 to vector<8x1xf32>
        %67 = arith.addf %66, %65 : vector<8x1xf32>
        %68 = arith.divf %66, %67 : vector<8x1xf32>
        %69 = vector.shape_cast %68 : vector<8x1xf32> to vector<8x1xf32>
        %70 = vector.broadcast %69 : vector<8x1xf32> to vector<8x128xf32>
        %c0_28 = arith.constant 0 : index
        %c0_29 = arith.constant 0 : index
        %71 = vector.load %arg8[%c0_28, %c0_29] : memref<8x128xf32, #tpu.memory_space<vmem>>, vector<8x128xf32>
        tpu.vector_store %arg8[%c0_28, %c0_29], %70 {strides = array<i32>} : memref<8x128xf32, #tpu.memory_space<vmem>>, vector<8x128xf32>,
      } else {
      }
    } else {
    }
    return
  }
  func.func @transform_0(%arg0: i32, %arg1: memref<4x16xi32, #tpu.memory_space<smem>>) -> (i32, i32) {
    %c0_i32 = arith.constant 0 : i32
    %c0_i32_0 = arith.constant 0 : i32
    %c0_i32_1 = arith.constant 0 : i32
    return %c0_i32, %c0_i32_0 : i32, i32
  }
  func.func @transform_1(%arg0: i32, %arg1: memref<4x16xi32, #tpu.memory_space<smem>>) -> (i32, i32, i32) {
    %c0_i32 = arith.constant 0 : i32
    %c0_i32_0 = arith.constant 0 : i32
    %c0_i32_1 = arith.constant 0 : i32
    return %arg0, %c0_i32, %c0_i32_0 : i32, i32, i32
  }
  func.func @transform_2(%arg0: i32, %arg1: memref<4x16xi32, #tpu.memory_space<smem>>) -> (i32, i32, i32) {
    %c0_i32 = arith.constant 0 : i32
    %c0_i32_0 = arith.constant 0 : i32
    %c0_i32_1 = arith.constant 0 : i32
    return %arg0, %c0_i32, %c0_i32_0 : i32, i32, i32
  }
  func.func @transform_3(%arg0: i32, %arg1: memref<4x16xi32, #tpu.memory_space<smem>>) -> (i32, i32, i32) {
    %c0_i32 = arith.constant 0 : i32
    %c0_i32_0 = arith.constant 0 : i32
    %c0_i32_1 = arith.constant 0 : i32
    return %arg0, %c0_i32, %c0_i32_0 : i32, i32, i32
  }
  func.func @transform_4(%arg0: i32, %arg1: memref<4x16xi32, #tpu.memory_space<smem>>) -> (i32, i32) {
    %c0_i32 = arith.constant 0 : i32
    %c0_i32_0 = arith.constant 0 : i32
    %c0_i32_1 = arith.constant 0 : i32
    return %c0_i32, %c0_i32_0 : i32, i32
  }
  func.func @transform_5(%arg0: i32, %arg1: memref<4x16xi32, #tpu.memory_space<smem>>) -> (i32, i32) {
    %c0_i32 = arith.constant 0 : i32
    %c0_i32_0 = arith.constant 0 : i32
    %c0_i32_1 = arith.constant 0 : i32
    return %c0_i32, %c0_i32_0 : i32, i32
  }
  func.func @transform_6(%arg0: i32, %arg1: memref<4x16xi32, #tpu.memory_space<smem>>) -> (i32, i32) {
    %c0_i32 = arith.constant 0 : i32
    %c0_i32_0 = arith.constant 0 : i32
    %c0_i32_1 = arith.constant 0 : i32
    return %c0_i32, %c0_i32_0 : i32, i32
  }
}

</mosaic_0001>

<bundles_post_ra>
// kernel: bilstm_forward.1
= control target key start
LH: loop header
LB: loop body
LE: loop exit
PB: predicated region body
PF: predicated region fallthrough
CT: control target
= control target key end

     0   :  { %s11267_s0 = inlined_call_operand.hbm [shape: s32[4,16], index: 0, kind: input, shape index: {}]   ;;  %s11268_s1 = inlined_call_operand.vmem [shape: f32[8,768], index: 1, kind: input, shape index: {}]   ;;  %s11269_s2 = inlined_call_operand.hbm [shape: bf16[16,768,2304], index: 2, kind: input, shape index: {}]   ;;  %s11270_s3 = inlined_call_operand.hbm [shape: f32[16,1,2304], index: 3, kind: input, shape index: {}]   ;;  %s11271_s4 = inlined_call_operand.hbm [shape: f32[16,1,768], index: 4, kind: input, shape index: {}]   ;;  %s11272_s5 = inlined_call_operand.hbm [shape: f32[1,768], index: 5, kind: input, shape index: {}]   ;;  %s11273_s6 = inlined_call_operand.hbm [shape: f32[1,128], index: 6, kind: input, shape index: {}]   ;;  %s11274_s7 = inlined_call_operand.vmem [shape: f32[8,128], index: 7, kind: output, shape index: {}]  }
   0x1   :  { %11282 = sst [smem:[#allocation19_spill]] %s11269_s2  ;;  %s9660_s26 = scalar_lea.hbm %s11267_s0, 64 }
   0x2   :  { %11283 = sst [smem:[#allocation20_spill]] %s11270_s3  ;;  %p9661_p0 = scmp.ne.s32.totalorder %s11267_s0, %s9660_s26 }
   0x3   :  { %11284 = sst [smem:[#allocation21_spill]] %s11272_s5  ;;  %p9664_p1 = scmp.lt.u32.totalorder %s9660_s26, %s11267_s0 }
   0x4   :  { %11285 = sst [smem:[#allocation22_spill]] %s11273_s6 }
   0x5   :  { %p9666_p2 = pnand %p9664_p1, %p9661_p0 }
   0x7   :  { %9669 = shalt.err (!%p9666_p2)  }
   0x8   :  { %s9862_s8 = smov [#allocation5]  }
   0x9   :  { %13 = dma.hbm_to_smem %s11267_s0, 64, %s9862_s8, [#allocation4] }
   0xa   :  { %9832 = dma.done.wait [#allocation4], 64 }
   0xb   :  { %9833 = vsyncadd [#allocation4], 4294967232 }
   0xc   :  { %15 = sfence }
   0xd   :  { %16 = vsyncpa [#allocation7], 0 }
   0xe   :  { %18 = vsyncpa [#allocation7 + $0x1], 0 }
   0xf   :  { %19 = vsyncpa [#allocation9], 0 }
  0x10   :  { %21 = vsyncpa [#allocation9 + $0x1], 0 }
  0x11   :  { %22 = vsyncpa [#allocation12], 0  ;;  %s9923_s11 = smov 0   ;;  %s9925_s12 = smov 0  }
  0x12   :  { %s9927_s13 = smov 0   ;;  %s9929_s14 = smov 0  }
  0x13 LB: > { %s9942_s0 = sadd.s32 4294967295, %s9860_s14   ;;  %p69_p3 = scmp.ne.s32.totalorder %s9852_s12, %s9848_s11  ;;  %s9860_s14 = sphi %s9929_s14, %s11312_s14   ;;  %s9856_s13 = sphi %s9927_s13, %s11311_s13   ;;  %s9852_s12 = sphi %s9925_s12, %s11310_s12   ;;  %s9848_s11 = sphi %s9923_s11, %s11309_s11  }
  0x14   : > { %p11275_p4 = scmp.eq.s32.totalorder %s9942_s0, 0  ;;  %p7237_p5 = scmp.ge.s32.totalorder %s9860_s14, 1 }
  0x15   : > { %p195_p6 = scmp.lt.s32.totalorder %s9860_s14, 17  ;;  %s9863_s17 = smov [#allocation11]  }
  0x16   : > { %p9951_p8 = por %p11275_p4, %p69_p3  ;;  %s211_s18 = sshll.u32 %s9863_s17, 4  ;;  %s212_s18 = int_to_ptr.vmem [resolvable:$true] %s211_s18 }
  0x17   : > { %p9955_p9 = pnand %p7237_p5, %p195_p6  ;;  %s9962_s19 = sadd.s32 1, %s9860_s14  }
  0x18   : > { %s11286_s15 = scalar_select %p9951_p8, 1, 0 }
  0x19   : > { %s11287_s16 = scalar_select %p9955_p9, 1, 0 }
  0x1a   : > { %p8239_p10 = pneg %p9955_p9  ;;  %s53_s21 = ssub.s32 %s9860_s14, %s9962_s19 }
  0x1b   : > { %p9972_p12 = scmp.eq.s32.totalorder %s53_s21, 0  ;;  %s56_s23 = sadd.s32 1, %s9856_s13 }
  0x1c   : > { %p9966_p11 = pnand %p8239_p10, %p11275_p4  ;;  %s11290_s5 = sld [smem:[#allocation21_spill]] }
  0x1d   : > { %s11289_s22 = scalar_select %p9972_p12, 1, 0 }
  0x1e   : > { %s11288_s20 = scalar_select %p9966_p11, 1, 0 }
  0x1f   : > { %p11278_p1 = pneg %p9966_p11 }
  0x22   : > { %s9670_s26 = scalar_lea.hbm %s11290_s5, 96 }
  0x23   : > { %p9671_p0 = scmp.ne.s32.totalorder %s11290_s5, %s9670_s26  ;;  %p9677_p5 = scmp.lt.u32.totalorder %s9670_s26, %s11290_s5 }
  0x25   : > { %p9673_p2 = pnand %p11278_p1, %p9671_p0 }
  0x27   : > { %p9674_p3 = pneg %p9673_p2 }
  0x29   : > { %p9679_p6 = pnand %p9677_p5, %p9674_p3 }
  0x2b   : > { %9682 = shalt.err (!%p9679_p6)
}
  0x2c   : > { %s9683_s8 = scalar_lea.vmem %s212_s18, 96  ;;  %p9691_p13 = scmp.lt.s32.totalorder %s212_s18, %s212_s18 }
  0x2d   : > { %p9684_p10 = scmp.ne.s32.totalorder %s212_s18, %s9683_s8  ;;  %p9692_p8 = scmp.lt.s32.totalorder %s9683_s8, %s9683_s8 }
  0x2f   : > { %p9686_p7 = pnand %p9684_p10, %p11278_p1  ;;  %p9693_p9 = por %p9692_p8, %p9691_p13 }
  0x31   : > { %p9687_p4 = pneg %p9686_p7 }
  0x33   : > { %p9694_p12 = pnand %p9693_p9, %p9687_p4 }
  0x35   : > { %9697 = shalt.err (!%p9694_p12)
}
  0x36   : > { %8242 = dma.hbm_to_vmem [thread:$0]  (!%p9966_p11), %s11290_s5, 96, %s212_s18, [#allocation12]  }
  0x37   : > { %p11291_p7 = scmp.ne.s32.totalorder %s11289_s22, 0  ;;  %p64_p4 = scmp.eq.s32.totalorder %s9860_s14, 0 }
  0x38   : > { %p8258_p8 = scmp.lt.s32.totalorder %s9860_s14, 16  ;;  %s10009_s17 = sand.u32 1, %s9856_s13  }
  0x39   : > { %s10004_s11 = scalar_select %p11291_p7, %s9856_s13, %s56_s23  }
  0x3a   : > { %s254_s21 = sand.u32 1, %s9860_s14   ;;  %p11293_p9 = scmp.ne.s32.totalorder %s9856_s13, %s9852_s12 }
  0x3b   : > { %11292 = sst [smem:[#allocation18_spill]] %s10004_s11  ;;  %s8218_s24 = smul.u32 18, %s10009_s17 }
  0x3c   : > { %p65_p12 = por %p64_p4, %p11293_p9  ;;  %s8219_s26 = smul.u32 288, %s9860_s14 }
  0x3d   : > { %s9864_s27 = smov [#allocation13]   ;;  %s11295_s3 = sld [smem:[#allocation20_spill]] }
  0x3e   : > { %p10016_p13 = pnand %p8258_p8, %p65_p12  ;;  %s222_s18 = sshll.u32 %s9864_s27, 4  ;;  %s10026_s18 = int_to_ptr.vmem [resolvable:$true] %s222_s18 }
  0x3f   : > { %s258_s29 = scalar_lea.vmem [#allocation8], %s8218_s24  ;;  %s10030_s8 = scalar_lea.sflag [#allocation9], %s254_s21 }
  0x40   : > { %s11294_s25 = scalar_select %p10016_p13, 1, 0 }
  0x41   : > { %s266_s30 = sshll.u32 %s258_s29, 4  ;;  %p10036_p2 = pneg %p10016_p13  ;;  %s10028_s30 = int_to_ptr.vmem [resolvable:$true] %s266_s30 }
  0x43   : > { %s10024_s28 = scalar_lea.hbm %s11295_s3, %s8219_s26  ;;  %s9703_s27 = scalar_lea.hbm %s11295_s3, 4608 }
  0x44   : > { %s9698_s9 = scalar_lea.hbm %s10024_s28, 288  ;;  %p9704_p6 = scmp.lt.u32.totalorder %s10024_s28, %s11295_s3 }
  0x45   : > { %p9699_p0 = scmp.ne.s32.totalorder %s10024_s28, %s9698_s9  ;;  %p9705_p10 = scmp.lt.u32.totalorder %s9703_s27, %s9698_s9 }
  0x46   : > { %p9707_p4 = scmp.lt.u32.totalorder %s9698_s9, %s10024_s28 }
  0x47   : > { %p9701_p3 = pnand %p10036_p2, %p9699_p0  ;;  %p9706_p7 = por %p9705_p10, %p9704_p6 }
  0x49   : > { %p9702_p5 = pneg %p9701_p3  ;;  %p9708_p8 = por %p9707_p4, %p9706_p7 }
  0x4b   : > { %p9709_p9 = pnand %p9708_p8, %p9702_p5 }
  0x4d   : > { %9712 = shalt.err (!%p9709_p9)
}
  0x4e   : > { %s9713_s21 = scalar_lea.vmem %s10028_s30, 288  ;;  %s9865_s29 = smov [#allocation8]  }
  0x4f   : > { %p9714_p12 = scmp.ne.s32.totalorder %s10028_s30, %s9713_s21  ;;  %s9718_s26 = sshll.u32 %s9865_s29, 4  ;;  %s9719_s26 = int_to_ptr.vmem [resolvable:$false] %s9718_s26 }
  0x50   : > { %s9720_s24 = scalar_lea.vmem %s9719_s26, 576  ;;  %p9721_p1 = scmp.lt.s32.totalorder %s10028_s30, %s9719_s26 }
  0x51   : > { %p9716_p0 = pnand %p9714_p12, %p10036_p2  ;;  %p9722_p11 = scmp.lt.s32.totalorder %s9720_s24, %s9713_s21 }
  0x53   : > { %p9717_p3 = pneg %p9716_p0  ;;  %p9723_p6 = por %p9722_p11, %p9721_p1 }
  0x55   : > { %p9724_p10 = pnand %p9723_p6, %p9717_p3 }
  0x57   : > { %9727 = shalt.err (!%p9724_p10)
}
  0x58   : > { %8252 = dma.hbm_to_vmem [thread:$0]  (!%p10016_p13), %s10024_s28, 288, %s10028_s30, %s10030_s8  }
  0x59   : > { %s11297_s6 = sld [smem:[#allocation22_spill]]  ;;  %p11298_p7 = scmp.ne.s32.totalorder %s11288_s20, 0 }
  0x5b   : > { %p11299_p4 = pneg %p11298_p7 }
  0x5f   : > { %s9728_s22 = scalar_lea.hbm %s11297_s6, 16 }
  0x60   : > { %p9729_p5 = scmp.ne.s32.totalorder %s11297_s6, %s9728_s22  ;;  %p9735_p8 = scmp.lt.u32.totalorder %s9728_s22, %s11297_s6 }
  0x62   : > { %p9731_p11 = pnand %p9729_p5, %p11299_p4 }
  0x64   : > { %p9732_p1 = pneg %p9731_p11 }
  0x66   : > { %p9737_p9 = pnand %p9735_p8, %p9732_p1 }
  0x68   : > { %9740 = shalt.err (!%p9737_p9)
}
  0x69   : > { %s9741_s28 = scalar_lea.vmem %s10026_s18, 16  ;;  %p11300_p0 = pmov %p11299_p4 }
  0x6a   : > { %p9742_p12 = scmp.ne.s32.totalorder %s10026_s18, %s9741_s28  ;;  %s9748_s30 = scalar_lea.vmem %s10026_s18, 32 }
  0x6b   : > { %p9749_p10 = scmp.lt.s32.totalorder %s10026_s18, %s10026_s18  ;;  %p9750_p5 = scmp.lt.s32.totalorder %s9748_s30, %s9741_s28 }
  0x6c   : > { %p9744_p3 = pnand %p9742_p12, %p11300_p0 }
  0x6d   : > { %p9751_p4 = por %p9750_p5, %p9749_p10 }
  0x6e   : > { %p9745_p6 = pneg %p9744_p3 }
  0x70   : > { %p9752_p11 = pnand %p9751_p4, %p9745_p6 }
  0x72   : > { %9755 = shalt.err (!%p9752_p11)
}
  0x73   : > { %8245 = dma.hbm_to_vmem [thread:$0]  (!%p11298_p7), %s11297_s6, 16, %s10026_s18, [#allocation12]  }
  0x74   : > { %s8216_s27 = smul.u32 6912, %s10009_s17  ;;  %s11301_s2 = sld [smem:[#allocation19_spill]] }
  0x75   : > { %s8217_s22 = smul.u32 110592, %s9860_s14  ;;  %s234_s30 = scalar_lea.sflag [#allocation7], %s10009_s17 }
  0x76   : > { %s8220_s23 = smul.u32 6, %s10009_s17  ;;  %s237_s20 = scalar_lea.vmem [#allocation6], %s8216_s27 }
  0x77   : > { %s244_s28 = sshll.u32 %s237_s20, 4  ;;  %s10094_s28 = int_to_ptr.vmem [resolvable:$true] %s244_s28 }
  0x7a   : > { %s10092_s26 = scalar_lea.hbm %s11301_s2, %s8217_s22  ;;  %s9761_s29 = scalar_lea.hbm %s11301_s2, 1769472 }
  0x7b   : > { %s9756_s24 = scalar_lea.hbm %s10092_s26, 110592  ;;  %p9762_p9 = scmp.lt.u32.totalorder %s10092_s26, %s11301_s2 }
  0x7c   : > { %p9757_p1 = scmp.ne.s32.totalorder %s10092_s26, %s9756_s24  ;;  %p9763_p12 = scmp.lt.u32.totalorder %s9761_s29, %s9756_s24 }
  0x7d   : > { %p9765_p3 = scmp.lt.u32.totalorder %s9756_s24, %s10092_s26 }
  0x7e   : > { %p9759_p7 = pnand %p9757_p1, %p10036_p2  ;;  %p9764_p0 = por %p9763_p12, %p9762_p9 }
  0x80   : > { %p9760_p8 = pneg %p9759_p7  ;;  %p9766_p6 = por %p9765_p3, %p9764_p0 }
  0x82   : > { %p9767_p10 = pnand %p9766_p6, %p9760_p8 }
  0x84   : > { %9770 = shalt.err (!%p9767_p10)
}
  0x85   : > { %s9771_s27 = scalar_lea.vmem %s10094_s28, 110592  ;;  %s9866_s20 = smov [#allocation6]  }
  0x86   : > { %p9772_p5 = scmp.ne.s32.totalorder %s10094_s28, %s9771_s27  ;;  %s9776_s18 = sshll.u32 %s9866_s20, 4  ;;  %s9777_s18 = int_to_ptr.vmem [resolvable:$false] %s9776_s18 }
  0x87   : > { %s9778_s9 = scalar_lea.vmem %s9777_s18, 221184  ;;  %p9779_p1 = scmp.lt.s32.totalorder %s10094_s28, %s9777_s18 }
  0x88   : > { %p9774_p4 = pnand %p9772_p5, %p10036_p2  ;;  %p9780_p7 = scmp.lt.s32.totalorder %s9778_s9, %s9771_s27 }
  0x8a   : > { %p9775_p11 = pneg %p9774_p4  ;;  %p9781_p9 = por %p9780_p7, %p9779_p1 }
  0x8c   : > { %p9782_p12 = pnand %p9781_p9, %p9775_p11 }
  0x8e   : > { %9785 = shalt.err (!%p9782_p12)
}
  0x8f   : > { %s9867_s24 = smov 1152   ;;  %s9868_s29 = smov 72  }
  0x90   : > { %8249 = dma.hbm_to_vmem [thread:$0]  (!%p10016_p13), %s10092_s26, 110592, %s10094_s28, %s234_s30, %s9867_s24, %s9867_s24, %s9868_s29  }
  0x91   : > { %s8221_s22 = smul.u32 96, %s9860_s14  ;;  %s277_s21 = scalar_lea.vmem [#allocation10], %s8220_s23 }
  0x92   : > { %s285_s20 = sshll.u32 %s277_s21, 4  ;;  %s9791_s6 = scalar_lea.hbm %s11271_s4, 1536  ;;  %s286_s20 = int_to_ptr.vmem [resolvable:$true] %s285_s20 }
  0x93   : > { %s283_s9 = scalar_lea.hbm %s11271_s4, %s8221_s22 }
  0x94   : > { %s9786_s2 = scalar_lea.hbm %s283_s9, 96  ;;  %p9792_p6 = scmp.lt.u32.totalorder %s283_s9, %s11271_s4 }
  0x95   : > { %p9787_p8 = scmp.ne.s32.totalorder %s283_s9, %s9786_s2  ;;  %p9793_p10 = scmp.lt.u32.totalorder %s9791_s6, %s9786_s2 }
  0x96   : > { %p9795_p4 = scmp.lt.u32.totalorder %s9786_s2, %s283_s9 }
  0x97   : > { %p9789_p0 = pnand %p9787_p8, %p10036_p2  ;;  %p9794_p5 = por %p9793_p10, %p9792_p6 }
  0x99   : > { %p9790_p3 = pneg %p9789_p0  ;;  %p9796_p11 = por %p9795_p4, %p9794_p5 }
  0x9b   : > { %p9797_p1 = pnand %p9796_p11, %p9790_p3 }
  0x9d   : > { %9800 = shalt.err (!%p9797_p1)
}
  0x9e   : > { %s9801_s14 = scalar_lea.vmem %s286_s20, 96  ;;  %s9869_s17 = smov [#allocation10]  }
  0x9f   : > { %p9802_p7 = scmp.ne.s32.totalorder %s286_s20, %s9801_s14  ;;  %s9806_s23 = sshll.u32 %s9869_s17, 4  ;;  %s9807_s23 = int_to_ptr.vmem [resolvable:$false] %s9806_s23 }
  0xa0   : > { %s9808_s3 = scalar_lea.vmem %s9807_s23, 192  ;;  %p9809_p8 = scmp.lt.s32.totalorder %s286_s20, %s9807_s23 }
  0xa1   : > { %p9804_p9 = pnand %p9802_p7, %p10036_p2  ;;  %p9810_p0 = scmp.lt.s32.totalorder %s9808_s3, %s9801_s14 }
  0xa3   : > { %p9805_p12 = pneg %p9804_p9  ;;  %p9811_p13 = por %p9810_p0, %p9809_p8 }
  0xa5   : > { %p9812_p6 = pnand %p9811_p13, %p9805_p12 }
  0xa7   : > { %9815 = shalt.err (!%p9812_p6)
}
  0xa8   : > { %p11302_p10 = scmp.ne.s32.totalorder %s11294_s25, 0  ;;  %p11303_p3 = scmp.ne.s32.totalorder %s11287_s16, 0 }
  0xa9   : > { %s296_s2 = sand.u32 (!%p11303_p3), 1, %s9852_s12   ;;  %p11304_p2 = scmp.ne.s32.totalorder (!%p11303_p3), %s11286_s15, 0 }
  0xaa   : > { %8255 = dma.hbm_to_vmem [thread:$0]  (!%p11302_p10), %s283_s9, 96, %s286_s20, %s10030_s8  }
  0xab   : > { %294 = sbr.rel (%p11303_p3) target bundleno = 1700 (0x6a4), region = 44  ;;  %s297_s6 = scalar_lea.sflag (!%p11303_p3), [#allocation7], %s296_s2 }
  0xac   : > { %s8222_s5 = smul.u32 (!%p11303_p3), 6912, %s296_s2 }
  0xae   : > { %s10142_s11 = scalar_lea.vmem (!%p11303_p3), [#allocation6], %s8222_s5 }
  0xb2   : > { %9835 = dma.done.wait (%p11304_p2), %s297_s6, 110592  }
  0xb3   : > { %9837 = vsyncadd (%p11304_p2), %s297_s6, 4294856704  ;;  %s305_s25 = sand.u32 1, %s9942_s0   ;;  %s8223_s10 = smul.u32 18, %s296_s2 }
  0xb4   : > { %s306_s8 = scalar_lea.sflag [#allocation9], %s305_s25 }
  0xb5   : > { %s10149_s28 = scalar_lea.vmem [#allocation8], %s8223_s10 }
  0xb6   : > { %9839 = dma.done.wait (%p11304_p2), %s306_s8, 384  }
  0xb7   : > { %9841 = vsyncadd (%p11304_p2), %s306_s8, 4294966912  ;;  %s8224_s16 = smul.u32 6, %s296_s2  ;;  %p11305_p13 = scmp.eq.s32.totalorder %s9942_s0, 0 }
  0xb9   : > { %s10155_s30 = scalar_lea.vmem [#allocation10], %s8224_s16 }
  0xba   : > { %9843 = dma.done.wait (%p11305_p13), [#allocation12], 112   ;;  %p11306_p5 = pmov %p11305_p13 }
  0xbb   : > { %s361_s24 = sshra.s32 %s9942_s0, 7  ;;  %s366_s29 = sand.u32 127, %s9942_s0 }
  0xbc   : > { %9845 = vsyncadd (%p11306_p5), [#allocation12], 4294967184  ;;  %s10164_s22 = sld [smem:[#allocation5 + %s9942_s0]]  ;;  %s8138_s21 = sshll.u32 %s361_s24, 7 }
  0xbd   : > { %s8139_s20 = sadd.s32 128, %s8138_s21  ;;  %s8141_s15 = sadd.s32 256, %s8138_s21 }
  0xbe   : > { %s367_s27 = sadd.s32 %s8139_s20, %s366_s29  ;;  %s371_s18 = sadd.s32 %s8141_s15, %s366_s29 }
  0xbf   : > { %s10166_s9 = sld [smem:[#allocation5 + %s367_s27]]  ;;  %s8143_s14 = sadd.s32 384, %s8138_s21 }
  0xc0   : > { %s10168_s26 = sld [smem:[#allocation5 + %s371_s18]]  ;;  %s375_s17 = sadd.s32 %s8143_s14, %s366_s29 }
  0xc1   : > { %s10170_s23 = sld [smem:[#allocation5 + %s375_s17]]  ;;  %p11307_p4 = scmp.ne.s32.totalorder %s9942_s0, 0 }
  0xc2   : > { %v381_v0 = vld [vmem:[%s11268_s1] sm:$0xff] (!%p11307_p4)  ;;  %v382_v1 = vld [vmem:[%s11268_s1 + $0x8] sm:$0xff] (!%p11307_p4)  ;;  %v383_v2 = vld [vmem:[%s11268_s1 + $0x10] sm:$0xff] (!%p11307_p4) }
  0xc3   : > { %380 = sbr.rel (%p11307_p4) target bundleno = 202 (0xca), region = 68  ;;  %387 = vst [vmem:[#allocation2] sm:$0xff] (!%p11307_p4), %v381_v0  ;;  %388 = vst [vmem:[#allocation2 + $0x8] sm:$0xff] (!%p11307_p4), %v382_v1  ;;  %v384_v3 = vld [vmem:[%s11268_s1 + $0x18] sm:$0xff] (!%p11307_p4)  ;;  %v385_v4 = vld [vmem:[%s11268_s1 + $0x20] sm:$0xff] (!%p11307_p4) }
  0xc4   : > { %389 = vst [vmem:[#allocation2 + $0x10] sm:$0xff] (!%p11307_p4), %v383_v2  ;;  %v386_v5 = vld [vmem:[%s11268_s1 + $0x28] sm:$0xff] (!%p11307_p4)  ;;  %390 = vst [vmem:[#allocation2 + $0x18] sm:$0xff] (!%p11307_p4), %v384_v3 }
  0xc5   : > { %391 = vst [vmem:[#allocation2 + $0x20] sm:$0xff] (!%p11307_p4), %v385_v4  ;;  %392 = vst [vmem:[#allocation2 + $0x28] sm:$0xff] (!%p11307_p4), %v386_v5 }
  0xca PF: > { %v8299_v6 = vld [vmem:[%s10142_s11 + $0x4] ss:$72 sps:$4 sm:$0xff]   ;;  %v8303_v8 = vld [vmem:[%s10142_s11] ss:$72 sps:$4 sm:$0xff]   ;;  %v8305_v10 = vld [vmem:[%s10142_s11 + $0x94] ss:$72 sps:$4 sm:$0xff]  }
  0xcb   : > { %v8301_v7 = vld [vmem:[%s10142_s11 + $0x904] ss:$72 sps:$4 sm:$0xff]   ;;  %5592 = vmatprep.subr.bf16.mxu1 %v8299_v6  ;;  %v8304_v9 = vld [vmem:[%s10142_s11 + $0x900] ss:$72 sps:$4 sm:$0xff]   ;;  %v8307_v11 = vld [vmem:[%s10142_s11 + $0x994] ss:$72 sps:$4 sm:$0xff]  }
  0xcc   : > { %5633 = vmatprep.subr.bf16.mxu0 %v8301_v7  ;;  %5593 = vmatpush1.bf16.msra.mxu1 %v8303_v8  ;;  %v8309_v12 = vld [vmem:[%s10142_s11 + $0x90] ss:$72 sps:$4 sm:$0xff]   ;;  %v8311_v14 = vld [vmem:[%s10142_s11 + $0x124] ss:$72 sps:$4 sm:$0xff]   ;;  %v8315_v16 = vld [vmem:[%s10142_s11 + $0x120] ss:$72 sps:$4 sm:$0xff]  }
  0xcd   : > { %5634 = vmatpush1.bf16.msra.mxu0 %v8304_v9  ;;  %5594 = vmatprep.subr.bf16.mxu1 %v8305_v10  ;;  %v8310_v13 = vld [vmem:[%s10142_s11 + $0x990] ss:$72 sps:$4 sm:$0xff]   ;;  %v8313_v15 = vld [vmem:[%s10142_s11 + $0xa24] ss:$72 sps:$4 sm:$0xff]   ;;  %v8316_v17 = vld [vmem:[%s10142_s11 + $0xa20] ss:$72 sps:$4 sm:$0xff]  }
  0xce   : > { %5635 = vmatprep.subr.bf16.mxu0 %v8307_v11  ;;  %v8317_v18 = vld [vmem:[%s10142_s11 + $0x1b4] ss:$72 sps:$4 sm:$0xff]   ;;  %v8321_v20 = vld [vmem:[%s10142_s11 + $0x1b0] ss:$72 sps:$4 sm:$0xff]   ;;  %v8323_v22 = vld [vmem:[%s10142_s11 + $0x244] ss:$72 sps:$4 sm:$0xff]  }
  0xcf   : > { %v8319_v19 = vld [vmem:[%s10142_s11 + $0xab4] ss:$72 sps:$4 sm:$0xff]   ;;  %v8322_v21 = vld [vmem:[%s10142_s11 + $0xab0] ss:$72 sps:$4 sm:$0xff]   ;;  %v8325_v23 = vld [vmem:[%s10142_s11 + $0xb44] ss:$72 sps:$4 sm:$0xff]  }
  0xd0   : > { %5595 = vmatpush1.bf16.msra.mxu1 %v8309_v12  ;;  %v8327_v24 = vld [vmem:[%s10142_s11 + $0x240] ss:$72 sps:$4 sm:$0xff]   ;;  %v8329_v26 = vld [vmem:[%s10142_s11 + $0x2d4] ss:$72 sps:$4 sm:$0xff]   ;;  %v8333_v28 = vld [vmem:[%s10142_s11 + $0x2d0] ss:$72 sps:$4 sm:$0xff]  }
  0xd1   : > { %5636 = vmatpush1.bf16.msra.mxu0 %v8310_v13  ;;  %5596 = vmatprep.subr.bf16.mxu1 %v8311_v14  ;;  %v8328_v25 = vld [vmem:[%s10142_s11 + $0xb40] ss:$72 sps:$4 sm:$0xff]   ;;  %v8331_v27 = vld [vmem:[%s10142_s11 + $0xbd4] ss:$72 sps:$4 sm:$0xff]   ;;  %v8334_v29 = vld [vmem:[%s10142_s11 + $0xbd0] ss:$72 sps:$4 sm:$0xff]  }
  0xd2   : > { %5637 = vmatprep.subr.bf16.mxu0 %v8313_v15  ;;  %v8335_v30 = vld [vmem:[%s10142_s11 + $0x364] ss:$72 sps:$4 sm:$0xff]   ;;  %v8339_v32 = vld [vmem:[%s10142_s11 + $0x360] ss:$72 sps:$4 sm:$0xff]   ;;  %v8341_v34 = vld [vmem:[%s10142_s11 + $0x3f4] ss:$72 sps:$4 sm:$0xff]  }
  0xd3   : > { %v8337_v31 = vld [vmem:[%s10142_s11 + $0xc64] ss:$72 sps:$4 sm:$0xff]   ;;  %v8340_v33 = vld [vmem:[%s10142_s11 + $0xc60] ss:$72 sps:$4 sm:$0xff]   ;;  %v8343_v35 = vld [vmem:[%s10142_s11 + $0xcf4] ss:$72 sps:$4 sm:$0xff]  }
  0xd4   : > { %5597 = vmatpush1.bf16.msra.mxu1 %v8315_v16  ;;  %v8345_v36 = vld [vmem:[%s10142_s11 + $0x3f0] ss:$72 sps:$4 sm:$0xff]   ;;  %v8347_v38 = vld [vmem:[%s10142_s11 + $0x484] ss:$72 sps:$4 sm:$0xff]   ;;  %v8351_v40 = vld [vmem:[%s10142_s11 + $0x480] ss:$72 sps:$4 sm:$0xff]  }
  0xd5   : > { %5638 = vmatpush1.bf16.msra.mxu0 %v8316_v17  ;;  %5598 = vmatprep.subr.bf16.mxu1 %v8317_v18  ;;  %v8346_v37 = vld [vmem:[%s10142_s11 + $0xcf0] ss:$72 sps:$4 sm:$0xff]   ;;  %v8349_v39 = vld [vmem:[%s10142_s11 + $0xd84] ss:$72 sps:$4 sm:$0xff]   ;;  %v8352_v41 = vld [vmem:[%s10142_s11 + $0xd80] ss:$72 sps:$4 sm:$0xff]  }
  0xd6   : > { %5639 = vmatprep.subr.bf16.mxu0 %v8319_v19  ;;  %v8353_v42 = vld [vmem:[%s10142_s11 + $0x514] ss:$72 sps:$4 sm:$0xff]   ;;  %v8357_v44 = vld [vmem:[%s10142_s11 + $0x510] ss:$72 sps:$4 sm:$0xff]   ;;  %s8144_s20 = smul.u32 48, %s10168_s26  ;;  %p8116_p11 = scmp.ne.s32.totalorder %s10164_s22, 1 }
  0xd7   : > { %v8355_v43 = vld [vmem:[%s10142_s11 + $0xe14] ss:$72 sps:$4 sm:$0xff]   ;;  %v8358_v45 = vld [vmem:[%s10142_s11 + $0xe10] ss:$72 sps:$4 sm:$0xff]   ;;  %v8359_v46 = vld [vmem:[%s10142_s11 + $0x5a4] ss:$72 sps:$4 sm:$0xff]  }
  0xd8   : > { %5599 = vmatpush1.bf16.msra.mxu1 %v8321_v20  ;;  %v8361_v47 = vld [vmem:[%s10142_s11 + $0xea4] ss:$72 sps:$4 sm:$0xff]   ;;  %v8363_v48 = vld [vmem:[%s10142_s11 + $0x5a0] ss:$72 sps:$4 sm:$0xff]   ;;  %v8365_v50 = vld [vmem:[%s10142_s11 + $0x634] ss:$72 sps:$4 sm:$0xff]  }
  0xd9   : > { %5640 = vmatpush1.bf16.msra.mxu0 %v8322_v21  ;;  %5600 = vmatprep.subr.bf16.mxu1 %v8323_v22  ;;  %v8364_v49 = vld [vmem:[%s10142_s11 + $0xea0] ss:$72 sps:$4 sm:$0xff]   ;;  %v8367_v51 = vld [vmem:[%s10142_s11 + $0xf34] ss:$72 sps:$4 sm:$0xff]   ;;  %s10239_s15 = scalar_lea.vmem [#allocation2], %s8144_s20 }
  0xda   : > { %5641 = vmatprep.subr.bf16.mxu0 %v8325_v23  ;;  %v397_v52 = vld [vmem:[%s10239_s15 + $0x8] sm:$0xff]  ;;  %v399_v54 = vld [vmem:[%s10239_s15 + $0x18] sm:$0xff]  ;;  %v396_v11 = vld [vmem:[%s10239_s15] sm:$0xff] }
  0xdb   : > { %v10242_v53 = vpack.c.bf16 %v397_v52, %v397_v52  ;;  %v8369_v55 = vld [vmem:[%s10142_s11 + $0x630] ss:$72 sps:$4 sm:$0xff]   ;;  %v10247_v57 = vpack.c.bf16 %v399_v54, %v399_v54  ;;  %v8371_v58 = vld [vmem:[%s10142_s11 + $0x6c4] ss:$72 sps:$4 sm:$0xff]   ;;  %v8375_v60 = vld [vmem:[%s10142_s11 + $0x6c0] ss:$72 sps:$4 sm:$0xff]   ;;  %v10273_v16 = vpack.c.bf16 %v396_v11, %v396_v11 }
  0xdc   : > { %5601 = vmatpush1.bf16.msra.mxu1 %v8327_v24  ;;  %v8370_v56 = vld [vmem:[%s10142_s11 + $0xf30] ss:$72 sps:$4 sm:$0xff]   ;;  %v8373_v59 = vld [vmem:[%s10142_s11 + $0xfc4] ss:$72 sps:$4 sm:$0xff]   ;;  %v8376_v61 = vld [vmem:[%s10142_s11 + $0xfc0] ss:$72 sps:$4 sm:$0xff]  }
  0xdd   : > { %5642 = vmatpush1.bf16.msra.mxu0 %v8328_v25  ;;  %5602 = vmatprep.subr.bf16.mxu1 %v8329_v26  ;;  %v8377_v62 = vld [vmem:[%s10142_s11 + $0x754] ss:$72 sps:$4 sm:$0xff]   ;;  %v8381_v0 = vld [vmem:[%s10142_s11 + $0x750] ss:$72 sps:$4 sm:$0xff]   ;;  %v8383_v2 = vld [vmem:[%s10142_s11 + $0x7e4] ss:$72 sps:$4 sm:$0xff]  }
  0xde   : > { %5643 = vmatprep.subr.bf16.mxu0 %v8331_v27  ;;  %5624 = vmatprep.mubr.bf16.mxu1 %v10242_v53  ;;  %v8379_v63 = vld [vmem:[%s10142_s11 + $0x1054] ss:$72 sps:$4 sm:$0xff]   ;;  %v8382_v1 = vld [vmem:[%s10142_s11 + $0x1050] ss:$72 sps:$4 sm:$0xff]   ;;  %v8385_v3 = vld [vmem:[%s10142_s11 + $0x10e4] ss:$72 sps:$4 sm:$0xff]  }
  0xdf   : > { %5665 = vmatprep.mubr.bf16.mxu0 %v10247_v57  ;;  %v8387_v4 = vld [vmem:[%s10142_s11 + $0x7e0] ss:$72 sps:$4 sm:$0xff]   ;;  %v8389_v6 = vld [vmem:[%s10142_s11 + $0x874] ss:$72 sps:$4 sm:$0xff]   ;;  %v8393_v8 = vld [vmem:[%s10142_s11 + $0x870] ss:$72 sps:$4 sm:$0xff]  }
  0xe0   : > { %5603 = vmatpush1.bf16.msra.mxu1 %v8333_v28  ;;  %v8388_v5 = vld [vmem:[%s10142_s11 + $0x10e0] ss:$72 sps:$4 sm:$0xff]   ;;  %v8391_v7 = vld [vmem:[%s10142_s11 + $0x1174] ss:$72 sps:$4 sm:$0xff]   ;;  %v8394_v9 = vld [vmem:[%s10142_s11 + $0x1170] ss:$72 sps:$4 sm:$0xff]  }
  0xe1   : > { %5644 = vmatpush1.bf16.msra.mxu0 %v8334_v29  ;;  %5604 = vmatprep.subr.bf16.mxu1 %v8335_v30  ;;  %v8397_v10 = vld [vmem:[%s10142_s11 + $0x1204] ss:$72 sps:$4 sm:$0xff]   ;;  %v8395_v14 = vld [vmem:[%s10142_s11 + $0x1200] ss:$72 sps:$4 sm:$0xff]   ;;  %v8403_v18 = vld [vmem:[%s10142_s11 + $0x1294] ss:$72 sps:$4 sm:$0xff]  }
  0xe2   : > { %5645 = vmatprep.subr.bf16.mxu0 %v8337_v31  ;;  %v398_v12 = vld [vmem:[%s10239_s15 + $0x10] sm:$0xff]  ;;  %v8400_v13 = vld [vmem:[%s10142_s11 + $0xc] ss:$72 sps:$4 sm:$0xff]   ;;  %v8398_v15 = vld [vmem:[%s10142_s11 + $0x8] ss:$72 sps:$4 sm:$0xff]  }
  0xe3   : > { %v10275_v17 = vpack.c.bf16 %v398_v12, %v398_v12  ;;  %v8406_v19 = vld [vmem:[%s10142_s11 + $0x9c] ss:$72 sps:$4 sm:$0xff]   ;;  %v8401_v20 = vld [vmem:[%s10142_s11 + $0x1290] ss:$72 sps:$4 sm:$0xff]   ;;  %v8412_v23 = vld [vmem:[%s10142_s11 + $0x12c] ss:$72 sps:$4 sm:$0xff]  }
  0xe4   : > { %5605 = vmatpush1.bf16.msra.mxu1 %v8339_v32  ;;  %v8404_v21 = vld [vmem:[%s10142_s11 + $0x98] ss:$72 sps:$4 sm:$0xff]   ;;  %v8409_v22 = vld [vmem:[%s10142_s11 + $0x1324] ss:$72 sps:$4 sm:$0xff]   ;;  %v8410_v25 = vld [vmem:[%s10142_s11 + $0x128] ss:$72 sps:$4 sm:$0xff]  }
  0xe5   : > { %5646 = vmatpush1.bf16.msra.mxu0 %v8340_v33  ;;  %5606 = vmatprep.subr.bf16.mxu1 %v8341_v34  ;;  %v8407_v24 = vld [vmem:[%s10142_s11 + $0x1320] ss:$72 sps:$4 sm:$0xff]   ;;  %v8415_v26 = vld [vmem:[%s10142_s11 + $0x13b4] ss:$72 sps:$4 sm:$0xff]   ;;  %v8413_v28 = vld [vmem:[%s10142_s11 + $0x13b0] ss:$72 sps:$4 sm:$0xff]  }
  0xe6   : > { %5647 = vmatprep.subr.bf16.mxu0 %v8343_v35  ;;  %v8418_v27 = vld [vmem:[%s10142_s11 + $0x1bc] ss:$72 sps:$4 sm:$0xff]   ;;  %v8416_v29 = vld [vmem:[%s10142_s11 + $0x1b8] ss:$72 sps:$4 sm:$0xff]   ;;  %v8424_v31 = vld [vmem:[%s10142_s11 + $0x24c] ss:$72 sps:$4 sm:$0xff]  }
  0xe7   : > { %v8421_v30 = vld [vmem:[%s10142_s11 + $0x1444] ss:$72 sps:$4 sm:$0xff]   ;;  %v8419_v32 = vld [vmem:[%s10142_s11 + $0x1440] ss:$72 sps:$4 sm:$0xff]   ;;  %v8427_v34 = vld [vmem:[%s10142_s11 + $0x14d4] ss:$72 sps:$4 sm:$0xff]  }
  0xe8   : > { %5607 = vmatpush1.bf16.msra.mxu1 %v8345_v36  ;;  %v8422_v33 = vld [vmem:[%s10142_s11 + $0x248] ss:$72 sps:$4 sm:$0xff]   ;;  %v8430_v35 = vld [vmem:[%s10142_s11 + $0x2dc] ss:$72 sps:$4 sm:$0xff]   ;;  %v8484_v11 = vld [vmem:[%s10142_s11 + $0x7ec] ss:$72 sps:$4 sm:$0xff]  }
  0xe9   : > { %5648 = vmatpush1.bf16.msra.mxu0 %v8346_v37  ;;  %5608 = vmatprep.subr.bf16.mxu1 %v8347_v38  ;;  %v8425_v36 = vld [vmem:[%s10142_s11 + $0x14d0] ss:$72 sps:$4 sm:$0xff]   ;;  %v8433_v38 = vld [vmem:[%s10142_s11 + $0x1564] ss:$72 sps:$4 sm:$0xff]   ;;  %v8451_v52 = vld [vmem:[%s10142_s11 + $0x1714] ss:$72 sps:$4 sm:$0xff]  }
  0xea   : > { %5649 = vmatprep.subr.bf16.mxu0 %v8349_v39  ;;  %v8428_v37 = vld [vmem:[%s10142_s11 + $0x2d8] ss:$72 sps:$4 sm:$0xff]   ;;  %v8436_v39 = vld [vmem:[%s10142_s11 + $0x36c] ss:$72 sps:$4 sm:$0xff]   ;;  %v8454_v54 = vld [vmem:[%s10142_s11 + $0x51c] ss:$72 sps:$4 sm:$0xff]  }
  0xeb   : > { %v8479_v12 = vld [vmem:[%s10142_s11 + $0x19e0] ss:$72 sps:$4 sm:$0xff]  }
  0xec   : > { %5609 = vmatpush1.bf16.msra.mxu1 %v8351_v40  ;;  %v401_v40 = vld [vmem:[%s10239_s15 + $0x28] sm:$0xff] }
  0xed   : > { %5650 = vmatpush1.bf16.msra.mxu0 %v8352_v41  ;;  %5610 = vmatprep.subr.bf16.mxu1 %v8353_v42  ;;  %v10303_v41 = vpack.c.bf16 %v401_v40, %v401_v40  ;;  %v8431_v42 = vld [vmem:[%s10142_s11 + $0x1560] ss:$72 sps:$4 sm:$0xff]  }
  0xee   : > { %5651 = vmatprep.subr.bf16.mxu0 %v8355_v43  ;;  %v8434_v43 = vld [vmem:[%s10142_s11 + $0x368] ss:$72 sps:$4 sm:$0xff]  }
  0xef   : > { %v8515_v40 = vld [vmem:[%s10142_s11 + $0xb48] ss:$72 sps:$4 sm:$0xff]  }
  0xf0   : > { %5611 = vmatpush1.bf16.msra.mxu1 %v8357_v44  ;;  %v8439_v44 = vld [vmem:[%s10142_s11 + $0x15f4] ss:$72 sps:$4 sm:$0xff]  }
  0xf1   : > { %5652 = vmatpush1.bf16.msra.mxu0 %v8358_v45  ;;  %5612 = vmatprep.subr.bf16.mxu1 %v8359_v46  ;;  %v8442_v45 = vld [vmem:[%s10142_s11 + $0x3fc] ss:$72 sps:$4 sm:$0xff]   ;;  %v8437_v46 = vld [vmem:[%s10142_s11 + $0x15f0] ss:$72 sps:$4 sm:$0xff]  }
  0xf2   : > { %5653 = vmatprep.subr.bf16.mxu0 %v8361_v47  ;;  %v8440_v47 = vld [vmem:[%s10142_s11 + $0x3f8] ss:$72 sps:$4 sm:$0xff]  }
  0xf4   : > { %5613 = vmatpush1.bf16.msra.mxu1 %v8363_v48  ;;  %v8445_v48 = vld [vmem:[%s10142_s11 + $0x1684] ss:$72 sps:$4 sm:$0xff]  }
  0xf5   : > { %5654 = vmatpush1.bf16.msra.mxu0 %v8364_v49  ;;  %5614 = vmatprep.subr.bf16.mxu1 %v8365_v50  ;;  %v8448_v49 = vld [vmem:[%s10142_s11 + $0x48c] ss:$72 sps:$4 sm:$0xff]   ;;  %v8443_v50 = vld [vmem:[%s10142_s11 + $0x1680] ss:$72 sps:$4 sm:$0xff]  }
  0xf6   : > { %5655 = vmatprep.subr.bf16.mxu0 %v8367_v51  ;;  %v8446_v51 = vld [vmem:[%s10142_s11 + $0x488] ss:$72 sps:$4 sm:$0xff]  }
  0xf8   : > { %5615 = vmatpush1.bf16.msra.mxu1 %v8369_v55  ;;  %v8449_v55 = vld [vmem:[%s10142_s11 + $0x1710] ss:$72 sps:$4 sm:$0xff]  }
  0xf9   : > { %5656 = vmatpush1.bf16.msra.mxu0 %v8370_v56  ;;  %5616 = vmatprep.subr.bf16.mxu1 %v8371_v58  ;;  %v8452_v56 = vld [vmem:[%s10142_s11 + $0x518] ss:$72 sps:$4 sm:$0xff]   ;;  %v8457_v58 = vld [vmem:[%s10142_s11 + $0x17a4] ss:$72 sps:$4 sm:$0xff]  }
  0xfa   : > { %5657 = vmatprep.subr.bf16.mxu0 %v8373_v59  ;;  %v8460_v59 = vld [vmem:[%s10142_s11 + $0x5ac] ss:$72 sps:$4 sm:$0xff]  }
  0xfc   : > { %5617 = vmatpush1.bf16.msra.mxu1 %v8375_v60  ;;  %v8455_v60 = vld [vmem:[%s10142_s11 + $0x17a0] ss:$72 sps:$4 sm:$0xff]  }
  0xfd   : > { %5658 = vmatpush1.bf16.msra.mxu0 %v8376_v61  ;;  %5618 = vmatprep.subr.bf16.mxu1 %v8377_v62  ;;  %v8458_v61 = vld [vmem:[%s10142_s11 + $0x5a8] ss:$72 sps:$4 sm:$0xff]   ;;  %v8463_v62 = vld [vmem:[%s10142_s11 + $0x1834] ss:$72 sps:$4 sm:$0xff]  }
  0xfe   : > { %5659 = vmatprep.subr.bf16.mxu0 %v8379_v63  ;;  %v8466_v63 = vld [vmem:[%s10142_s11 + $0x63c] ss:$72 sps:$4 sm:$0xff]  }
 0x100   : > { %5619 = vmatpush1.bf16.msra.mxu1 %v8381_v0  ;;  %v8461_v0 = vld [vmem:[%s10142_s11 + $0x1830] ss:$72 sps:$4 sm:$0xff]  }
 0x101   : > { %5660 = vmatpush1.bf16.msra.mxu0 %v8382_v1  ;;  %5620 = vmatprep.subr.bf16.mxu1 %v8383_v2  ;;  %v8464_v1 = vld [vmem:[%s10142_s11 + $0x638] ss:$72 sps:$4 sm:$0xff]   ;;  %v8469_v2 = vld [vmem:[%s10142_s11 + $0x18c4] ss:$72 sps:$4 sm:$0xff]  }
 0x102   : > { %5661 = vmatprep.subr.bf16.mxu0 %v8385_v3  ;;  %v8472_v3 = vld [vmem:[%s10142_s11 + $0x6cc] ss:$72 sps:$4 sm:$0xff]  }
 0x104   : > { %5621 = vmatpush1.bf16.msra.mxu1 %v8387_v4  ;;  %v8467_v4 = vld [vmem:[%s10142_s11 + $0x18c0] ss:$72 sps:$4 sm:$0xff]  }
 0x105   : > { %5662 = vmatpush1.bf16.msra.mxu0 %v8388_v5  ;;  %5622 = vmatprep.subr.bf16.mxu1 %v8389_v6  ;;  %v8470_v5 = vld [vmem:[%s10142_s11 + $0x6c8] ss:$72 sps:$4 sm:$0xff]   ;;  %v8475_v6 = vld [vmem:[%s10142_s11 + $0x1954] ss:$72 sps:$4 sm:$0xff]  }
 0x106   : > { %5663 = vmatprep.subr.bf16.mxu0 %v8391_v7  ;;  %v8478_v7 = vld [vmem:[%s10142_s11 + $0x75c] ss:$72 sps:$4 sm:$0xff]  }
 0x108   : > { %5623 = vmatpush1.bf16.msra.mxu1 %v8393_v8  ;;  %v8473_v8 = vld [vmem:[%s10142_s11 + $0x1950] ss:$72 sps:$4 sm:$0xff]  }
 0x109   : > { %5664 = vmatpush1.bf16.msra.mxu0 %v8394_v9  ;;  %5715 = vmatprep.subr.bf16.mxu1 %v8400_v13  ;;  %v8476_v9 = vld [vmem:[%s10142_s11 + $0x758] ss:$72 sps:$4 sm:$0xff]   ;;  %v8482_v13 = vld [vmem:[%s10142_s11 + $0x7e8] ss:$72 sps:$4 sm:$0xff]  }
 0x10a   : > { %5674 = vmatprep.subr.bf16.mxu0 %v8397_v10  ;;  %v8481_v10 = vld [vmem:[%s10142_s11 + $0x19e4] ss:$72 sps:$4 sm:$0xff]  }
 0x10b   : > { %5625 = vmatmul.mubr.bf16.vlgmr.msra.gmra.mrb[0].mxu1 %v10273_v16 }
 0x10c   : > { %5666 = vmatmul.mubr.bf16.vlgmr.msra.gmra.mrb[0].mxu0 %v10275_v17  ;;  %5716 = vmatpush1.bf16.msra.mxu1 %v8398_v15  ;;  %v8490_v15 = vld [vmem:[%s10142_s11 + $0x87c] ss:$72 sps:$4 sm:$0xff]  }
 0x10d   : > { %5675 = vmatpush1.bf16.msra.mxu0 %v8395_v14  ;;  %5717 = vmatprep.subr.bf16.mxu1 %v8406_v19  ;;  %v8487_v14 = vld [vmem:[%s10142_s11 + $0x1a74] ss:$72 sps:$4 sm:$0xff]   ;;  %v8488_v19 = vld [vmem:[%s10142_s11 + $0x878] ss:$72 sps:$4 sm:$0xff]  }
 0x10e   : > { %5676 = vmatprep.subr.bf16.mxu0 %v8403_v18  ;;  %5747 = vmatprep.mubr.bf16.mxu1 %v10242_v53  ;;  %v8485_v18 = vld [vmem:[%s10142_s11 + $0x1a70] ss:$72 sps:$4 sm:$0xff]  }
 0x10f   : > { %5706 = vmatprep.mubr.bf16.mxu0 %v10303_v41 }
 0x110   : > { %5718 = vmatpush1.bf16.msra.mxu1 %v8404_v21  ;;  %v8493_v21 = vld [vmem:[%s10142_s11 + $0x90c] ss:$72 sps:$4 sm:$0xff]  }
 0x111   : > { %5677 = vmatpush1.bf16.msra.mxu0 %v8401_v20  ;;  %5719 = vmatprep.subr.bf16.mxu1 %v8412_v23  ;;  %v400_v20 = vld [vmem:[%s10239_s15 + $0x20] sm:$0xff] }
 0x112   : > { %5678 = vmatprep.subr.bf16.mxu0 %v8409_v22  ;;  %v8496_v22 = vld [vmem:[%s10142_s11 + $0x14] ss:$72 sps:$4 sm:$0xff]   ;;  %v10347_v23 = vpack.c.bf16 %v400_v20, %v400_v20 }
 0x113   : > { %v8580_v20 = vld [vmem:[%s10142_s11 + $0x7f4] ss:$72 sps:$4 sm:$0xff]  }
 0x114   : > { %5720 = vmatpush1.bf16.msra.mxu1 %v8410_v25  ;;  %v8494_v25 = vld [vmem:[%s10142_s11 + $0x10] ss:$72 sps:$4 sm:$0xff]  }
 0x115   : > { %5679 = vmatpush1.bf16.msra.mxu0 %v8407_v24  ;;  %5721 = vmatprep.subr.bf16.mxu1 %v8418_v27  ;;  %v8491_v24 = vld [vmem:[%s10142_s11 + $0x908] ss:$72 sps:$4 sm:$0xff]   ;;  %v8502_v27 = vld [vmem:[%s10142_s11 + $0xa4] ss:$72 sps:$4 sm:$0xff]  }
 0x116   : > { %5680 = vmatprep.subr.bf16.mxu0 %v8415_v26  ;;  %v8499_v26 = vld [vmem:[%s10142_s11 + $0x99c] ss:$72 sps:$4 sm:$0xff]  }
 0x118   : > { %5722 = vmatpush1.bf16.msra.mxu1 %v8416_v29  ;;  %v8500_v29 = vld [vmem:[%s10142_s11 + $0xa0] ss:$72 sps:$4 sm:$0xff]  }
 0x119   : > { %5681 = vmatpush1.bf16.msra.mxu0 %v8413_v28  ;;  %5723 = vmatprep.subr.bf16.mxu1 %v8424_v31  ;;  %v8497_v28 = vld [vmem:[%s10142_s11 + $0x998] ss:$72 sps:$4 sm:$0xff]   ;;  %v8508_v31 = vld [vmem:[%s10142_s11 + $0x134] ss:$72 sps:$4 sm:$0xff]  }
 0x11a   : > { %5682 = vmatprep.subr.bf16.mxu0 %v8421_v30  ;;  %v8505_v30 = vld [vmem:[%s10142_s11 + $0xa2c] ss:$72 sps:$4 sm:$0xff]  }
 0x11c   : > { %5724 = vmatpush1.bf16.msra.mxu1 %v8422_v33  ;;  %v8506_v33 = vld [vmem:[%s10142_s11 + $0x130] ss:$72 sps:$4 sm:$0xff]  }
 0x11d   : > { %5683 = vmatpush1.bf16.msra.mxu0 %v8419_v32  ;;  %5725 = vmatprep.subr.bf16.mxu1 %v8430_v35  ;;  %v8503_v32 = vld [vmem:[%s10142_s11 + $0xa28] ss:$72 sps:$4 sm:$0xff]   ;;  %v8514_v35 = vld [vmem:[%s10142_s11 + $0x1c4] ss:$72 sps:$4 sm:$0xff]  }
 0x11e   : > { %5684 = vmatprep.subr.bf16.mxu0 %v8427_v34  ;;  %v8511_v34 = vld [vmem:[%s10142_s11 + $0xabc] ss:$72 sps:$4 sm:$0xff]  }
 0x120   : > { %5726 = vmatpush1.bf16.msra.mxu1 %v8428_v37  ;;  %v8512_v37 = vld [vmem:[%s10142_s11 + $0x1c0] ss:$72 sps:$4 sm:$0xff]  }
 0x121   : > { %5685 = vmatpush1.bf16.msra.mxu0 %v8425_v36  ;;  %5727 = vmatprep.subr.bf16.mxu1 %v8436_v39  ;;  %v8509_v36 = vld [vmem:[%s10142_s11 + $0xab8] ss:$72 sps:$4 sm:$0xff]   ;;  %v8520_v39 = vld [vmem:[%s10142_s11 + $0x254] ss:$72 sps:$4 sm:$0xff]  }
 0x122   : > { %5686 = vmatprep.subr.bf16.mxu0 %v8433_v38  ;;  %v8517_v38 = vld [vmem:[%s10142_s11 + $0xb4c] ss:$72 sps:$4 sm:$0xff]  }
 0x124   : > { %5728 = vmatpush1.bf16.msra.mxu1 %v8434_v43  ;;  %v8523_v43 = vld [vmem:[%s10142_s11 + $0xbdc] ss:$72 sps:$4 sm:$0xff]  }
 0x125   : > { %5687 = vmatpush1.bf16.msra.mxu0 %v8431_v42  ;;  %5729 = vmatprep.subr.bf16.mxu1 %v8442_v45  ;;  %v8518_v42 = vld [vmem:[%s10142_s11 + $0x250] ss:$72 sps:$4 sm:$0xff]  }
 0x126   : > { %5688 = vmatprep.subr.bf16.mxu0 %v8439_v44  ;;  %v8526_v44 = vld [vmem:[%s10142_s11 + $0x2e4] ss:$72 sps:$4 sm:$0xff]   ;;  %v8521_v45 = vld [vmem:[%s10142_s11 + $0xbd8] ss:$72 sps:$4 sm:$0xff]  }
 0x128   : > { %5730 = vmatpush1.bf16.msra.mxu1 %v8440_v47  ;;  %v8529_v47 = vld [vmem:[%s10142_s11 + $0xc6c] ss:$72 sps:$4 sm:$0xff]  }
 0x129   : > { %5689 = vmatpush1.bf16.msra.mxu0 %v8437_v46  ;;  %5731 = vmatprep.subr.bf16.mxu1 %v8448_v49  ;;  %v8524_v46 = vld [vmem:[%s10142_s11 + $0x2e0] ss:$72 sps:$4 sm:$0xff]  }
 0x12a   : > { %5690 = vmatprep.subr.bf16.mxu0 %v8445_v48  ;;  %v8532_v48 = vld [vmem:[%s10142_s11 + $0x374] ss:$72 sps:$4 sm:$0xff]   ;;  %v8527_v49 = vld [vmem:[%s10142_s11 + $0xc68] ss:$72 sps:$4 sm:$0xff]  }
 0x12c   : > { %5732 = vmatpush1.bf16.msra.mxu1 %v8446_v51  ;;  %v8535_v51 = vld [vmem:[%s10142_s11 + $0xcfc] ss:$72 sps:$4 sm:$0xff]  }
 0x12d   : > { %5691 = vmatpush1.bf16.msra.mxu0 %v8443_v50  ;;  %5733 = vmatprep.subr.bf16.mxu1 %v8454_v54  ;;  %v8530_v50 = vld [vmem:[%s10142_s11 + $0x370] ss:$72 sps:$4 sm:$0xff]  }
 0x12e   : > { %5692 = vmatprep.subr.bf16.mxu0 %v8451_v52  ;;  %v8538_v52 = vld [vmem:[%s10142_s11 + $0x404] ss:$72 sps:$4 sm:$0xff]   ;;  %v8533_v54 = vld [vmem:[%s10142_s11 + $0xcf8] ss:$72 sps:$4 sm:$0xff]  }
 0x130   : > { %5734 = vmatpush1.bf16.msra.mxu1 %v8452_v56  ;;  %v8541_v56 = vld [vmem:[%s10142_s11 + $0xd8c] ss:$72 sps:$4 sm:$0xff]  }
 0x131   : > { %5693 = vmatpush1.bf16.msra.mxu0 %v8449_v55  ;;  %5735 = vmatprep.subr.bf16.mxu1 %v8460_v59  ;;  %v8536_v55 = vld [vmem:[%s10142_s11 + $0x400] ss:$72 sps:$4 sm:$0xff]  }
 0x132   : > { %5694 = vmatprep.subr.bf16.mxu0 %v8457_v58  ;;  %v8544_v58 = vld [vmem:[%s10142_s11 + $0x494] ss:$72 sps:$4 sm:$0xff]   ;;  %v8539_v59 = vld [vmem:[%s10142_s11 + $0xd88] ss:$72 sps:$4 sm:$0xff]  }
 0x134   : > { %5736 = vmatpush1.bf16.msra.mxu1 %v8458_v61  ;;  %v8547_v61 = vld [vmem:[%s10142_s11 + $0xe1c] ss:$72 sps:$4 sm:$0xff]  }
 0x135   : > { %5695 = vmatpush1.bf16.msra.mxu0 %v8455_v60  ;;  %5737 = vmatprep.subr.bf16.mxu1 %v8466_v63  ;;  %v8542_v60 = vld [vmem:[%s10142_s11 + $0x490] ss:$72 sps:$4 sm:$0xff]  }
 0x136   : > { %5696 = vmatprep.subr.bf16.mxu0 %v8463_v62  ;;  %v8550_v62 = vld [vmem:[%s10142_s11 + $0x524] ss:$72 sps:$4 sm:$0xff]   ;;  %v8545_v63 = vld [vmem:[%s10142_s11 + $0xe18] ss:$72 sps:$4 sm:$0xff]  }
 0x138   : > { %5738 = vmatpush1.bf16.msra.mxu1 %v8464_v1  ;;  %v8553_v1 = vld [vmem:[%s10142_s11 + $0xeac] ss:$72 sps:$4 sm:$0xff]  }
 0x139   : > { %5697 = vmatpush1.bf16.msra.mxu0 %v8461_v0  ;;  %5739 = vmatprep.subr.bf16.mxu1 %v8472_v3  ;;  %v8548_v0 = vld [vmem:[%s10142_s11 + $0x520] ss:$72 sps:$4 sm:$0xff]  }
 0x13a   : > { %5698 = vmatprep.subr.bf16.mxu0 %v8469_v2  ;;  %v8556_v2 = vld [vmem:[%s10142_s11 + $0x5b4] ss:$72 sps:$4 sm:$0xff]   ;;  %v8551_v3 = vld [vmem:[%s10142_s11 + $0xea8] ss:$72 sps:$4 sm:$0xff]  }
 0x13c   : > { %5740 = vmatpush1.bf16.msra.mxu1 %v8470_v5  ;;  %v8559_v5 = vld [vmem:[%s10142_s11 + $0xf3c] ss:$72 sps:$4 sm:$0xff]  }
 0x13d   : > { %5699 = vmatpush1.bf16.msra.mxu0 %v8467_v4  ;;  %5741 = vmatprep.subr.bf16.mxu1 %v8478_v7  ;;  %v8554_v4 = vld [vmem:[%s10142_s11 + $0x5b0] ss:$72 sps:$4 sm:$0xff]  }
 0x13e   : > { %5700 = vmatprep.subr.bf16.mxu0 %v8475_v6  ;;  %v8562_v6 = vld [vmem:[%s10142_s11 + $0x644] ss:$72 sps:$4 sm:$0xff]   ;;  %v8557_v7 = vld [vmem:[%s10142_s11 + $0xf38] ss:$72 sps:$4 sm:$0xff]  }
 0x140   : > { %5742 = vmatpush1.bf16.msra.mxu1 %v8476_v9  ;;  %v8565_v9 = vld [vmem:[%s10142_s11 + $0xfcc] ss:$72 sps:$4 sm:$0xff]  }
 0x141   : > { %5701 = vmatpush1.bf16.msra.mxu0 %v8473_v8  ;;  %5743 = vmatprep.subr.bf16.mxu1 %v8484_v11  ;;  %v8560_v8 = vld [vmem:[%s10142_s11 + $0x640] ss:$72 sps:$4 sm:$0xff]  }
 0x142   : > { %5702 = vmatprep.subr.bf16.mxu0 %v8481_v10  ;;  %v8568_v10 = vld [vmem:[%s10142_s11 + $0x6d4] ss:$72 sps:$4 sm:$0xff]   ;;  %v8563_v11 = vld [vmem:[%s10142_s11 + $0xfc8] ss:$72 sps:$4 sm:$0xff]  }
 0x144   : > { %5744 = vmatpush1.bf16.msra.mxu1 %v8482_v13  ;;  %v8571_v13 = vld [vmem:[%s10142_s11 + $0x105c] ss:$72 sps:$4 sm:$0xff]  }
 0x145   : > { %5703 = vmatpush1.bf16.msra.mxu0 %v8479_v12  ;;  %5745 = vmatprep.subr.bf16.mxu1 %v8490_v15  ;;  %v8566_v12 = vld [vmem:[%s10142_s11 + $0x6d0] ss:$72 sps:$4 sm:$0xff]  }
 0x146   : > { %5704 = vmatprep.subr.bf16.mxu0 %v8487_v14  ;;  %v8574_v14 = vld [vmem:[%s10142_s11 + $0x764] ss:$72 sps:$4 sm:$0xff]   ;;  %v8569_v15 = vld [vmem:[%s10142_s11 + $0x1058] ss:$72 sps:$4 sm:$0xff]  }
 0x148   : > { %5746 = vmatpush1.bf16.msra.mxu1 %v8488_v19  ;;  %v8577_v19 = vld [vmem:[%s10142_s11 + $0x10ec] ss:$72 sps:$4 sm:$0xff]  }
 0x149   : > { %5705 = vmatpush1.bf16.msra.mxu0 %v8485_v18  ;;  %5756 = vmatprep.subr.bf16.mxu1 %v8493_v21  ;;  %v8572_v18 = vld [vmem:[%s10142_s11 + $0x760] ss:$72 sps:$4 sm:$0xff]  }
 0x14a   : > { %5838 = vmatprep.subr.bf16.mxu0 %v8496_v22  ;;  %v8575_v21 = vld [vmem:[%s10142_s11 + $0x10e8] ss:$72 sps:$4 sm:$0xff]  }
 0x14b   : > { %5748 = vmatmul.mubr.bf16.vlgmr.msra.gmra.mrb[4].mxu1 %v10273_v16  ;;  %v8578_v22 = vld [vmem:[%s10142_s11 + $0x7f0] ss:$72 sps:$4 sm:$0xff]  }
 0x14c   : > { %5707 = vmatmul.mubr.bf16.vlgmr.msra.gmra.mrb[0].mxu0 %v10347_v23  ;;  %5757 = vmatpush1.bf16.msra.mxu1 %v8491_v24  ;;  %v8583_v24 = vld [vmem:[%s10142_s11 + $0x117c] ss:$72 sps:$4 sm:$0xff]  }
 0x14d   : > { %5839 = vmatpush1.bf16.msra.mxu0 %v8494_v25  ;;  %5758 = vmatprep.subr.bf16.mxu1 %v8499_v26  ;;  %v8586_v25 = vld [vmem:[%s10142_s11 + $0x884] ss:$72 sps:$4 sm:$0xff]   ;;  %v8581_v26 = vld [vmem:[%s10142_s11 + $0x1178] ss:$72 sps:$4 sm:$0xff]  }
 0x14e   : > { %5840 = vmatprep.subr.bf16.mxu0 %v8502_v27  ;;  %5788 = vmatprep.mubr.bf16.mxu1 %v10247_v57  ;;  %v8584_v27 = vld [vmem:[%s10142_s11 + $0x880] ss:$72 sps:$4 sm:$0xff]  }
 0x14f   : > { %5870 = vmatprep.mubr.bf16.mxu0 %v10242_v53 }
 0x150   : > { %5759 = vmatpush1.bf16.msra.mxu1 %v8497_v28  ;;  %v8589_v28 = vld [vmem:[%s10142_s11 + $0x120c] ss:$72 sps:$4 sm:$0xff]  }
 0x151   : > { %5841 = vmatpush1.bf16.msra.mxu0 %v8500_v29  ;;  %5760 = vmatprep.subr.bf16.mxu1 %v8505_v30  ;;  %v8592_v29 = vld [vmem:[%s10142_s11 + $0x914] ss:$72 sps:$4 sm:$0xff]   ;;  %v8587_v30 = vld [vmem:[%s10142_s11 + $0x1208] ss:$72 sps:$4 sm:$0xff]  }
 0x152   : > { %5842 = vmatprep.subr.bf16.mxu0 %v8508_v31  ;;  %v8590_v31 = vld [vmem:[%s10142_s11 + $0x910] ss:$72 sps:$4 sm:$0xff]  }
 0x154   : > { %5761 = vmatpush1.bf16.msra.mxu1 %v8503_v32  ;;  %v8595_v32 = vld [vmem:[%s10142_s11 + $0x129c] ss:$72 sps:$4 sm:$0xff]  }
 0x155   : > { %5843 = vmatpush1.bf16.msra.mxu0 %v8506_v33  ;;  %5762 = vmatprep.subr.bf16.mxu1 %v8511_v34  ;;  %v8598_v33 = vld [vmem:[%s10142_s11 + $0x9a4] ss:$72 sps:$4 sm:$0xff]   ;;  %v8593_v34 = vld [vmem:[%s10142_s11 + $0x1298] ss:$72 sps:$4 sm:$0xff]  }
 0x156   : > { %5844 = vmatprep.subr.bf16.mxu0 %v8514_v35  ;;  %v8596_v35 = vld [vmem:[%s10142_s11 + $0x9a0] ss:$72 sps:$4 sm:$0xff]  }
 0x158   : > { %5763 = vmatpush1.bf16.msra.mxu1 %v8509_v36  ;;  %v8601_v36 = vld [vmem:[%s10142_s11 + $0x132c] ss:$72 sps:$4 sm:$0xff]  }
 0x159   : > { %5845 = vmatpush1.bf16.msra.mxu0 %v8512_v37  ;;  %5764 = vmatprep.subr.bf16.mxu1 %v8517_v38  ;;  %v8604_v37 = vld [vmem:[%s10142_s11 + $0xa34] ss:$72 sps:$4 sm:$0xff]   ;;  %v8599_v38 = vld [vmem:[%s10142_s11 + $0x1328] ss:$72 sps:$4 sm:$0xff]  }
 0x15a   : > { %5846 = vmatprep.subr.bf16.mxu0 %v8520_v39  ;;  %v8602_v39 = vld [vmem:[%s10142_s11 + $0xa30] ss:$72 sps:$4 sm:$0xff]  }
 0x15c   : > { %5765 = vmatpush1.bf16.msra.mxu1 %v8515_v40  ;;  %v8607_v40 = vld [vmem:[%s10142_s11 + $0x13bc] ss:$72 sps:$4 sm:$0xff]  }
 0x15d   : > { %5847 = vmatpush1.bf16.msra.mxu0 %v8518_v42  ;;  %5766 = vmatprep.subr.bf16.mxu1 %v8523_v43  ;;  %v8610_v42 = vld [vmem:[%s10142_s11 + $0xac4] ss:$72 sps:$4 sm:$0xff]   ;;  %v8605_v43 = vld [vmem:[%s10142_s11 + $0x13b8] ss:$72 sps:$4 sm:$0xff]  }
 0x15e   : > { %5848 = vmatprep.subr.bf16.mxu0 %v8526_v44  ;;  %v8608_v44 = vld [vmem:[%s10142_s11 + $0xac0] ss:$72 sps:$4 sm:$0xff]  }
 0x160   : > { %5767 = vmatpush1.bf16.msra.mxu1 %v8521_v45  ;;  %v8613_v45 = vld [vmem:[%s10142_s11 + $0x144c] ss:$72 sps:$4 sm:$0xff]  }
 0x161   : > { %5849 = vmatpush1.bf16.msra.mxu0 %v8524_v46  ;;  %5768 = vmatprep.subr.bf16.mxu1 %v8529_v47  ;;  %v8616_v46 = vld [vmem:[%s10142_s11 + $0xb54] ss:$72 sps:$4 sm:$0xff]   ;;  %v8611_v47 = vld [vmem:[%s10142_s11 + $0x1448] ss:$72 sps:$4 sm:$0xff]  }
 0x162   : > { %5850 = vmatprep.subr.bf16.mxu0 %v8532_v48  ;;  %v8614_v48 = vld [vmem:[%s10142_s11 + $0xb50] ss:$72 sps:$4 sm:$0xff]  }
 0x164   : > { %5769 = vmatpush1.bf16.msra.mxu1 %v8527_v49  ;;  %v8619_v49 = vld [vmem:[%s10142_s11 + $0x14dc] ss:$72 sps:$4 sm:$0xff]  }
 0x165   : > { %5851 = vmatpush1.bf16.msra.mxu0 %v8530_v50  ;;  %5770 = vmatprep.subr.bf16.mxu1 %v8535_v51  ;;  %v8622_v50 = vld [vmem:[%s10142_s11 + $0xbe4] ss:$72 sps:$4 sm:$0xff]   ;;  %v8617_v51 = vld [vmem:[%s10142_s11 + $0x14d8] ss:$72 sps:$4 sm:$0xff]  }
 0x166   : > { %5852 = vmatprep.subr.bf16.mxu0 %v8538_v52  ;;  %v8620_v52 = vld [vmem:[%s10142_s11 + $0xbe0] ss:$72 sps:$4 sm:$0xff]  }
 0x168   : > { %5771 = vmatpush1.bf16.msra.mxu1 %v8533_v54  ;;  %v8625_v54 = vld [vmem:[%s10142_s11 + $0x156c] ss:$72 sps:$4 sm:$0xff]  }
 0x169   : > { %5853 = vmatpush1.bf16.msra.mxu0 %v8536_v55  ;;  %5772 = vmatprep.subr.bf16.mxu1 %v8541_v56  ;;  %v8628_v55 = vld [vmem:[%s10142_s11 + $0xc74] ss:$72 sps:$4 sm:$0xff]   ;;  %v8623_v56 = vld [vmem:[%s10142_s11 + $0x1568] ss:$72 sps:$4 sm:$0xff]  }
 0x16a   : > { %5854 = vmatprep.subr.bf16.mxu0 %v8544_v58  ;;  %v8626_v58 = vld [vmem:[%s10142_s11 + $0xc70] ss:$72 sps:$4 sm:$0xff]  }
 0x16c   : > { %5773 = vmatpush1.bf16.msra.mxu1 %v8539_v59  ;;  %v8631_v59 = vld [vmem:[%s10142_s11 + $0x15fc] ss:$72 sps:$4 sm:$0xff]  }
 0x16d   : > { %5855 = vmatpush1.bf16.msra.mxu0 %v8542_v60  ;;  %5774 = vmatprep.subr.bf16.mxu1 %v8547_v61  ;;  %v8634_v60 = vld [vmem:[%s10142_s11 + $0xd04] ss:$72 sps:$4 sm:$0xff]   ;;  %v8629_v61 = vld [vmem:[%s10142_s11 + $0x15f8] ss:$72 sps:$4 sm:$0xff]  }
 0x16e   : > { %5856 = vmatprep.subr.bf16.mxu0 %v8550_v62  ;;  %v8632_v62 = vld [vmem:[%s10142_s11 + $0xd00] ss:$72 sps:$4 sm:$0xff]  }
 0x170   : > { %5775 = vmatpush1.bf16.msra.mxu1 %v8545_v63  ;;  %v8637_v63 = vld [vmem:[%s10142_s11 + $0x168c] ss:$72 sps:$4 sm:$0xff]  }
 0x171   : > { %5857 = vmatpush1.bf16.msra.mxu0 %v8548_v0  ;;  %5776 = vmatprep.subr.bf16.mxu1 %v8553_v1  ;;  %v8640_v0 = vld [vmem:[%s10142_s11 + $0xd94] ss:$72 sps:$4 sm:$0xff]   ;;  %v8635_v1 = vld [vmem:[%s10142_s11 + $0x1688] ss:$72 sps:$4 sm:$0xff]  }
 0x172   : > { %5858 = vmatprep.subr.bf16.mxu0 %v8556_v2  ;;  %v8638_v2 = vld [vmem:[%s10142_s11 + $0xd90] ss:$72 sps:$4 sm:$0xff]  }
 0x174   : > { %5777 = vmatpush1.bf16.msra.mxu1 %v8551_v3  ;;  %v8643_v3 = vld [vmem:[%s10142_s11 + $0x171c] ss:$72 sps:$4 sm:$0xff]  }
 0x175   : > { %5859 = vmatpush1.bf16.msra.mxu0 %v8554_v4  ;;  %5778 = vmatprep.subr.bf16.mxu1 %v8559_v5  ;;  %v8646_v4 = vld [vmem:[%s10142_s11 + $0xe24] ss:$72 sps:$4 sm:$0xff]   ;;  %v8641_v5 = vld [vmem:[%s10142_s11 + $0x1718] ss:$72 sps:$4 sm:$0xff]  }
 0x176   : > { %5860 = vmatprep.subr.bf16.mxu0 %v8562_v6  ;;  %v8644_v6 = vld [vmem:[%s10142_s11 + $0xe20] ss:$72 sps:$4 sm:$0xff]  }
 0x178   : > { %5779 = vmatpush1.bf16.msra.mxu1 %v8557_v7  ;;  %v8649_v7 = vld [vmem:[%s10142_s11 + $0x17ac] ss:$72 sps:$4 sm:$0xff]  }
 0x179   : > { %5861 = vmatpush1.bf16.msra.mxu0 %v8560_v8  ;;  %5780 = vmatprep.subr.bf16.mxu1 %v8565_v9  ;;  %v8652_v8 = vld [vmem:[%s10142_s11 + $0xeb4] ss:$72 sps:$4 sm:$0xff]   ;;  %v8647_v9 = vld [vmem:[%s10142_s11 + $0x17a8] ss:$72 sps:$4 sm:$0xff]  }
 0x17a   : > { %5862 = vmatprep.subr.bf16.mxu0 %v8568_v10  ;;  %v8650_v10 = vld [vmem:[%s10142_s11 + $0xeb0] ss:$72 sps:$4 sm:$0xff]  }
 0x17c   : > { %5781 = vmatpush1.bf16.msra.mxu1 %v8563_v11  ;;  %v8655_v11 = vld [vmem:[%s10142_s11 + $0x183c] ss:$72 sps:$4 sm:$0xff]  }
 0x17d   : > { %5863 = vmatpush1.bf16.msra.mxu0 %v8566_v12  ;;  %5782 = vmatprep.subr.bf16.mxu1 %v8571_v13  ;;  %v8658_v12 = vld [vmem:[%s10142_s11 + $0xf44] ss:$72 sps:$4 sm:$0xff]   ;;  %v8653_v13 = vld [vmem:[%s10142_s11 + $0x1838] ss:$72 sps:$4 sm:$0xff]  }
 0x17e   : > { %5864 = vmatprep.subr.bf16.mxu0 %v8574_v14  ;;  %v8656_v14 = vld [vmem:[%s10142_s11 + $0xf40] ss:$72 sps:$4 sm:$0xff]  }
 0x180   : > { %5783 = vmatpush1.bf16.msra.mxu1 %v8569_v15  ;;  %v8661_v15 = vld [vmem:[%s10142_s11 + $0x18cc] ss:$72 sps:$4 sm:$0xff]  }
 0x181   : > { %5865 = vmatpush1.bf16.msra.mxu0 %v8572_v18  ;;  %5784 = vmatprep.subr.bf16.mxu1 %v8577_v19  ;;  %v8664_v18 = vld [vmem:[%s10142_s11 + $0xfd4] ss:$72 sps:$4 sm:$0xff]   ;;  %v8659_v19 = vld [vmem:[%s10142_s11 + $0x18c8] ss:$72 sps:$4 sm:$0xff]  }
 0x182   : > { %5866 = vmatprep.subr.bf16.mxu0 %v8580_v20  ;;  %v8662_v20 = vld [vmem:[%s10142_s11 + $0xfd0] ss:$72 sps:$4 sm:$0xff]  }
 0x184   : > { %5785 = vmatpush1.bf16.msra.mxu1 %v8575_v21  ;;  %v8667_v21 = vld [vmem:[%s10142_s11 + $0x195c] ss:$72 sps:$4 sm:$0xff]  }
 0x185   : > { %5867 = vmatpush1.bf16.msra.mxu0 %v8578_v22  ;;  %5786 = vmatprep.subr.bf16.mxu1 %v8583_v24  ;;  %v8670_v22 = vld [vmem:[%s10142_s11 + $0x1064] ss:$72 sps:$4 sm:$0xff]   ;;  %v8665_v24 = vld [vmem:[%s10142_s11 + $0x1958] ss:$72 sps:$4 sm:$0xff]  }
 0x186   : > { %5868 = vmatprep.subr.bf16.mxu0 %v8586_v25  ;;  %v8668_v25 = vld [vmem:[%s10142_s11 + $0x1060] ss:$72 sps:$4 sm:$0xff]  }
 0x188   : > { %5787 = vmatpush1.bf16.msra.mxu1 %v8581_v26  ;;  %v8673_v26 = vld [vmem:[%s10142_s11 + $0x19ec] ss:$72 sps:$4 sm:$0xff]  }
 0x189   : > { %5869 = vmatpush1.bf16.msra.mxu0 %v8584_v27  ;;  %5797 = vmatprep.subr.bf16.mxu1 %v8589_v28  ;;  %v8676_v27 = vld [vmem:[%s10142_s11 + $0x10f4] ss:$72 sps:$4 sm:$0xff]   ;;  %v8671_v28 = vld [vmem:[%s10142_s11 + $0x19e8] ss:$72 sps:$4 sm:$0xff]  }
 0x18a   : > { %5879 = vmatprep.subr.bf16.mxu0 %v8592_v29  ;;  %v8674_v29 = vld [vmem:[%s10142_s11 + $0x10f0] ss:$72 sps:$4 sm:$0xff]  }
 0x18b   : > { %5789 = vmatmul.mubr.bf16.vlgmr.msra.gmra.mrb[4].mxu1 %v10275_v17 }
 0x18c   : > { %5871 = vmatmul.mubr.bf16.vlgmr.msra.gmra.mrb[4].mxu0 %v10273_v16  ;;  %5798 = vmatpush1.bf16.msra.mxu1 %v8587_v30  ;;  %v8679_v30 = vld [vmem:[%s10142_s11 + $0x1a7c] ss:$72 sps:$4 sm:$0xff]  }
 0x18d   : > { %5880 = vmatpush1.bf16.msra.mxu0 %v8590_v31  ;;  %5799 = vmatprep.subr.bf16.mxu1 %v8595_v32  ;;  %v8682_v31 = vld [vmem:[%s10142_s11 + $0x1184] ss:$72 sps:$4 sm:$0xff]   ;;  %v8677_v32 = vld [vmem:[%s10142_s11 + $0x1a78] ss:$72 sps:$4 sm:$0xff]  }
 0x18e   : > { %5881 = vmatprep.subr.bf16.mxu0 %v8598_v33  ;;  %5829 = vmatprep.mubr.bf16.mxu1 %v10303_v41  ;;  %v8680_v33 = vld [vmem:[%s10142_s11 + $0x1180] ss:$72 sps:$4 sm:$0xff]  }
 0x18f   : > { %5911 = vmatprep.mubr.bf16.mxu0 %v10247_v57 }
 0x190   : > { %5800 = vmatpush1.bf16.msra.mxu1 %v8593_v34  ;;  %v8685_v34 = vld [vmem:[%s10142_s11 + $0x1214] ss:$72 sps:$4 sm:$0xff]  }
 0x191   : > { %5882 = vmatpush1.bf16.msra.mxu0 %v8596_v35  ;;  %5801 = vmatprep.subr.bf16.mxu1 %v8601_v36  ;;  %v8688_v35 = vld [vmem:[%s10142_s11 + $0x1c] ss:$72 sps:$4 sm:$0xff]   ;;  %v8683_v36 = vld [vmem:[%s10142_s11 + $0x1210] ss:$72 sps:$4 sm:$0xff]  }
 0x192   : > { %5883 = vmatprep.subr.bf16.mxu0 %v8604_v37  ;;  %v8686_v37 = vld [vmem:[%s10142_s11 + $0x18] ss:$72 sps:$4 sm:$0xff]  }
 0x194   : > { %5802 = vmatpush1.bf16.msra.mxu1 %v8599_v38  ;;  %v8691_v38 = vld [vmem:[%s10142_s11 + $0x12a4] ss:$72 sps:$4 sm:$0xff]  }
 0x195   : > { %5884 = vmatpush1.bf16.msra.mxu0 %v8602_v39  ;;  %5803 = vmatprep.subr.bf16.mxu1 %v8607_v40  ;;  %v8694_v39 = vld [vmem:[%s10142_s11 + $0xac] ss:$72 sps:$4 sm:$0xff]   ;;  %v8689_v40 = vld [vmem:[%s10142_s11 + $0x12a0] ss:$72 sps:$4 sm:$0xff]  }
 0x196   : > { %5885 = vmatprep.subr.bf16.mxu0 %v8610_v42  ;;  %v8692_v42 = vld [vmem:[%s10142_s11 + $0xa8] ss:$72 sps:$4 sm:$0xff]  }
 0x198   : > { %5804 = vmatpush1.bf16.msra.mxu1 %v8605_v43  ;;  %v8697_v43 = vld [vmem:[%s10142_s11 + $0x1334] ss:$72 sps:$4 sm:$0xff]  }
 0x199   : > { %5886 = vmatpush1.bf16.msra.mxu0 %v8608_v44  ;;  %5805 = vmatprep.subr.bf16.mxu1 %v8613_v45  ;;  %v8700_v44 = vld [vmem:[%s10142_s11 + $0x13c] ss:$72 sps:$4 sm:$0xff]   ;;  %v8695_v45 = vld [vmem:[%s10142_s11 + $0x1330] ss:$72 sps:$4 sm:$0xff]  }
 0x19a   : > { %5887 = vmatprep.subr.bf16.mxu0 %v8616_v46  ;;  %v8698_v46 = vld [vmem:[%s10142_s11 + $0x138] ss:$72 sps:$4 sm:$0xff]  }
 0x19c   : > { %5806 = vmatpush1.bf16.msra.mxu1 %v8611_v47  ;;  %v8703_v47 = vld [vmem:[%s10142_s11 + $0x13c4] ss:$72 sps:$4 sm:$0xff]  }
 0x19d   : > { %5888 = vmatpush1.bf16.msra.mxu0 %v8614_v48  ;;  %5807 = vmatprep.subr.bf16.mxu1 %v8619_v49  ;;  %v8706_v48 = vld [vmem:[%s10142_s11 + $0x1cc] ss:$72 sps:$4 sm:$0xff]   ;;  %v8701_v49 = vld [vmem:[%s10142_s11 + $0x13c0] ss:$72 sps:$4 sm:$0xff]  }
 0x19e   : > { %5889 = vmatprep.subr.bf16.mxu0 %v8622_v50  ;;  %v8704_v50 = vld [vmem:[%s10142_s11 + $0x1c8] ss:$72 sps:$4 sm:$0xff]  }
 0x1a0   : > { %5808 = vmatpush1.bf16.msra.mxu1 %v8617_v51  ;;  %v8709_v51 = vld [vmem:[%s10142_s11 + $0x1454] ss:$72 sps:$4 sm:$0xff]  }
 0x1a1   : > { %5890 = vmatpush1.bf16.msra.mxu0 %v8620_v52  ;;  %5809 = vmatprep.subr.bf16.mxu1 %v8625_v54  ;;  %v8712_v52 = vld [vmem:[%s10142_s11 + $0x25c] ss:$72 sps:$4 sm:$0xff]   ;;  %v8707_v54 = vld [vmem:[%s10142_s11 + $0x1450] ss:$72 sps:$4 sm:$0xff]  }
 0x1a2   : > { %5891 = vmatprep.subr.bf16.mxu0 %v8628_v55  ;;  %v8710_v55 = vld [vmem:[%s10142_s11 + $0x258] ss:$72 sps:$4 sm:$0xff]  }
 0x1a4   : > { %5810 = vmatpush1.bf16.msra.mxu1 %v8623_v56  ;;  %v8715_v56 = vld [vmem:[%s10142_s11 + $0x14e4] ss:$72 sps:$4 sm:$0xff]  }
 0x1a5   : > { %5892 = vmatpush1.bf16.msra.mxu0 %v8626_v58  ;;  %5811 = vmatprep.subr.bf16.mxu1 %v8631_v59  ;;  %v8718_v58 = vld [vmem:[%s10142_s11 + $0x2ec] ss:$72 sps:$4 sm:$0xff]   ;;  %v8713_v59 = vld [vmem:[%s10142_s11 + $0x14e0] ss:$72 sps:$4 sm:$0xff]  }
 0x1a6   : > { %5893 = vmatprep.subr.bf16.mxu0 %v8634_v60  ;;  %v8716_v60 = vld [vmem:[%s10142_s11 + $0x2e8] ss:$72 sps:$4 sm:$0xff]  }
 0x1a8   : > { %5812 = vmatpush1.bf16.msra.mxu1 %v8629_v61  ;;  %v8721_v61 = vld [vmem:[%s10142_s11 + $0x1574] ss:$72 sps:$4 sm:$0xff]  }
 0x1a9   : > { %5894 = vmatpush1.bf16.msra.mxu0 %v8632_v62  ;;  %5813 = vmatprep.subr.bf16.mxu1 %v8637_v63  ;;  %v8724_v62 = vld [vmem:[%s10142_s11 + $0x37c] ss:$72 sps:$4 sm:$0xff]  }
 0x1aa   : > { %5895 = vmatprep.subr.bf16.mxu0 %v8640_v0 }
 0x1ac   : > { %5814 = vmatpush1.bf16.msra.mxu1 %v8635_v1  ;;  %v8719_v1 = vld [vmem:[%s10142_s11 + $0x1570] ss:$72 sps:$4 sm:$0xff]  }
 0x1ad   : > { %5896 = vmatpush1.bf16.msra.mxu0 %v8638_v2  ;;  %5815 = vmatprep.subr.bf16.mxu1 %v8643_v3  ;;  %v8722_v2 = vld [vmem:[%s10142_s11 + $0x378] ss:$72 sps:$4 sm:$0xff]  }
 0x1ae   : > { %5897 = vmatprep.subr.bf16.mxu0 %v8646_v4  ;;  %v8727_v4 = vld [vmem:[%s10142_s11 + $0x1604] ss:$72 sps:$4 sm:$0xff]  }
 0x1b0   : > { %5816 = vmatpush1.bf16.msra.mxu1 %v8641_v5  ;;  %v8730_v5 = vld [vmem:[%s10142_s11 + $0x40c] ss:$72 sps:$4 sm:$0xff]  }
 0x1b1   : > { %5898 = vmatpush1.bf16.msra.mxu0 %v8644_v6  ;;  %5817 = vmatprep.subr.bf16.mxu1 %v8649_v7  ;;  %v8725_v7 = vld [vmem:[%s10142_s11 + $0x1600] ss:$72 sps:$4 sm:$0xff]  }
 0x1b2   : > { %5899 = vmatprep.subr.bf16.mxu0 %v8652_v8  ;;  %v8728_v8 = vld [vmem:[%s10142_s11 + $0x408] ss:$72 sps:$4 sm:$0xff]  }
 0x1b4   : > { %5818 = vmatpush1.bf16.msra.mxu1 %v8647_v9  ;;  %v8733_v9 = vld [vmem:[%s10142_s11 + $0x1694] ss:$72 sps:$4 sm:$0xff]  }
 0x1b5   : > { %5900 = vmatpush1.bf16.msra.mxu0 %v8650_v10  ;;  %5819 = vmatprep.subr.bf16.mxu1 %v8655_v11  ;;  %v8736_v10 = vld [vmem:[%s10142_s11 + $0x49c] ss:$72 sps:$4 sm:$0xff]   ;;  %v8731_v11 = vld [vmem:[%s10142_s11 + $0x1690] ss:$72 sps:$4 sm:$0xff]  }
 0x1b6   : > { %5901 = vmatprep.subr.bf16.mxu0 %v8658_v12  ;;  %v8734_v12 = vld [vmem:[%s10142_s11 + $0x498] ss:$72 sps:$4 sm:$0xff]  }
 0x1b8   : > { %5820 = vmatpush1.bf16.msra.mxu1 %v8653_v13  ;;  %v8739_v13 = vld [vmem:[%s10142_s11 + $0x1724] ss:$72 sps:$4 sm:$0xff]  }
 0x1b9   : > { %5902 = vmatpush1.bf16.msra.mxu0 %v8656_v14  ;;  %5821 = vmatprep.subr.bf16.mxu1 %v8661_v15  ;;  %v8742_v14 = vld [vmem:[%s10142_s11 + $0x52c] ss:$72 sps:$4 sm:$0xff]   ;;  %v8737_v15 = vld [vmem:[%s10142_s11 + $0x1720] ss:$72 sps:$4 sm:$0xff]  }
 0x1ba   : > { %5903 = vmatprep.subr.bf16.mxu0 %v8664_v18  ;;  %v8740_v18 = vld [vmem:[%s10142_s11 + $0x528] ss:$72 sps:$4 sm:$0xff]  }
 0x1bc   : > { %5822 = vmatpush1.bf16.msra.mxu1 %v8659_v19  ;;  %v8745_v19 = vld [vmem:[%s10142_s11 + $0x17b4] ss:$72 sps:$4 sm:$0xff]  }
 0x1bd   : > { %5904 = vmatpush1.bf16.msra.mxu0 %v8662_v20  ;;  %5823 = vmatprep.subr.bf16.mxu1 %v8667_v21  ;;  %v8748_v20 = vld [vmem:[%s10142_s11 + $0x5bc] ss:$72 sps:$4 sm:$0xff]   ;;  %v8743_v21 = vld [vmem:[%s10142_s11 + $0x17b0] ss:$72 sps:$4 sm:$0xff]  }
 0x1be   : > { %5905 = vmatprep.subr.bf16.mxu0 %v8670_v22  ;;  %v8746_v22 = vld [vmem:[%s10142_s11 + $0x5b8] ss:$72 sps:$4 sm:$0xff]  }
 0x1c0   : > { %5824 = vmatpush1.bf16.msra.mxu1 %v8665_v24  ;;  %v8751_v24 = vld [vmem:[%s10142_s11 + $0x1844] ss:$72 sps:$4 sm:$0xff]  }
 0x1c1   : > { %5906 = vmatpush1.bf16.msra.mxu0 %v8668_v25  ;;  %5825 = vmatprep.subr.bf16.mxu1 %v8673_v26  ;;  %v8754_v25 = vld [vmem:[%s10142_s11 + $0x64c] ss:$72 sps:$4 sm:$0xff]   ;;  %v8749_v26 = vld [vmem:[%s10142_s11 + $0x1840] ss:$72 sps:$4 sm:$0xff]  }
 0x1c2   : > { %5907 = vmatprep.subr.bf16.mxu0 %v8676_v27  ;;  %v8752_v27 = vld [vmem:[%s10142_s11 + $0x648] ss:$72 sps:$4 sm:$0xff]  }
 0x1c4   : > { %5826 = vmatpush1.bf16.msra.mxu1 %v8671_v28  ;;  %v8757_v28 = vld [vmem:[%s10142_s11 + $0x18d4] ss:$72 sps:$4 sm:$0xff]  }
 0x1c5   : > { %5908 = vmatpush1.bf16.msra.mxu0 %v8674_v29  ;;  %5827 = vmatprep.subr.bf16.mxu1 %v8679_v30  ;;  %v8760_v29 = vld [vmem:[%s10142_s11 + $0x6dc] ss:$72 sps:$4 sm:$0xff]   ;;  %v8755_v30 = vld [vmem:[%s10142_s11 + $0x18d0] ss:$72 sps:$4 sm:$0xff]  }
 0x1c6   : > { %5909 = vmatprep.subr.bf16.mxu0 %v8682_v31  ;;  %v8758_v31 = vld [vmem:[%s10142_s11 + $0x6d8] ss:$72 sps:$4 sm:$0xff]  }
 0x1c8   : > { %5828 = vmatpush1.bf16.msra.mxu1 %v8677_v32  ;;  %v8763_v32 = vld [vmem:[%s10142_s11 + $0x1964] ss:$72 sps:$4 sm:$0xff]  }
 0x1c9   : > { %5910 = vmatpush1.bf16.msra.mxu0 %v8680_v33  ;;  %5961 = vmatprep.subr.bf16.mxu1 %v8688_v35  ;;  %v8766_v33 = vld [vmem:[%s10142_s11 + $0x76c] ss:$72 sps:$4 sm:$0xff]   ;;  %v8764_v35 = vld [vmem:[%s10142_s11 + $0x768] ss:$72 sps:$4 sm:$0xff]  }
 0x1ca   : > { %5920 = vmatprep.subr.bf16.mxu0 %v8685_v34  ;;  %v8761_v34 = vld [vmem:[%s10142_s11 + $0x1960] ss:$72 sps:$4 sm:$0xff]  }
 0x1cb   : > { %5830 = vmatmul.mubr.bf16.vlgmr.msra.gmra.mrb[4].mxu1 %v10347_v23 }
 0x1cc   : > { %5912 = vmatmul.mubr.bf16.vlgmr.msra.gmra.mrb[4].mxu0 %v10275_v17  ;;  %5962 = vmatpush1.bf16.msra.mxu1 %v8686_v37  ;;  %v8772_v37 = vld [vmem:[%s10142_s11 + $0x7fc] ss:$72 sps:$4 sm:$0xff]  }
 0x1cd   : > { %5921 = vmatpush1.bf16.msra.mxu0 %v8683_v36  ;;  %5963 = vmatprep.subr.bf16.mxu1 %v8694_v39  ;;  %v8769_v36 = vld [vmem:[%s10142_s11 + $0x19f4] ss:$72 sps:$4 sm:$0xff]   ;;  %v8770_v39 = vld [vmem:[%s10142_s11 + $0x7f8] ss:$72 sps:$4 sm:$0xff]  }
 0x1ce   : > { %5922 = vmatprep.subr.bf16.mxu0 %v8691_v38  ;;  %5952 = vmatprep.mubr.bf16.mxu0 %v10303_v41  ;;  %v8767_v38 = vld [vmem:[%s10142_s11 + $0x19f0] ss:$72 sps:$4 sm:$0xff]  }
 0x1cf   : > { %5993 = vmatprep.mubr.bf16.mxu1 %v10242_v53 }
 0x1d0   : > { %5964 = vmatpush1.bf16.msra.mxu1 %v8692_v42  ;;  %v8778_v42 = vld [vmem:[%s10142_s11 + $0x88c] ss:$72 sps:$4 sm:$0xff]  }
 0x1d1   : > { %5923 = vmatpush1.bf16.msra.mxu0 %v8689_v40  ;;  %5965 = vmatprep.subr.bf16.mxu1 %v8700_v44  ;;  %v8775_v40 = vld [vmem:[%s10142_s11 + $0x1a84] ss:$72 sps:$4 sm:$0xff]   ;;  %v8776_v44 = vld [vmem:[%s10142_s11 + $0x888] ss:$72 sps:$4 sm:$0xff]  }
 0x1d2   : > { %5924 = vmatprep.subr.bf16.mxu0 %v8697_v43  ;;  %v8773_v43 = vld [vmem:[%s10142_s11 + $0x1a80] ss:$72 sps:$4 sm:$0xff]  }
 0x1d4   : > { %5966 = vmatpush1.bf16.msra.mxu1 %v8698_v46  ;;  %v8784_v46 = vld [vmem:[%s10142_s11 + $0x24] ss:$72 sps:$4 sm:$0xff]  }
 0x1d5   : > { %5925 = vmatpush1.bf16.msra.mxu0 %v8695_v45  ;;  %5967 = vmatprep.subr.bf16.mxu1 %v8706_v48  ;;  %v8781_v45 = vld [vmem:[%s10142_s11 + $0x91c] ss:$72 sps:$4 sm:$0xff]   ;;  %v8782_v48 = vld [vmem:[%s10142_s11 + $0x20] ss:$72 sps:$4 sm:$0xff]  }
 0x1d6   : > { %5926 = vmatprep.subr.bf16.mxu0 %v8703_v47  ;;  %v8779_v47 = vld [vmem:[%s10142_s11 + $0x918] ss:$72 sps:$4 sm:$0xff]  }
 0x1d8   : > { %5968 = vmatpush1.bf16.msra.mxu1 %v8704_v50  ;;  %v8790_v50 = vld [vmem:[%s10142_s11 + $0xb4] ss:$72 sps:$4 sm:$0xff]  }
 0x1d9   : > { %5927 = vmatpush1.bf16.msra.mxu0 %v8701_v49  ;;  %5969 = vmatprep.subr.bf16.mxu1 %v8712_v52  ;;  %v8787_v49 = vld [vmem:[%s10142_s11 + $0x9ac] ss:$72 sps:$4 sm:$0xff]   ;;  %v8788_v52 = vld [vmem:[%s10142_s11 + $0xb0] ss:$72 sps:$4 sm:$0xff]  }
 0x1da   : > { %5928 = vmatprep.subr.bf16.mxu0 %v8709_v51  ;;  %v8785_v51 = vld [vmem:[%s10142_s11 + $0x9a8] ss:$72 sps:$4 sm:$0xff]  }
 0x1dc   : > { %5970 = vmatpush1.bf16.msra.mxu1 %v8710_v55  ;;  %v8796_v55 = vld [vmem:[%s10142_s11 + $0x144] ss:$72 sps:$4 sm:$0xff]  }
 0x1dd   : > { %5929 = vmatpush1.bf16.msra.mxu0 %v8707_v54  ;;  %5971 = vmatprep.subr.bf16.mxu1 %v8718_v58  ;;  %v8793_v54 = vld [vmem:[%s10142_s11 + $0xa3c] ss:$72 sps:$4 sm:$0xff]   ;;  %v8794_v58 = vld [vmem:[%s10142_s11 + $0x140] ss:$72 sps:$4 sm:$0xff]  }
 0x1de   : > { %5930 = vmatprep.subr.bf16.mxu0 %v8715_v56  ;;  %v10513_v63 = vpop.f32.mrb[0].mxu1  ;;  %v8791_v56 = vld [vmem:[%s10142_s11 + $0xa38] ss:$72 sps:$4 sm:$0xff]  }
 0x1df   : > { %v10515_v0 = vpop.f32.mrb[1].mxu1 }
 0x1e0   : > { %5972 = vmatpush1.bf16.msra.mxu1 %v8716_v60  ;;  %v5630_v3 = vpop.f32.mrb[2].mxu1  ;;  %v8802_v60 = vld [vmem:[%s10142_s11 + $0x1d4] ss:$72 sps:$4 sm:$0xff]  }
 0x1e1   : > { %5931 = vmatpush1.bf16.msra.mxu0 %v8713_v59  ;;  %5973 = vmatprep.subr.bf16.mxu1 %v8724_v62  ;;  %v5631_v6 = vpop.f32.mrb[3].mxu1  ;;  %v8799_v59 = vld [vmem:[%s10142_s11 + $0xacc] ss:$72 sps:$4 sm:$0xff]   ;;  %v8800_v62 = vld [vmem:[%s10142_s11 + $0x1d0] ss:$72 sps:$4 sm:$0xff]  }
 0x1e2   : > { %5932 = vmatprep.subr.bf16.mxu0 %v8721_v61  ;;  %v8797_v61 = vld [vmem:[%s10142_s11 + $0xac8] ss:$72 sps:$4 sm:$0xff]   ;;  %v8803_v3 = vld [vmem:[%s10142_s11 + $0xb58] ss:$72 sps:$4 sm:$0xff]   ;;  %v8814_v6 = vld [vmem:[%s10142_s11 + $0x2f4] ss:$72 sps:$4 sm:$0xff]  }
 0x1e4   : > { %5974 = vmatpush1.bf16.msra.mxu1 %v8722_v2  ;;  %v8808_v2 = vld [vmem:[%s10142_s11 + $0x264] ss:$72 sps:$4 sm:$0xff]  }
 0x1e5   : > { %5933 = vmatpush1.bf16.msra.mxu0 %v8719_v1  ;;  %5975 = vmatprep.subr.bf16.mxu1 %v8730_v5  ;;  %v8805_v1 = vld [vmem:[%s10142_s11 + $0xb5c] ss:$72 sps:$4 sm:$0xff]   ;;  %v8811_v5 = vld [vmem:[%s10142_s11 + $0xbec] ss:$72 sps:$4 sm:$0xff]  }
 0x1e6   : > { %5934 = vmatprep.subr.bf16.mxu0 %v8727_v4  ;;  %v8806_v4 = vld [vmem:[%s10142_s11 + $0x260] ss:$72 sps:$4 sm:$0xff]  }
 0x1e8   : > { %5976 = vmatpush1.bf16.msra.mxu1 %v8728_v8  ;;  %v8812_v8 = vld [vmem:[%s10142_s11 + $0x2f0] ss:$72 sps:$4 sm:$0xff]  }
 0x1e9   : > { %5935 = vmatpush1.bf16.msra.mxu0 %v8725_v7  ;;  %5977 = vmatprep.subr.bf16.mxu1 %v8736_v10  ;;  %v8809_v7 = vld [vmem:[%s10142_s11 + $0xbe8] ss:$72 sps:$4 sm:$0xff]   ;;  %v8820_v10 = vld [vmem:[%s10142_s11 + $0x384] ss:$72 sps:$4 sm:$0xff]  }
 0x1ea   : > { %5936 = vmatprep.subr.bf16.mxu0 %v8733_v9  ;;  %v8817_v9 = vld [vmem:[%s10142_s11 + $0xc7c] ss:$72 sps:$4 sm:$0xff]  }
 0x1ec   : > { %5978 = vmatpush1.bf16.msra.mxu1 %v8734_v12  ;;  %v8815_v12 = vld [vmem:[%s10142_s11 + $0xc78] ss:$72 sps:$4 sm:$0xff]  }
 0x1ed   : > { %5937 = vmatpush1.bf16.msra.mxu0 %v8731_v11  ;;  %5979 = vmatprep.subr.bf16.mxu1 %v8742_v14 }
 0x1ee   : > { %5938 = vmatprep.subr.bf16.mxu0 %v8739_v13  ;;  %v8818_v13 = vld [vmem:[%s10142_s11 + $0x380] ss:$72 sps:$4 sm:$0xff]  }
 0x1f0   : > { %5980 = vmatpush1.bf16.msra.mxu1 %v8740_v18 }
 0x1f1   : > { %5939 = vmatpush1.bf16.msra.mxu0 %v8737_v15  ;;  %5981 = vmatprep.subr.bf16.mxu1 %v8748_v20 }
 0x1f2   : > { %5940 = vmatprep.subr.bf16.mxu0 %v8745_v19 }
 0x1f4   : > { %5982 = vmatpush1.bf16.msra.mxu1 %v8746_v22  ;;  %v8826_v22 = vld [vmem:[%s10142_s11 + $0x414] ss:$72 sps:$4 sm:$0xff]  }
 0x1f5   : > { %5941 = vmatpush1.bf16.msra.mxu0 %v8743_v21  ;;  %5983 = vmatprep.subr.bf16.mxu1 %v8754_v25  ;;  %v8823_v21 = vld [vmem:[%s10142_s11 + $0xd0c] ss:$72 sps:$4 sm:$0xff]  }
 0x1f6   : > { %5942 = vmatprep.subr.bf16.mxu0 %v8751_v24  ;;  %v8824_v24 = vld [vmem:[%s10142_s11 + $0x410] ss:$72 sps:$4 sm:$0xff]   ;;  %v8832_v25 = vld [vmem:[%s10142_s11 + $0x4a4] ss:$72 sps:$4 sm:$0xff]  }
 0x1f8   : > { %5984 = vmatpush1.bf16.msra.mxu1 %v8752_v27  ;;  %v8830_v27 = vld [vmem:[%s10142_s11 + $0x4a0] ss:$72 sps:$4 sm:$0xff]  }
 0x1f9   : > { %5943 = vmatpush1.bf16.msra.mxu0 %v8749_v26  ;;  %5985 = vmatprep.subr.bf16.mxu1 %v8760_v29  ;;  %v8827_v26 = vld [vmem:[%s10142_s11 + $0xd98] ss:$72 sps:$4 sm:$0xff]   ;;  %v8838_v29 = vld [vmem:[%s10142_s11 + $0x534] ss:$72 sps:$4 sm:$0xff]  }
 0x1fa   : > { %5944 = vmatprep.subr.bf16.mxu0 %v8757_v28  ;;  %v8835_v28 = vld [vmem:[%s10142_s11 + $0xe2c] ss:$72 sps:$4 sm:$0xff]  }
 0x1fc   : > { %5986 = vmatpush1.bf16.msra.mxu1 %v8758_v31  ;;  %v8836_v31 = vld [vmem:[%s10142_s11 + $0x530] ss:$72 sps:$4 sm:$0xff]  }
 0x1fd   : > { %5945 = vmatpush1.bf16.msra.mxu0 %v8755_v30  ;;  %5987 = vmatprep.subr.bf16.mxu1 %v8766_v33  ;;  %v8833_v30 = vld [vmem:[%s10142_s11 + $0xe28] ss:$72 sps:$4 sm:$0xff]   ;;  %v8844_v33 = vld [vmem:[%s10142_s11 + $0x5c4] ss:$72 sps:$4 sm:$0xff]  }
 0x1fe   : > { %5946 = vmatprep.subr.bf16.mxu0 %v8763_v32  ;;  %v8841_v32 = vld [vmem:[%s10142_s11 + $0xebc] ss:$72 sps:$4 sm:$0xff]  }
 0x200   : > { %5988 = vmatpush1.bf16.msra.mxu1 %v8764_v35  ;;  %v8842_v35 = vld [vmem:[%s10142_s11 + $0x5c0] ss:$72 sps:$4 sm:$0xff]  }
 0x201   : > { %5947 = vmatpush1.bf16.msra.mxu0 %v8761_v34  ;;  %5989 = vmatprep.subr.bf16.mxu1 %v8772_v37  ;;  %v8839_v34 = vld [vmem:[%s10142_s11 + $0xeb8] ss:$72 sps:$4 sm:$0xff]   ;;  %v8850_v37 = vld [vmem:[%s10142_s11 + $0x654] ss:$72 sps:$4 sm:$0xff]  }
 0x202   : > { %5948 = vmatprep.subr.bf16.mxu0 %v8769_v36  ;;  %v8847_v36 = vld [vmem:[%s10142_s11 + $0xf4c] ss:$72 sps:$4 sm:$0xff]  }
 0x204   : > { %5990 = vmatpush1.bf16.msra.mxu1 %v8770_v39  ;;  %v8848_v39 = vld [vmem:[%s10142_s11 + $0x650] ss:$72 sps:$4 sm:$0xff]  }
 0x205   : > { %5949 = vmatpush1.bf16.msra.mxu0 %v8767_v38  ;;  %5991 = vmatprep.subr.bf16.mxu1 %v8778_v42  ;;  %v8845_v38 = vld [vmem:[%s10142_s11 + $0xf48] ss:$72 sps:$4 sm:$0xff]   ;;  %v8856_v42 = vld [vmem:[%s10142_s11 + $0x6e4] ss:$72 sps:$4 sm:$0xff]  }
 0x206   : > { %5950 = vmatprep.subr.bf16.mxu0 %v8775_v40  ;;  %v8853_v40 = vld [vmem:[%s10142_s11 + $0xfdc] ss:$72 sps:$4 sm:$0xff]  }
 0x208   : > { %5992 = vmatpush1.bf16.msra.mxu1 %v8776_v44  ;;  %v8854_v44 = vld [vmem:[%s10142_s11 + $0x6e0] ss:$72 sps:$4 sm:$0xff]  }
 0x209   : > { %5951 = vmatpush1.bf16.msra.mxu0 %v8773_v43  ;;  %6002 = vmatprep.subr.bf16.mxu1 %v8781_v45  ;;  %v8851_v43 = vld [vmem:[%s10142_s11 + $0xfd8] ss:$72 sps:$4 sm:$0xff]   ;;  %v8859_v45 = vld [vmem:[%s10142_s11 + $0x106c] ss:$72 sps:$4 sm:$0xff]  }
 0x20a   : > { %6084 = vmatprep.subr.bf16.mxu0 %v8784_v46  ;;  %v8862_v46 = vld [vmem:[%s10142_s11 + $0x774] ss:$72 sps:$4 sm:$0xff]  }
 0x20b   : > { %5994 = vmatmul.mubr.bf16.vlgmr.msra.gmra.mrb[8].mxu1 %v10273_v16 }
 0x20c   : > { %5953 = vmatmul.mubr.bf16.vlgmr.msra.gmra.mrb[4].mxu0 %v10347_v23  ;;  %6003 = vmatpush1.bf16.msra.mxu1 %v8779_v47  ;;  %v8857_v47 = vld [vmem:[%s10142_s11 + $0x1068] ss:$72 sps:$4 sm:$0xff]  }
 0x20d   : > { %6085 = vmatpush1.bf16.msra.mxu0 %v8782_v48  ;;  %6004 = vmatprep.subr.bf16.mxu1 %v8787_v49  ;;  %v8860_v48 = vld [vmem:[%s10142_s11 + $0x770] ss:$72 sps:$4 sm:$0xff]   ;;  %v8865_v49 = vld [vmem:[%s10142_s11 + $0x10fc] ss:$72 sps:$4 sm:$0xff]  }
 0x20e   : > { %6086 = vmatprep.subr.bf16.mxu0 %v8790_v50  ;;  %6034 = vmatprep.mubr.bf16.mxu1 %v10247_v57  ;;  %v8868_v50 = vld [vmem:[%s10142_s11 + $0x804] ss:$72 sps:$4 sm:$0xff]  }
 0x20f   : > { %6116 = vmatprep.mubr.bf16.mxu0 %v10242_v53 }
 0x210   : > { %6005 = vmatpush1.bf16.msra.mxu1 %v8785_v51  ;;  %v8863_v51 = vld [vmem:[%s10142_s11 + $0x10f8] ss:$72 sps:$4 sm:$0xff]  }
 0x211   : > { %6087 = vmatpush1.bf16.msra.mxu0 %v8788_v52  ;;  %6006 = vmatprep.subr.bf16.mxu1 %v8793_v54  ;;  %v8866_v52 = vld [vmem:[%s10142_s11 + $0x800] ss:$72 sps:$4 sm:$0xff]   ;;  %v8871_v54 = vld [vmem:[%s10142_s11 + $0x118c] ss:$72 sps:$4 sm:$0xff]  }
 0x212   : > { %6088 = vmatprep.subr.bf16.mxu0 %v8796_v55  ;;  %v8874_v55 = vld [vmem:[%s10142_s11 + $0x894] ss:$72 sps:$4 sm:$0xff]  }
 0x214   : > { %6007 = vmatpush1.bf16.msra.mxu1 %v8791_v56  ;;  %v8869_v56 = vld [vmem:[%s10142_s11 + $0x1188] ss:$72 sps:$4 sm:$0xff]  }
 0x215   : > { %6089 = vmatpush1.bf16.msra.mxu0 %v8794_v58  ;;  %6008 = vmatprep.subr.bf16.mxu1 %v8799_v59  ;;  %v8872_v58 = vld [vmem:[%s10142_s11 + $0x890] ss:$72 sps:$4 sm:$0xff]   ;;  %v8877_v59 = vld [vmem:[%s10142_s11 + $0x121c] ss:$72 sps:$4 sm:$0xff]  }
 0x216   : > { %6090 = vmatprep.subr.bf16.mxu0 %v8802_v60  ;;  %v8880_v60 = vld [vmem:[%s10142_s11 + $0x924] ss:$72 sps:$4 sm:$0xff]  }
 0x218   : > { %6009 = vmatpush1.bf16.msra.mxu1 %v8797_v61  ;;  %v8875_v61 = vld [vmem:[%s10142_s11 + $0x1218] ss:$72 sps:$4 sm:$0xff]  }
 0x219   : > { %6091 = vmatpush1.bf16.msra.mxu0 %v8800_v62  ;;  %6010 = vmatprep.subr.bf16.mxu1 %v8805_v1  ;;  %v8878_v62 = vld [vmem:[%s10142_s11 + $0x920] ss:$72 sps:$4 sm:$0xff]   ;;  %v8883_v1 = vld [vmem:[%s10142_s11 + $0x12ac] ss:$72 sps:$4 sm:$0xff]  }
 0x21a   : > { %6092 = vmatprep.subr.bf16.mxu0 %v8808_v2  ;;  %v8886_v2 = vld [vmem:[%s10142_s11 + $0x9b4] ss:$72 sps:$4 sm:$0xff]  }
 0x21c   : > { %6011 = vmatpush1.bf16.msra.mxu1 %v8803_v3  ;;  %v8881_v3 = vld [vmem:[%s10142_s11 + $0x12a8] ss:$72 sps:$4 sm:$0xff]  }
 0x21d   : > { %6093 = vmatpush1.bf16.msra.mxu0 %v8806_v4  ;;  %6012 = vmatprep.subr.bf16.mxu1 %v8811_v5  ;;  %v8884_v4 = vld [vmem:[%s10142_s11 + $0x9b0] ss:$72 sps:$4 sm:$0xff]   ;;  %v8889_v5 = vld [vmem:[%s10142_s11 + $0x133c] ss:$72 sps:$4 sm:$0xff]  }
 0x21e   : > { %6094 = vmatprep.subr.bf16.mxu0 %v8814_v6  ;;  %v8892_v6 = vld [vmem:[%s10142_s11 + $0xa44] ss:$72 sps:$4 sm:$0xff]  }
 0x21f   : > { %v5708_v11 = vpop.f32.mrb[0].mxu0 }
 0x220   : > { %v10588_v14 = vadd.f32 %v5708_v11, %v10513_v63  ;;  %v5710_v15 = vpop.f32.mrb[1].mxu0  ;;  %6013 = vmatpush1.bf16.msra.mxu1 %v8809_v7  ;;  %v8821_v63 = vld [vmem:[%s10142_s11 + $0xd08] ss:$72 sps:$4 sm:$0xff]   ;;  %v8887_v7 = vld [vmem:[%s10142_s11 + $0x1338] ss:$72 sps:$4 sm:$0xff]  }
 0x221   : > { %v10591_v18 = vadd.f32 %v5710_v15, %v10515_v0  ;;  %v5712_v19 = vpop.f32.mrb[2].mxu0  ;;  %6095 = vmatpush1.bf16.msra.mxu0 %v8812_v8  ;;  %6014 = vmatprep.subr.bf16.mxu1 %v8817_v9  ;;  %v8829_v0 = vld [vmem:[%s10142_s11 + $0xd9c] ss:$72 sps:$4 sm:$0xff]   ;;  %v8890_v8 = vld [vmem:[%s10142_s11 + $0xa40] ss:$72 sps:$4 sm:$0xff]  }
 0x222   : > { %v5713_v20 = vpop.f32.mrb[3].mxu0  ;;  %6096 = vmatprep.subr.bf16.mxu0 %v8820_v10  ;;  %v8895_v9 = vld [vmem:[%s10142_s11 + $0x13cc] ss:$72 sps:$4 sm:$0xff]   ;;  %v8893_v11 = vld [vmem:[%s10142_s11 + $0x13c8] ss:$72 sps:$4 sm:$0xff]  }
 0x223   : > { %v8898_v10 = vld [vmem:[%s10142_s11 + $0xad4] ss:$72 sps:$4 sm:$0xff]   ;;  %v8904_v15 = vld [vmem:[%s10142_s11 + $0xb64] ss:$72 sps:$4 sm:$0xff]   ;;  %v8899_v19 = vld [vmem:[%s10142_s11 + $0x1458] ss:$72 sps:$4 sm:$0xff]  }
 0x224   : > { %6015 = vmatpush1.bf16.msra.mxu1 %v8815_v12  ;;  %v8896_v12 = vld [vmem:[%s10142_s11 + $0xad0] ss:$72 sps:$4 sm:$0xff]   ;;  %v8902_v20 = vld [vmem:[%s10142_s11 + $0xb60] ss:$72 sps:$4 sm:$0xff]  }
 0x225   : > { %6097 = vmatpush1.bf16.msra.mxu0 %v8818_v13  ;;  %6016 = vmatprep.subr.bf16.mxu1 %v8823_v21  ;;  %v8901_v13 = vld [vmem:[%s10142_s11 + $0x145c] ss:$72 sps:$4 sm:$0xff]   ;;  %v8907_v21 = vld [vmem:[%s10142_s11 + $0x14ec] ss:$72 sps:$4 sm:$0xff]  }
 0x226   : > { %6098 = vmatprep.subr.bf16.mxu0 %v8826_v22  ;;  %v8910_v22 = vld [vmem:[%s10142_s11 + $0xbf4] ss:$72 sps:$4 sm:$0xff]  }
 0x228   : > { %6017 = vmatpush1.bf16.msra.mxu1 %v8821_v63  ;;  %v8905_v63 = vld [vmem:[%s10142_s11 + $0x14e8] ss:$72 sps:$4 sm:$0xff]  }
 0x229   : > { %6099 = vmatpush1.bf16.msra.mxu0 %v8824_v24  ;;  %6018 = vmatprep.subr.bf16.mxu1 %v8829_v0  ;;  %v8908_v24 = vld [vmem:[%s10142_s11 + $0xbf0] ss:$72 sps:$4 sm:$0xff]   ;;  %v8913_v0 = vld [vmem:[%s10142_s11 + $0x157c] ss:$72 sps:$4 sm:$0xff]  }
 0x22a   : > { %6100 = vmatprep.subr.bf16.mxu0 %v8832_v25  ;;  %v8916_v25 = vld [vmem:[%s10142_s11 + $0xc84] ss:$72 sps:$4 sm:$0xff]  }
 0x22c   : > { %6019 = vmatpush1.bf16.msra.mxu1 %v8827_v26  ;;  %v8911_v26 = vld [vmem:[%s10142_s11 + $0x1578] ss:$72 sps:$4 sm:$0xff]  }
 0x22d   : > { %6101 = vmatpush1.bf16.msra.mxu0 %v8830_v27  ;;  %6020 = vmatprep.subr.bf16.mxu1 %v8835_v28  ;;  %v8914_v27 = vld [vmem:[%s10142_s11 + $0xc80] ss:$72 sps:$4 sm:$0xff]   ;;  %v8919_v28 = vld [vmem:[%s10142_s11 + $0x160c] ss:$72 sps:$4 sm:$0xff]  }
 0x22e   : > { %6102 = vmatprep.subr.bf16.mxu0 %v8838_v29  ;;  %v8922_v29 = vld [vmem:[%s10142_s11 + $0xd14] ss:$72 sps:$4 sm:$0xff]  }
 0x230   : > { %6021 = vmatpush1.bf16.msra.mxu1 %v8833_v30  ;;  %v8917_v30 = vld [vmem:[%s10142_s11 + $0x1608] ss:$72 sps:$4 sm:$0xff]  }
 0x231   : > { %6103 = vmatpush1.bf16.msra.mxu0 %v8836_v31  ;;  %6022 = vmatprep.subr.bf16.mxu1 %v8841_v32  ;;  %v8920_v31 = vld [vmem:[%s10142_s11 + $0xd10] ss:$72 sps:$4 sm:$0xff]   ;;  %v8925_v32 = vld [vmem:[%s10142_s11 + $0x169c] ss:$72 sps:$4 sm:$0xff]  }
 0x232   : > { %6104 = vmatprep.subr.bf16.mxu0 %v8844_v33  ;;  %v8928_v33 = vld [vmem:[%s10142_s11 + $0xda4] ss:$72 sps:$4 sm:$0xff]  }
 0x234   : > { %6023 = vmatpush1.bf16.msra.mxu1 %v8839_v34  ;;  %v8923_v34 = vld [vmem:[%s10142_s11 + $0x1698] ss:$72 sps:$4 sm:$0xff]  }
 0x235   : > { %6105 = vmatpush1.bf16.msra.mxu0 %v8842_v35  ;;  %6024 = vmatprep.subr.bf16.mxu1 %v8847_v36  ;;  %v8926_v35 = vld [vmem:[%s10142_s11 + $0xda0] ss:$72 sps:$4 sm:$0xff]   ;;  %v8931_v36 = vld [vmem:[%s10142_s11 + $0x172c] ss:$72 sps:$4 sm:$0xff]  }
 0x236   : > { %6106 = vmatprep.subr.bf16.mxu0 %v8850_v37  ;;  %v8934_v37 = vld [vmem:[%s10142_s11 + $0xe34] ss:$72 sps:$4 sm:$0xff]  }
 0x238   : > { %6025 = vmatpush1.bf16.msra.mxu1 %v8845_v38  ;;  %v8929_v38 = vld [vmem:[%s10142_s11 + $0x1728] ss:$72 sps:$4 sm:$0xff]  }
 0x239   : > { %6107 = vmatpush1.bf16.msra.mxu0 %v8848_v39  ;;  %6026 = vmatprep.subr.bf16.mxu1 %v8853_v40  ;;  %v8932_v39 = vld [vmem:[%s10142_s11 + $0xe30] ss:$72 sps:$4 sm:$0xff]   ;;  %v8937_v40 = vld [vmem:[%s10142_s11 + $0x17bc] ss:$72 sps:$4 sm:$0xff]  }
 0x23a   : > { %6108 = vmatprep.subr.bf16.mxu0 %v8856_v42  ;;  %v8940_v42 = vld [vmem:[%s10142_s11 + $0xec4] ss:$72 sps:$4 sm:$0xff]  }
 0x23c   : > { %6027 = vmatpush1.bf16.msra.mxu1 %v8851_v43  ;;  %v8935_v43 = vld [vmem:[%s10142_s11 + $0x17b8] ss:$72 sps:$4 sm:$0xff]  }
 0x23d   : > { %6109 = vmatpush1.bf16.msra.mxu0 %v8854_v44  ;;  %6028 = vmatprep.subr.bf16.mxu1 %v8859_v45  ;;  %v8938_v44 = vld [vmem:[%s10142_s11 + $0xec0] ss:$72 sps:$4 sm:$0xff]   ;;  %v8943_v45 = vld [vmem:[%s10142_s11 + $0x184c] ss:$72 sps:$4 sm:$0xff]  }
 0x23e   : > { %6110 = vmatprep.subr.bf16.mxu0 %v8862_v46  ;;  %v8946_v46 = vld [vmem:[%s10142_s11 + $0xf54] ss:$72 sps:$4 sm:$0xff]  }
 0x240   : > { %6029 = vmatpush1.bf16.msra.mxu1 %v8857_v47  ;;  %v8941_v47 = vld [vmem:[%s10142_s11 + $0x1848] ss:$72 sps:$4 sm:$0xff]  }
 0x241   : > { %6111 = vmatpush1.bf16.msra.mxu0 %v8860_v48  ;;  %6030 = vmatprep.subr.bf16.mxu1 %v8865_v49  ;;  %v8944_v48 = vld [vmem:[%s10142_s11 + $0xf50] ss:$72 sps:$4 sm:$0xff]   ;;  %v8949_v49 = vld [vmem:[%s10142_s11 + $0x18dc] ss:$72 sps:$4 sm:$0xff]  }
 0x242   : > { %6112 = vmatprep.subr.bf16.mxu0 %v8868_v50  ;;  %v8952_v50 = vld [vmem:[%s10142_s11 + $0xfe4] ss:$72 sps:$4 sm:$0xff]  }
 0x244   : > { %6031 = vmatpush1.bf16.msra.mxu1 %v8863_v51  ;;  %v8947_v51 = vld [vmem:[%s10142_s11 + $0x18d8] ss:$72 sps:$4 sm:$0xff]  }
 0x245   : > { %6113 = vmatpush1.bf16.msra.mxu0 %v8866_v52  ;;  %6032 = vmatprep.subr.bf16.mxu1 %v8871_v54  ;;  %v8950_v52 = vld [vmem:[%s10142_s11 + $0xfe0] ss:$72 sps:$4 sm:$0xff]   ;;  %v8955_v54 = vld [vmem:[%s10142_s11 + $0x196c] ss:$72 sps:$4 sm:$0xff]  }
 0x246   : > { %6114 = vmatprep.subr.bf16.mxu0 %v8874_v55  ;;  %v8958_v55 = vld [vmem:[%s10142_s11 + $0x1074] ss:$72 sps:$4 sm:$0xff]  }
 0x248   : > { %6033 = vmatpush1.bf16.msra.mxu1 %v8869_v56  ;;  %v8953_v56 = vld [vmem:[%s10142_s11 + $0x1968] ss:$72 sps:$4 sm:$0xff]  }
 0x249   : > { %6115 = vmatpush1.bf16.msra.mxu0 %v8872_v58  ;;  %6043 = vmatprep.subr.bf16.mxu1 %v8877_v59  ;;  %v8956_v58 = vld [vmem:[%s10142_s11 + $0x1070] ss:$72 sps:$4 sm:$0xff]   ;;  %v8961_v59 = vld [vmem:[%s10142_s11 + $0x19fc] ss:$72 sps:$4 sm:$0xff]  }
 0x24a   : > { %6125 = vmatprep.subr.bf16.mxu0 %v8880_v60  ;;  %v8964_v60 = vld [vmem:[%s10142_s11 + $0x1104] ss:$72 sps:$4 sm:$0xff]  }
 0x24b   : > { %6035 = vmatmul.mubr.bf16.vlgmr.msra.gmra.mrb[8].mxu1 %v10275_v17 }
 0x24c   : > { %6117 = vmatmul.mubr.bf16.vlgmr.msra.gmra.mrb[8].mxu0 %v10273_v16  ;;  %6044 = vmatpush1.bf16.msra.mxu1 %v8875_v61  ;;  %v8959_v61 = vld [vmem:[%s10142_s11 + $0x19f8] ss:$72 sps:$4 sm:$0xff]  }
 0x24d   : > { %6126 = vmatpush1.bf16.msra.mxu0 %v8878_v62  ;;  %6045 = vmatprep.subr.bf16.mxu1 %v8883_v1  ;;  %v8962_v62 = vld [vmem:[%s10142_s11 + $0x1100] ss:$72 sps:$4 sm:$0xff]   ;;  %v8967_v1 = vld [vmem:[%s10142_s11 + $0x1a8c] ss:$72 sps:$4 sm:$0xff]  }
 0x24e   : > { %6127 = vmatprep.subr.bf16.mxu0 %v8886_v2  ;;  %6075 = vmatprep.mubr.bf16.mxu1 %v10303_v41  ;;  %v8970_v2 = vld [vmem:[%s10142_s11 + $0x1194] ss:$72 sps:$4 sm:$0xff]  }
 0x24f   : > { %6157 = vmatprep.mubr.bf16.mxu0 %v10247_v57 }
 0x250   : > { %6046 = vmatpush1.bf16.msra.mxu1 %v8881_v3  ;;  %v8965_v3 = vld [vmem:[%s10142_s11 + $0x1a88] ss:$72 sps:$4 sm:$0xff]  }
 0x251   : > { %6128 = vmatpush1.bf16.msra.mxu0 %v8884_v4  ;;  %6047 = vmatprep.subr.bf16.mxu1 %v8889_v5  ;;  %v8968_v4 = vld [vmem:[%s10142_s11 + $0x1190] ss:$72 sps:$4 sm:$0xff]   ;;  %v8973_v5 = vld [vmem:[%s10142_s11 + $0x1224] ss:$72 sps:$4 sm:$0xff]  }
 0x252   : > { %6129 = vmatprep.subr.bf16.mxu0 %v8892_v6  ;;  %v8976_v6 = vld [vmem:[%s10142_s11 + $0x2c] ss:$72 sps:$4 sm:$0xff]  }
 0x254   : > { %6048 = vmatpush1.bf16.msra.mxu1 %v8887_v7  ;;  %v8971_v7 = vld [vmem:[%s10142_s11 + $0x1220] ss:$72 sps:$4 sm:$0xff]  }
 0x255   : > { %6130 = vmatpush1.bf16.msra.mxu0 %v8890_v8  ;;  %6049 = vmatprep.subr.bf16.mxu1 %v8895_v9  ;;  %v8974_v8 = vld [vmem:[%s10142_s11 + $0x28] ss:$72 sps:$4 sm:$0xff]   ;;  %v8979_v9 = vld [vmem:[%s10142_s11 + $0x12b4] ss:$72 sps:$4 sm:$0xff]  }
 0x256   : > { %6131 = vmatprep.subr.bf16.mxu0 %v8898_v10  ;;  %v8982_v10 = vld [vmem:[%s10142_s11 + $0xbc] ss:$72 sps:$4 sm:$0xff]  }
 0x258   : > { %6050 = vmatpush1.bf16.msra.mxu1 %v8893_v11  ;;  %v8977_v11 = vld [vmem:[%s10142_s11 + $0x12b0] ss:$72 sps:$4 sm:$0xff]  }
 0x259   : > { %6132 = vmatpush1.bf16.msra.mxu0 %v8896_v12  ;;  %6051 = vmatprep.subr.bf16.mxu1 %v8901_v13  ;;  %v8980_v12 = vld [vmem:[%s10142_s11 + $0xb8] ss:$72 sps:$4 sm:$0xff]   ;;  %v8985_v13 = vld [vmem:[%s10142_s11 + $0x1344] ss:$72 sps:$4 sm:$0xff]  }
 0x25a   : > { %6133 = vmatprep.subr.bf16.mxu0 %v8904_v15  ;;  %v8988_v15 = vld [vmem:[%s10142_s11 + $0x14c] ss:$72 sps:$4 sm:$0xff]  }
 0x25c   : > { %6052 = vmatpush1.bf16.msra.mxu1 %v8899_v19  ;;  %v8983_v19 = vld [vmem:[%s10142_s11 + $0x1340] ss:$72 sps:$4 sm:$0xff]  }
 0x25d   : > { %6134 = vmatpush1.bf16.msra.mxu0 %v8902_v20  ;;  %6053 = vmatprep.subr.bf16.mxu1 %v8907_v21  ;;  %v8986_v20 = vld [vmem:[%s10142_s11 + $0x148] ss:$72 sps:$4 sm:$0xff]   ;;  %v8991_v21 = vld [vmem:[%s10142_s11 + $0x13d4] ss:$72 sps:$4 sm:$0xff]  }
 0x25e   : > { %6135 = vmatprep.subr.bf16.mxu0 %v8910_v22  ;;  %v8994_v22 = vld [vmem:[%s10142_s11 + $0x1dc] ss:$72 sps:$4 sm:$0xff]  }
 0x260   : > { %6054 = vmatpush1.bf16.msra.mxu1 %v8905_v63  ;;  %v8989_v63 = vld [vmem:[%s10142_s11 + $0x13d0] ss:$72 sps:$4 sm:$0xff]  }
 0x261   : > { %6136 = vmatpush1.bf16.msra.mxu0 %v8908_v24  ;;  %6055 = vmatprep.subr.bf16.mxu1 %v8913_v0  ;;  %v8992_v24 = vld [vmem:[%s10142_s11 + $0x1d8] ss:$72 sps:$4 sm:$0xff]   ;;  %v8997_v0 = vld [vmem:[%s10142_s11 + $0x1464] ss:$72 sps:$4 sm:$0xff]  }
 0x262   : > { %6137 = vmatprep.subr.bf16.mxu0 %v8916_v25  ;;  %v9000_v25 = vld [vmem:[%s10142_s11 + $0x26c] ss:$72 sps:$4 sm:$0xff]  }
 0x264   : > { %6056 = vmatpush1.bf16.msra.mxu1 %v8911_v26  ;;  %v8995_v26 = vld [vmem:[%s10142_s11 + $0x1460] ss:$72 sps:$4 sm:$0xff]  }
 0x265   : > { %6138 = vmatpush1.bf16.msra.mxu0 %v8914_v27  ;;  %6057 = vmatprep.subr.bf16.mxu1 %v8919_v28  ;;  %v8998_v27 = vld [vmem:[%s10142_s11 + $0x268] ss:$72 sps:$4 sm:$0xff]   ;;  %v9003_v28 = vld [vmem:[%s10142_s11 + $0x14f4] ss:$72 sps:$4 sm:$0xff]  }
 0x266   : > { %6139 = vmatprep.subr.bf16.mxu0 %v8922_v29  ;;  %v9006_v29 = vld [vmem:[%s10142_s11 + $0x2fc] ss:$72 sps:$4 sm:$0xff]  }
 0x268   : > { %6058 = vmatpush1.bf16.msra.mxu1 %v8917_v30  ;;  %v9001_v30 = vld [vmem:[%s10142_s11 + $0x14f0] ss:$72 sps:$4 sm:$0xff]  }
 0x269   : > { %6140 = vmatpush1.bf16.msra.mxu0 %v8920_v31  ;;  %6059 = vmatprep.subr.bf16.mxu1 %v8925_v32  ;;  %v9004_v31 = vld [vmem:[%s10142_s11 + $0x2f8] ss:$72 sps:$4 sm:$0xff]   ;;  %v9009_v32 = vld [vmem:[%s10142_s11 + $0x1584] ss:$72 sps:$4 sm:$0xff]  }
 0x26a   : > { %6141 = vmatprep.subr.bf16.mxu0 %v8928_v33  ;;  %v9012_v33 = vld [vmem:[%s10142_s11 + $0x38c] ss:$72 sps:$4 sm:$0xff]  }
 0x26c   : > { %6060 = vmatpush1.bf16.msra.mxu1 %v8923_v34 }
 0x26d   : > { %6142 = vmatpush1.bf16.msra.mxu0 %v8926_v35  ;;  %6061 = vmatprep.subr.bf16.mxu1 %v8931_v36 }
 0x26e   : > { %6143 = vmatprep.subr.bf16.mxu0 %v8934_v37  ;;  %v9007_v37 = vld [vmem:[%s10142_s11 + $0x1580] ss:$72 sps:$4 sm:$0xff]  }
 0x270   : > { %6062 = vmatpush1.bf16.msra.mxu1 %v8929_v38  ;;  %v9010_v38 = vld [vmem:[%s10142_s11 + $0x388] ss:$72 sps:$4 sm:$0xff]  }
 0x271   : > { %6144 = vmatpush1.bf16.msra.mxu0 %v8932_v39  ;;  %6063 = vmatprep.subr.bf16.mxu1 %v8937_v40  ;;  %v9015_v40 = vld [vmem:[%s10142_s11 + $0x1614] ss:$72 sps:$4 sm:$0xff]  }
 0x272   : > { %6145 = vmatprep.subr.bf16.mxu0 %v8940_v42  ;;  %v9018_v42 = vld [vmem:[%s10142_s11 + $0x41c] ss:$72 sps:$4 sm:$0xff]  }
 0x274   : > { %6064 = vmatpush1.bf16.msra.mxu1 %v8935_v43  ;;  %v9013_v43 = vld [vmem:[%s10142_s11 + $0x1610] ss:$72 sps:$4 sm:$0xff]  }
 0x275   : > { %6146 = vmatpush1.bf16.msra.mxu0 %v8938_v44  ;;  %6065 = vmatprep.subr.bf16.mxu1 %v8943_v45  ;;  %v9016_v44 = vld [vmem:[%s10142_s11 + $0x418] ss:$72 sps:$4 sm:$0xff]   ;;  %v9021_v45 = vld [vmem:[%s10142_s11 + $0x16a4] ss:$72 sps:$4 sm:$0xff]  }
 0x276   : > { %6147 = vmatprep.subr.bf16.mxu0 %v8946_v46  ;;  %v9024_v46 = vld [vmem:[%s10142_s11 + $0x4ac] ss:$72 sps:$4 sm:$0xff]  }
 0x278   : > { %6066 = vmatpush1.bf16.msra.mxu1 %v8941_v47  ;;  %v9019_v47 = vld [vmem:[%s10142_s11 + $0x16a0] ss:$72 sps:$4 sm:$0xff]  }
 0x279   : > { %6148 = vmatpush1.bf16.msra.mxu0 %v8944_v48  ;;  %6067 = vmatprep.subr.bf16.mxu1 %v8949_v49  ;;  %v9022_v48 = vld [vmem:[%s10142_s11 + $0x4a8] ss:$72 sps:$4 sm:$0xff]   ;;  %v9027_v49 = vld [vmem:[%s10142_s11 + $0x1734] ss:$72 sps:$4 sm:$0xff]  }
 0x27a   : > { %6149 = vmatprep.subr.bf16.mxu0 %v8952_v50  ;;  %v9030_v50 = vld [vmem:[%s10142_s11 + $0x53c] ss:$72 sps:$4 sm:$0xff]  }
 0x27c   : > { %6068 = vmatpush1.bf16.msra.mxu1 %v8947_v51  ;;  %v9025_v51 = vld [vmem:[%s10142_s11 + $0x1730] ss:$72 sps:$4 sm:$0xff]  }
 0x27d   : > { %6150 = vmatpush1.bf16.msra.mxu0 %v8950_v52  ;;  %6069 = vmatprep.subr.bf16.mxu1 %v8955_v54  ;;  %v9028_v52 = vld [vmem:[%s10142_s11 + $0x538] ss:$72 sps:$4 sm:$0xff]   ;;  %v9033_v54 = vld [vmem:[%s10142_s11 + $0x17c4] ss:$72 sps:$4 sm:$0xff]  }
 0x27e   : > { %6151 = vmatprep.subr.bf16.mxu0 %v8958_v55  ;;  %v9036_v55 = vld [vmem:[%s10142_s11 + $0x5cc] ss:$72 sps:$4 sm:$0xff]  }
 0x280   : > { %6070 = vmatpush1.bf16.msra.mxu1 %v8953_v56  ;;  %v9031_v56 = vld [vmem:[%s10142_s11 + $0x17c0] ss:$72 sps:$4 sm:$0xff]  }
 0x281   : > { %6152 = vmatpush1.bf16.msra.mxu0 %v8956_v58  ;;  %6071 = vmatprep.subr.bf16.mxu1 %v8961_v59  ;;  %v9034_v58 = vld [vmem:[%s10142_s11 + $0x5c8] ss:$72 sps:$4 sm:$0xff]   ;;  %v9039_v59 = vld [vmem:[%s10142_s11 + $0x1854] ss:$72 sps:$4 sm:$0xff]  }
 0x282   : > { %6153 = vmatprep.subr.bf16.mxu0 %v8964_v60  ;;  %v9042_v60 = vld [vmem:[%s10142_s11 + $0x65c] ss:$72 sps:$4 sm:$0xff]  }
 0x284   : > { %6072 = vmatpush1.bf16.msra.mxu1 %v8959_v61  ;;  %v9037_v61 = vld [vmem:[%s10142_s11 + $0x1850] ss:$72 sps:$4 sm:$0xff]  }
 0x285   : > { %6154 = vmatpush1.bf16.msra.mxu0 %v8962_v62  ;;  %6073 = vmatprep.subr.bf16.mxu1 %v8967_v1  ;;  %v9040_v62 = vld [vmem:[%s10142_s11 + $0x658] ss:$72 sps:$4 sm:$0xff]   ;;  %v9045_v1 = vld [vmem:[%s10142_s11 + $0x18e4] ss:$72 sps:$4 sm:$0xff]  }
 0x286   : > { %6155 = vmatprep.subr.bf16.mxu0 %v8970_v2  ;;  %v9048_v2 = vld [vmem:[%s10142_s11 + $0x6ec] ss:$72 sps:$4 sm:$0xff]  }
 0x288   : > { %6074 = vmatpush1.bf16.msra.mxu1 %v8965_v3  ;;  %v9043_v3 = vld [vmem:[%s10142_s11 + $0x18e0] ss:$72 sps:$4 sm:$0xff]  }
 0x289   : > { %6156 = vmatpush1.bf16.msra.mxu0 %v8968_v4  ;;  %6207 = vmatprep.subr.bf16.mxu1 %v8976_v6  ;;  %v9046_v4 = vld [vmem:[%s10142_s11 + $0x6e8] ss:$72 sps:$4 sm:$0xff]   ;;  %v9054_v6 = vld [vmem:[%s10142_s11 + $0x77c] ss:$72 sps:$4 sm:$0xff]  }
 0x28a   : > { %6166 = vmatprep.subr.bf16.mxu0 %v8973_v5  ;;  %v9051_v5 = vld [vmem:[%s10142_s11 + $0x1974] ss:$72 sps:$4 sm:$0xff]  }
 0x28b   : > { %6076 = vmatmul.mubr.bf16.vlgmr.msra.gmra.mrb[8].mxu1 %v10347_v23 }
 0x28c   : > { %6158 = vmatmul.mubr.bf16.vlgmr.msra.gmra.mrb[8].mxu0 %v10275_v17  ;;  %6208 = vmatpush1.bf16.msra.mxu1 %v8974_v8  ;;  %v9052_v8 = vld [vmem:[%s10142_s11 + $0x778] ss:$72 sps:$4 sm:$0xff]  }
 0x28d   : > { %6167 = vmatpush1.bf16.msra.mxu0 %v8971_v7  ;;  %6209 = vmatprep.subr.bf16.mxu1 %v8982_v10  ;;  %v9049_v7 = vld [vmem:[%s10142_s11 + $0x1970] ss:$72 sps:$4 sm:$0xff]   ;;  %v9060_v10 = vld [vmem:[%s10142_s11 + $0x80c] ss:$72 sps:$4 sm:$0xff]  }
 0x28e   : > { %6168 = vmatprep.subr.bf16.mxu0 %v8979_v9  ;;  %6198 = vmatprep.mubr.bf16.mxu0 %v10303_v41  ;;  %v9057_v9 = vld [vmem:[%s10142_s11 + $0x1a04] ss:$72 sps:$4 sm:$0xff]  }
 0x28f   : > { %6239 = vmatprep.mubr.bf16.mxu1 %v10242_v53 }
 0x290   : > { %6210 = vmatpush1.bf16.msra.mxu1 %v8980_v12  ;;  %v9058_v12 = vld [vmem:[%s10142_s11 + $0x808] ss:$72 sps:$4 sm:$0xff]  }
 0x291   : > { %6169 = vmatpush1.bf16.msra.mxu0 %v8977_v11  ;;  %6211 = vmatprep.subr.bf16.mxu1 %v8988_v15  ;;  %v9055_v11 = vld [vmem:[%s10142_s11 + $0x1a00] ss:$72 sps:$4 sm:$0xff]   ;;  %v9066_v15 = vld [vmem:[%s10142_s11 + $0x89c] ss:$72 sps:$4 sm:$0xff]  }
 0x292   : > { %6170 = vmatprep.subr.bf16.mxu0 %v8985_v13  ;;  %v9063_v13 = vld [vmem:[%s10142_s11 + $0x1a94] ss:$72 sps:$4 sm:$0xff]  }
 0x294   : > { %6212 = vmatpush1.bf16.msra.mxu1 %v8986_v20  ;;  %v9064_v20 = vld [vmem:[%s10142_s11 + $0x898] ss:$72 sps:$4 sm:$0xff]  }
 0x295   : > { %6171 = vmatpush1.bf16.msra.mxu0 %v8983_v19  ;;  %6213 = vmatprep.subr.bf16.mxu1 %v8994_v22  ;;  %v9061_v19 = vld [vmem:[%s10142_s11 + $0x1a90] ss:$72 sps:$4 sm:$0xff]   ;;  %v9072_v22 = vld [vmem:[%s10142_s11 + $0x34] ss:$72 sps:$4 sm:$0xff]  }
 0x296   : > { %6172 = vmatprep.subr.bf16.mxu0 %v8991_v21  ;;  %v9069_v21 = vld [vmem:[%s10142_s11 + $0x92c] ss:$72 sps:$4 sm:$0xff]  }
 0x298   : > { %6214 = vmatpush1.bf16.msra.mxu1 %v8992_v24  ;;  %v9070_v24 = vld [vmem:[%s10142_s11 + $0x30] ss:$72 sps:$4 sm:$0xff]  }
 0x299   : > { %6173 = vmatpush1.bf16.msra.mxu0 %v8989_v63  ;;  %6215 = vmatprep.subr.bf16.mxu1 %v9000_v25  ;;  %v9067_v63 = vld [vmem:[%s10142_s11 + $0x928] ss:$72 sps:$4 sm:$0xff]   ;;  %v9078_v25 = vld [vmem:[%s10142_s11 + $0xc4] ss:$72 sps:$4 sm:$0xff]  }
 0x29a   : > { %6174 = vmatprep.subr.bf16.mxu0 %v8997_v0  ;;  %v9075_v0 = vld [vmem:[%s10142_s11 + $0x9bc] ss:$72 sps:$4 sm:$0xff]  }
 0x29c   : > { %6216 = vmatpush1.bf16.msra.mxu1 %v8998_v27  ;;  %v9076_v27 = vld [vmem:[%s10142_s11 + $0xc0] ss:$72 sps:$4 sm:$0xff]  }
 0x29d   : > { %6175 = vmatpush1.bf16.msra.mxu0 %v8995_v26  ;;  %6217 = vmatprep.subr.bf16.mxu1 %v9006_v29  ;;  %v9073_v26 = vld [vmem:[%s10142_s11 + $0x9b8] ss:$72 sps:$4 sm:$0xff]   ;;  %v9084_v29 = vld [vmem:[%s10142_s11 + $0x154] ss:$72 sps:$4 sm:$0xff]  }
 0x29e   : > { %6176 = vmatprep.subr.bf16.mxu0 %v9003_v28  ;;  %v10727_v34 = vpop.f32.mrb[4].mxu1  ;;  %v9081_v28 = vld [vmem:[%s10142_s11 + $0xa4c] ss:$72 sps:$4 sm:$0xff]  }
 0x29f   : > { %v10729_v35 = vpop.f32.mrb[5].mxu1 }
 0x2a0   : > { %v5835_v36 = vpop.f32.mrb[6].mxu1  ;;  %6218 = vmatpush1.bf16.msra.mxu1 %v9004_v31  ;;  %v9082_v31 = vld [vmem:[%s10142_s11 + $0x150] ss:$72 sps:$4 sm:$0xff]  }
 0x2a1   : > { %6177 = vmatpush1.bf16.msra.mxu0 %v9001_v30  ;;  %v5836_v39 = vpop.f32.mrb[7].mxu1  ;;  %6219 = vmatprep.subr.bf16.mxu1 %v9012_v33  ;;  %v9079_v30 = vld [vmem:[%s10142_s11 + $0xa48] ss:$72 sps:$4 sm:$0xff]   ;;  %v9090_v33 = vld [vmem:[%s10142_s11 + $0x1e4] ss:$72 sps:$4 sm:$0xff]  }
 0x2a2   : > { %6178 = vmatprep.subr.bf16.mxu0 %v9009_v32  ;;  %v9087_v32 = vld [vmem:[%s10142_s11 + $0xadc] ss:$72 sps:$4 sm:$0xff]   ;;  %v9085_v36 = vld [vmem:[%s10142_s11 + $0xad8] ss:$72 sps:$4 sm:$0xff]  }
 0x2a3   : > { %v9096_v39 = vld [vmem:[%s10142_s11 + $0x274] ss:$72 sps:$4 sm:$0xff]  }
 0x2a4   : > { %6220 = vmatpush1.bf16.msra.mxu1 %v9010_v38  ;;  %v9093_v38 = vld [vmem:[%s10142_s11 + $0xb6c] ss:$72 sps:$4 sm:$0xff]  }
 0x2a5   : > { %6179 = vmatpush1.bf16.msra.mxu0 %v9007_v37  ;;  %6221 = vmatprep.subr.bf16.mxu1 %v9018_v42  ;;  %v9088_v37 = vld [vmem:[%s10142_s11 + $0x1e0] ss:$72 sps:$4 sm:$0xff]   ;;  %v9094_v42 = vld [vmem:[%s10142_s11 + $0x270] ss:$72 sps:$4 sm:$0xff]  }
 0x2a6   : > { %6180 = vmatprep.subr.bf16.mxu0 %v9015_v40  ;;  %v9091_v40 = vld [vmem:[%s10142_s11 + $0xb68] ss:$72 sps:$4 sm:$0xff]  }
 0x2a8   : > { %6222 = vmatpush1.bf16.msra.mxu1 %v9016_v44  ;;  %v9102_v44 = vld [vmem:[%s10142_s11 + $0x304] ss:$72 sps:$4 sm:$0xff]  }
 0x2a9   : > { %6181 = vmatpush1.bf16.msra.mxu0 %v9013_v43  ;;  %6223 = vmatprep.subr.bf16.mxu1 %v9024_v46  ;;  %v9099_v43 = vld [vmem:[%s10142_s11 + $0xbfc] ss:$72 sps:$4 sm:$0xff]   ;;  %v9100_v46 = vld [vmem:[%s10142_s11 + $0x300] ss:$72 sps:$4 sm:$0xff]  }
 0x2aa   : > { %6182 = vmatprep.subr.bf16.mxu0 %v9021_v45  ;;  %v9097_v45 = vld [vmem:[%s10142_s11 + $0xbf8] ss:$72 sps:$4 sm:$0xff]  }
 0x2ac   : > { %6224 = vmatpush1.bf16.msra.mxu1 %v9022_v48  ;;  %v9108_v48 = vld [vmem:[%s10142_s11 + $0x394] ss:$72 sps:$4 sm:$0xff]  }
 0x2ad   : > { %6183 = vmatpush1.bf16.msra.mxu0 %v9019_v47  ;;  %6225 = vmatprep.subr.bf16.mxu1 %v9030_v50  ;;  %v9105_v47 = vld [vmem:[%s10142_s11 + $0xc8c] ss:$72 sps:$4 sm:$0xff]  }
 0x2ae   : > { %6184 = vmatprep.subr.bf16.mxu0 %v9027_v49 }
 0x2b0   : > { %6226 = vmatpush1.bf16.msra.mxu1 %v9028_v52  ;;  %v9103_v52 = vld [vmem:[%s10142_s11 + $0xc88] ss:$72 sps:$4 sm:$0xff]  }
 0x2b1   : > { %6185 = vmatpush1.bf16.msra.mxu0 %v9025_v51  ;;  %6227 = vmatprep.subr.bf16.mxu1 %v9036_v55 }
 0x2b2   : > { %6186 = vmatprep.subr.bf16.mxu0 %v9033_v54  ;;  %v9106_v54 = vld [vmem:[%s10142_s11 + $0x390] ss:$72 sps:$4 sm:$0xff]  }
 0x2b4   : > { %6228 = vmatpush1.bf16.msra.mxu1 %v9034_v58  ;;  %v9114_v58 = vld [vmem:[%s10142_s11 + $0x424] ss:$72 sps:$4 sm:$0xff]  }
 0x2b5   : > { %6187 = vmatpush1.bf16.msra.mxu0 %v9031_v56  ;;  %6229 = vmatprep.subr.bf16.mxu1 %v9042_v60  ;;  %v9111_v56 = vld [vmem:[%s10142_s11 + $0xd1c] ss:$72 sps:$4 sm:$0xff]   ;;  %v9112_v60 = vld [vmem:[%s10142_s11 + $0x420] ss:$72 sps:$4 sm:$0xff]  }
 0x2b6   : > { %6188 = vmatprep.subr.bf16.mxu0 %v9039_v59  ;;  %v9109_v59 = vld [vmem:[%s10142_s11 + $0xd18] ss:$72 sps:$4 sm:$0xff]  }
 0x2b8   : > { %6230 = vmatpush1.bf16.msra.mxu1 %v9040_v62  ;;  %v9120_v62 = vld [vmem:[%s10142_s11 + $0x4b4] ss:$72 sps:$4 sm:$0xff]  }
 0x2b9   : > { %6189 = vmatpush1.bf16.msra.mxu0 %v9037_v61  ;;  %6231 = vmatprep.subr.bf16.mxu1 %v9048_v2  ;;  %v9117_v61 = vld [vmem:[%s10142_s11 + $0xdac] ss:$72 sps:$4 sm:$0xff]   ;;  %v9118_v2 = vld [vmem:[%s10142_s11 + $0x4b0] ss:$72 sps:$4 sm:$0xff]  }
 0x2ba   : > { %6190 = vmatprep.subr.bf16.mxu0 %v9045_v1  ;;  %v9115_v1 = vld [vmem:[%s10142_s11 + $0xda8] ss:$72 sps:$4 sm:$0xff]  }
 0x2bc   : > { %6232 = vmatpush1.bf16.msra.mxu1 %v9046_v4  ;;  %v9126_v4 = vld [vmem:[%s10142_s11 + $0x544] ss:$72 sps:$4 sm:$0xff]  }
 0x2bd   : > { %6191 = vmatpush1.bf16.msra.mxu0 %v9043_v3  ;;  %6233 = vmatprep.subr.bf16.mxu1 %v9054_v6  ;;  %v9123_v3 = vld [vmem:[%s10142_s11 + $0xe3c] ss:$72 sps:$4 sm:$0xff]   ;;  %v9124_v6 = vld [vmem:[%s10142_s11 + $0x540] ss:$72 sps:$4 sm:$0xff]  }
 0x2be   : > { %6192 = vmatprep.subr.bf16.mxu0 %v9051_v5  ;;  %v9121_v5 = vld [vmem:[%s10142_s11 + $0xe38] ss:$72 sps:$4 sm:$0xff]  }
 0x2c0   : > { %6234 = vmatpush1.bf16.msra.mxu1 %v9052_v8  ;;  %v9132_v8 = vld [vmem:[%s10142_s11 + $0x5d4] ss:$72 sps:$4 sm:$0xff]  }
 0x2c1   : > { %6193 = vmatpush1.bf16.msra.mxu0 %v9049_v7  ;;  %6235 = vmatprep.subr.bf16.mxu1 %v9060_v10  ;;  %v9129_v7 = vld [vmem:[%s10142_s11 + $0xecc] ss:$72 sps:$4 sm:$0xff]   ;;  %v9130_v10 = vld [vmem:[%s10142_s11 + $0x5d0] ss:$72 sps:$4 sm:$0xff]  }
 0x2c2   : > { %6194 = vmatprep.subr.bf16.mxu0 %v9057_v9  ;;  %v9127_v9 = vld [vmem:[%s10142_s11 + $0xec8] ss:$72 sps:$4 sm:$0xff]  }
 0x2c4   : > { %6236 = vmatpush1.bf16.msra.mxu1 %v9058_v12  ;;  %v9138_v12 = vld [vmem:[%s10142_s11 + $0x664] ss:$72 sps:$4 sm:$0xff]  }
 0x2c5   : > { %6195 = vmatpush1.bf16.msra.mxu0 %v9055_v11  ;;  %6237 = vmatprep.subr.bf16.mxu1 %v9066_v15  ;;  %v9135_v11 = vld [vmem:[%s10142_s11 + $0xf5c] ss:$72 sps:$4 sm:$0xff]   ;;  %v9136_v15 = vld [vmem:[%s10142_s11 + $0x660] ss:$72 sps:$4 sm:$0xff]  }
 0x2c6   : > { %6196 = vmatprep.subr.bf16.mxu0 %v9063_v13  ;;  %v9133_v13 = vld [vmem:[%s10142_s11 + $0xf58] ss:$72 sps:$4 sm:$0xff]  }
 0x2c8   : > { %6238 = vmatpush1.bf16.msra.mxu1 %v9064_v20  ;;  %v9144_v20 = vld [vmem:[%s10142_s11 + $0x6f4] ss:$72 sps:$4 sm:$0xff]  }
 0x2c9   : > { %6197 = vmatpush1.bf16.msra.mxu0 %v9061_v19  ;;  %6248 = vmatprep.subr.bf16.mxu1 %v9069_v21  ;;  %v9141_v19 = vld [vmem:[%s10142_s11 + $0xfec] ss:$72 sps:$4 sm:$0xff]   ;;  %v9139_v21 = vld [vmem:[%s10142_s11 + $0xfe8] ss:$72 sps:$4 sm:$0xff]  }
 0x2ca   : > { %6330 = vmatprep.subr.bf16.mxu0 %v9072_v22  ;;  %v9142_v22 = vld [vmem:[%s10142_s11 + $0x6f0] ss:$72 sps:$4 sm:$0xff]  }
 0x2cb   : > { %6240 = vmatmul.mubr.bf16.vlgmr.msra.gmra.mrb[12].mxu1 %v10273_v16 }
 0x2cc   : > { %6199 = vmatmul.mubr.bf16.vlgmr.msra.gmra.mrb[8].mxu0 %v10347_v23  ;;  %6249 = vmatpush1.bf16.msra.mxu1 %v9067_v63  ;;  %v9147_v63 = vld [vmem:[%s10142_s11 + $0x107c] ss:$72 sps:$4 sm:$0xff]  }
 0x2cd   : > { %6331 = vmatpush1.bf16.msra.mxu0 %v9070_v24  ;;  %6250 = vmatprep.subr.bf16.mxu1 %v9075_v0  ;;  %v9150_v24 = vld [vmem:[%s10142_s11 + $0x784] ss:$72 sps:$4 sm:$0xff]   ;;  %v9145_v0 = vld [vmem:[%s10142_s11 + $0x1078] ss:$72 sps:$4 sm:$0xff]  }
 0x2ce   : > { %6332 = vmatprep.subr.bf16.mxu0 %v9078_v25  ;;  %6280 = vmatprep.mubr.bf16.mxu1 %v10247_v57  ;;  %v9148_v25 = vld [vmem:[%s10142_s11 + $0x780] ss:$72 sps:$4 sm:$0xff]  }
 0x2cf   : > { %6362 = vmatprep.mubr.bf16.mxu0 %v10242_v53 }
 0x2d0   : > { %6251 = vmatpush1.bf16.msra.mxu1 %v9073_v26  ;;  %v9153_v26 = vld [vmem:[%s10142_s11 + $0x110c] ss:$72 sps:$4 sm:$0xff]  }
 0x2d1   : > { %6333 = vmatpush1.bf16.msra.mxu0 %v9076_v27  ;;  %6252 = vmatprep.subr.bf16.mxu1 %v9081_v28  ;;  %v9156_v27 = vld [vmem:[%s10142_s11 + $0x814] ss:$72 sps:$4 sm:$0xff]   ;;  %v9151_v28 = vld [vmem:[%s10142_s11 + $0x1108] ss:$72 sps:$4 sm:$0xff]  }
 0x2d2   : > { %6334 = vmatprep.subr.bf16.mxu0 %v9084_v29  ;;  %v9154_v29 = vld [vmem:[%s10142_s11 + $0x810] ss:$72 sps:$4 sm:$0xff]  }
 0x2d4   : > { %6253 = vmatpush1.bf16.msra.mxu1 %v9079_v30  ;;  %v9159_v30 = vld [vmem:[%s10142_s11 + $0x119c] ss:$72 sps:$4 sm:$0xff]  }
 0x2d5   : > { %6335 = vmatpush1.bf16.msra.mxu0 %v9082_v31  ;;  %6254 = vmatprep.subr.bf16.mxu1 %v9087_v32  ;;  %v9162_v31 = vld [vmem:[%s10142_s11 + $0x8a4] ss:$72 sps:$4 sm:$0xff]   ;;  %v9157_v32 = vld [vmem:[%s10142_s11 + $0x1198] ss:$72 sps:$4 sm:$0xff]  }
 0x2d6   : > { %6336 = vmatprep.subr.bf16.mxu0 %v9090_v33  ;;  %v9160_v33 = vld [vmem:[%s10142_s11 + $0x8a0] ss:$72 sps:$4 sm:$0xff]  }
 0x2d8   : > { %6255 = vmatpush1.bf16.msra.mxu1 %v9085_v36  ;;  %v9165_v36 = vld [vmem:[%s10142_s11 + $0x122c] ss:$72 sps:$4 sm:$0xff]  }
 0x2d9   : > { %6337 = vmatpush1.bf16.msra.mxu0 %v9088_v37  ;;  %6256 = vmatprep.subr.bf16.mxu1 %v9093_v38  ;;  %v9168_v37 = vld [vmem:[%s10142_s11 + $0x934] ss:$72 sps:$4 sm:$0xff]   ;;  %v9163_v38 = vld [vmem:[%s10142_s11 + $0x1228] ss:$72 sps:$4 sm:$0xff]  }
 0x2da   : > { %6338 = vmatprep.subr.bf16.mxu0 %v9096_v39  ;;  %v9166_v39 = vld [vmem:[%s10142_s11 + $0x930] ss:$72 sps:$4 sm:$0xff]  }
 0x2dc   : > { %6257 = vmatpush1.bf16.msra.mxu1 %v9091_v40  ;;  %v9171_v40 = vld [vmem:[%s10142_s11 + $0x12bc] ss:$72 sps:$4 sm:$0xff]  }
 0x2dd   : > { %6339 = vmatpush1.bf16.msra.mxu0 %v9094_v42  ;;  %6258 = vmatprep.subr.bf16.mxu1 %v9099_v43  ;;  %v9174_v42 = vld [vmem:[%s10142_s11 + $0x9c4] ss:$72 sps:$4 sm:$0xff]   ;;  %v9169_v43 = vld [vmem:[%s10142_s11 + $0x12b8] ss:$72 sps:$4 sm:$0xff]  }
 0x2de   : > { %6340 = vmatprep.subr.bf16.mxu0 %v9102_v44  ;;  %v9172_v44 = vld [vmem:[%s10142_s11 + $0x9c0] ss:$72 sps:$4 sm:$0xff]  }
 0x2df   : > { %v10799_v49 = vpop.f32.mrb[4].mxu0 }
 0x2e0   : > { %v10801_v50 = vpop.f32.mrb[5].mxu0  ;;  %6259 = vmatpush1.bf16.msra.mxu1 %v9097_v45  ;;  %v9177_v45 = vld [vmem:[%s10142_s11 + $0x134c] ss:$72 sps:$4 sm:$0xff]  }
 0x2e1   : > { %v5958_v51 = vpop.f32.mrb[6].mxu0  ;;  %6341 = vmatpush1.bf16.msra.mxu0 %v9100_v46  ;;  %6260 = vmatprep.subr.bf16.mxu1 %v9105_v47  ;;  %v9180_v46 = vld [vmem:[%s10142_s11 + $0xa54] ss:$72 sps:$4 sm:$0xff]   ;;  %v9175_v47 = vld [vmem:[%s10142_s11 + $0x1348] ss:$72 sps:$4 sm:$0xff]  }
 0x2e2   : > { %v5959_v55 = vpop.f32.mrb[7].mxu0  ;;  %6342 = vmatprep.subr.bf16.mxu0 %v9108_v48  ;;  %v9178_v48 = vld [vmem:[%s10142_s11 + $0xa50] ss:$72 sps:$4 sm:$0xff]   ;;  %v9183_v51 = vld [vmem:[%s10142_s11 + $0x13dc] ss:$72 sps:$4 sm:$0xff]  }
 0x2e3   : > { %v9184_v55 = vld [vmem:[%s10142_s11 + $0xae0] ss:$72 sps:$4 sm:$0xff]  }
 0x2e4   : > { %6261 = vmatpush1.bf16.msra.mxu1 %v9103_v52  ;;  %v9186_v52 = vld [vmem:[%s10142_s11 + $0xae4] ss:$72 sps:$4 sm:$0xff]  }
 0x2e5   : > { %6343 = vmatpush1.bf16.msra.mxu0 %v9106_v54  ;;  %6262 = vmatprep.subr.bf16.mxu1 %v9111_v56  ;;  %v9181_v54 = vld [vmem:[%s10142_s11 + $0x13d8] ss:$72 sps:$4 sm:$0xff]   ;;  %v9189_v56 = vld [vmem:[%s10142_s11 + $0x146c] ss:$72 sps:$4 sm:$0xff]  }
 0x2e6   : > { %6344 = vmatprep.subr.bf16.mxu0 %v9114_v58  ;;  %v9192_v58 = vld [vmem:[%s10142_s11 + $0xb74] ss:$72 sps:$4 sm:$0xff]  }
 0x2e8   : > { %6263 = vmatpush1.bf16.msra.mxu1 %v9109_v59  ;;  %v9187_v59 = vld [vmem:[%s10142_s11 + $0x1468] ss:$72 sps:$4 sm:$0xff]  }
 0x2e9   : > { %6345 = vmatpush1.bf16.msra.mxu0 %v9112_v60  ;;  %6264 = vmatprep.subr.bf16.mxu1 %v9117_v61  ;;  %v9190_v60 = vld [vmem:[%s10142_s11 + $0xb70] ss:$72 sps:$4 sm:$0xff]   ;;  %v9195_v61 = vld [vmem:[%s10142_s11 + $0x14fc] ss:$72 sps:$4 sm:$0xff]  }
 0x2ea   : > { %6346 = vmatprep.subr.bf16.mxu0 %v9120_v62  ;;  %v9198_v62 = vld [vmem:[%s10142_s11 + $0xc04] ss:$72 sps:$4 sm:$0xff]  }
 0x2ec   : > { %6265 = vmatpush1.bf16.msra.mxu1 %v9115_v1  ;;  %v9193_v1 = vld [vmem:[%s10142_s11 + $0x14f8] ss:$72 sps:$4 sm:$0xff]  }
 0x2ed   : > { %6347 = vmatpush1.bf16.msra.mxu0 %v9118_v2  ;;  %6266 = vmatprep.subr.bf16.mxu1 %v9123_v3  ;;  %v9196_v2 = vld [vmem:[%s10142_s11 + $0xc00] ss:$72 sps:$4 sm:$0xff]   ;;  %v9201_v3 = vld [vmem:[%s10142_s11 + $0x158c] ss:$72 sps:$4 sm:$0xff]  }
 0x2ee   : > { %6348 = vmatprep.subr.bf16.mxu0 %v9126_v4  ;;  %v9204_v4 = vld [vmem:[%s10142_s11 + $0xc94] ss:$72 sps:$4 sm:$0xff]  }
 0x2f0   : > { %6267 = vmatpush1.bf16.msra.mxu1 %v9121_v5  ;;  %v9199_v5 = vld [vmem:[%s10142_s11 + $0x1588] ss:$72 sps:$4 sm:$0xff]  }
 0x2f1   : > { %6349 = vmatpush1.bf16.msra.mxu0 %v9124_v6  ;;  %6268 = vmatprep.subr.bf16.mxu1 %v9129_v7  ;;  %v9202_v6 = vld [vmem:[%s10142_s11 + $0xc90] ss:$72 sps:$4 sm:$0xff]   ;;  %v9207_v7 = vld [vmem:[%s10142_s11 + $0x161c] ss:$72 sps:$4 sm:$0xff]  }
 0x2f2   : > { %6350 = vmatprep.subr.bf16.mxu0 %v9132_v8  ;;  %v9210_v8 = vld [vmem:[%s10142_s11 + $0xd24] ss:$72 sps:$4 sm:$0xff]  }
 0x2f4   : > { %6269 = vmatpush1.bf16.msra.mxu1 %v9127_v9  ;;  %v9205_v9 = vld [vmem:[%s10142_s11 + $0x1618] ss:$72 sps:$4 sm:$0xff]  }
 0x2f5   : > { %6351 = vmatpush1.bf16.msra.mxu0 %v9130_v10  ;;  %6270 = vmatprep.subr.bf16.mxu1 %v9135_v11  ;;  %v9208_v10 = vld [vmem:[%s10142_s11 + $0xd20] ss:$72 sps:$4 sm:$0xff]   ;;  %v9213_v11 = vld [vmem:[%s10142_s11 + $0x16ac] ss:$72 sps:$4 sm:$0xff]  }
 0x2f6   : > { %6352 = vmatprep.subr.bf16.mxu0 %v9138_v12  ;;  %v9216_v12 = vld [vmem:[%s10142_s11 + $0xdb4] ss:$72 sps:$4 sm:$0xff]  }
 0x2f8   : > { %6271 = vmatpush1.bf16.msra.mxu1 %v9133_v13  ;;  %v9211_v13 = vld [vmem:[%s10142_s11 + $0x16a8] ss:$72 sps:$4 sm:$0xff]  }
 0x2f9   : > { %6353 = vmatpush1.bf16.msra.mxu0 %v9136_v15  ;;  %6272 = vmatprep.subr.bf16.mxu1 %v9141_v19  ;;  %v9214_v15 = vld [vmem:[%s10142_s11 + $0xdb0] ss:$72 sps:$4 sm:$0xff]   ;;  %v9219_v19 = vld [vmem:[%s10142_s11 + $0x173c] ss:$72 sps:$4 sm:$0xff]  }
 0x2fa   : > { %6354 = vmatprep.subr.bf16.mxu0 %v9144_v20  ;;  %v9222_v20 = vld [vmem:[%s10142_s11 + $0xe44] ss:$72 sps:$4 sm:$0xff]  }
 0x2fc   : > { %6273 = vmatpush1.bf16.msra.mxu1 %v9139_v21  ;;  %v9217_v21 = vld [vmem:[%s10142_s11 + $0x1738] ss:$72 sps:$4 sm:$0xff]  }
 0x2fd   : > { %6355 = vmatpush1.bf16.msra.mxu0 %v9142_v22  ;;  %6274 = vmatprep.subr.bf16.mxu1 %v9147_v63  ;;  %v9220_v22 = vld [vmem:[%s10142_s11 + $0xe40] ss:$72 sps:$4 sm:$0xff]   ;;  %v9225_v63 = vld [vmem:[%s10142_s11 + $0x17cc] ss:$72 sps:$4 sm:$0xff]  }
 0x2fe   : > { %6356 = vmatprep.subr.bf16.mxu0 %v9150_v24  ;;  %v9228_v24 = vld [vmem:[%s10142_s11 + $0xed4] ss:$72 sps:$4 sm:$0xff]  }
 0x300   : > { %6275 = vmatpush1.bf16.msra.mxu1 %v9145_v0  ;;  %v9223_v0 = vld [vmem:[%s10142_s11 + $0x17c8] ss:$72 sps:$4 sm:$0xff]  }
 0x301   : > { %6357 = vmatpush1.bf16.msra.mxu0 %v9148_v25  ;;  %6276 = vmatprep.subr.bf16.mxu1 %v9153_v26  ;;  %v9226_v25 = vld [vmem:[%s10142_s11 + $0xed0] ss:$72 sps:$4 sm:$0xff]   ;;  %v9231_v26 = vld [vmem:[%s10142_s11 + $0x185c] ss:$72 sps:$4 sm:$0xff]  }
 0x302   : > { %6358 = vmatprep.subr.bf16.mxu0 %v9156_v27  ;;  %v9234_v27 = vld [vmem:[%s10142_s11 + $0xf64] ss:$72 sps:$4 sm:$0xff]  }
 0x304   : > { %6277 = vmatpush1.bf16.msra.mxu1 %v9151_v28  ;;  %v9229_v28 = vld [vmem:[%s10142_s11 + $0x1858] ss:$72 sps:$4 sm:$0xff]  }
 0x305   : > { %6359 = vmatpush1.bf16.msra.mxu0 %v9154_v29  ;;  %6278 = vmatprep.subr.bf16.mxu1 %v9159_v30  ;;  %v9232_v29 = vld [vmem:[%s10142_s11 + $0xf60] ss:$72 sps:$4 sm:$0xff]   ;;  %v9237_v30 = vld [vmem:[%s10142_s11 + $0x18ec] ss:$72 sps:$4 sm:$0xff]  }
 0x306   : > { %6360 = vmatprep.subr.bf16.mxu0 %v9162_v31  ;;  %v9240_v31 = vld [vmem:[%s10142_s11 + $0xff4] ss:$72 sps:$4 sm:$0xff]  }
 0x308   : > { %6279 = vmatpush1.bf16.msra.mxu1 %v9157_v32  ;;  %v9235_v32 = vld [vmem:[%s10142_s11 + $0x18e8] ss:$72 sps:$4 sm:$0xff]  }
 0x309   : > { %6361 = vmatpush1.bf16.msra.mxu0 %v9160_v33  ;;  %6289 = vmatprep.subr.bf16.mxu1 %v9165_v36  ;;  %v9238_v33 = vld [vmem:[%s10142_s11 + $0xff0] ss:$72 sps:$4 sm:$0xff]   ;;  %v9243_v36 = vld [vmem:[%s10142_s11 + $0x197c] ss:$72 sps:$4 sm:$0xff]  }
 0x30a   : > { %6371 = vmatprep.subr.bf16.mxu0 %v9168_v37  ;;  %v9246_v37 = vld [vmem:[%s10142_s11 + $0x1084] ss:$72 sps:$4 sm:$0xff]  }
 0x30b   : > { %6281 = vmatmul.mubr.bf16.vlgmr.msra.gmra.mrb[12].mxu1 %v10275_v17 }
 0x30c   : > { %6363 = vmatmul.mubr.bf16.vlgmr.msra.gmra.mrb[12].mxu0 %v10273_v16  ;;  %6290 = vmatpush1.bf16.msra.mxu1 %v9163_v38  ;;  %v9241_v38 = vld [vmem:[%s10142_s11 + $0x1978] ss:$72 sps:$4 sm:$0xff]  }
 0x30d   : > { %6372 = vmatpush1.bf16.msra.mxu0 %v9166_v39  ;;  %6291 = vmatprep.subr.bf16.mxu1 %v9171_v40  ;;  %v9244_v39 = vld [vmem:[%s10142_s11 + $0x1080] ss:$72 sps:$4 sm:$0xff]   ;;  %v9249_v40 = vld [vmem:[%s10142_s11 + $0x1a0c] ss:$72 sps:$4 sm:$0xff]  }
 0x30e   : > { %6373 = vmatprep.subr.bf16.mxu0 %v9174_v42  ;;  %6321 = vmatprep.mubr.bf16.mxu1 %v10303_v41  ;;  %v9252_v42 = vld [vmem:[%s10142_s11 + $0x1114] ss:$72 sps:$4 sm:$0xff]  }
 0x30f   : > { %6403 = vmatprep.mubr.bf16.mxu0 %v10247_v57 }
 0x310   : > { %6292 = vmatpush1.bf16.msra.mxu1 %v9169_v43  ;;  %v9247_v43 = vld [vmem:[%s10142_s11 + $0x1a08] ss:$72 sps:$4 sm:$0xff]  }
 0x311   : > { %6374 = vmatpush1.bf16.msra.mxu0 %v9172_v44  ;;  %6293 = vmatprep.subr.bf16.mxu1 %v9177_v45  ;;  %v9250_v44 = vld [vmem:[%s10142_s11 + $0x1110] ss:$72 sps:$4 sm:$0xff]   ;;  %v9255_v45 = vld [vmem:[%s10142_s11 + $0x1a9c] ss:$72 sps:$4 sm:$0xff]  }
 0x312   : > { %6375 = vmatprep.subr.bf16.mxu0 %v9180_v46  ;;  %v9258_v46 = vld [vmem:[%s10142_s11 + $0x11a4] ss:$72 sps:$4 sm:$0xff]  }
 0x314   : > { %6294 = vmatpush1.bf16.msra.mxu1 %v9175_v47  ;;  %v9253_v47 = vld [vmem:[%s10142_s11 + $0x1a98] ss:$72 sps:$4 sm:$0xff]  }
 0x315   : > { %6376 = vmatpush1.bf16.msra.mxu0 %v9178_v48  ;;  %6295 = vmatprep.subr.bf16.mxu1 %v9183_v51  ;;  %v9256_v48 = vld [vmem:[%s10142_s11 + $0x11a0] ss:$72 sps:$4 sm:$0xff]   ;;  %v9261_v51 = vld [vmem:[%s10142_s11 + $0x1234] ss:$72 sps:$4 sm:$0xff]  }
 0x316   : > { %6377 = vmatprep.subr.bf16.mxu0 %v9186_v52  ;;  %v9264_v52 = vld [vmem:[%s10142_s11 + $0x3c] ss:$72 sps:$4 sm:$0xff]  }
 0x318   : > { %6296 = vmatpush1.bf16.msra.mxu1 %v9181_v54  ;;  %v9259_v54 = vld [vmem:[%s10142_s11 + $0x1230] ss:$72 sps:$4 sm:$0xff]  }
 0x319   : > { %6378 = vmatpush1.bf16.msra.mxu0 %v9184_v55  ;;  %6297 = vmatprep.subr.bf16.mxu1 %v9189_v56  ;;  %v9262_v55 = vld [vmem:[%s10142_s11 + $0x38] ss:$72 sps:$4 sm:$0xff]   ;;  %v9267_v56 = vld [vmem:[%s10142_s11 + $0x12c4] ss:$72 sps:$4 sm:$0xff]  }
 0x31a   : > { %6379 = vmatprep.subr.bf16.mxu0 %v9192_v58  ;;  %v9270_v58 = vld [vmem:[%s10142_s11 + $0xcc] ss:$72 sps:$4 sm:$0xff]  }
 0x31c   : > { %6298 = vmatpush1.bf16.msra.mxu1 %v9187_v59  ;;  %v9265_v59 = vld [vmem:[%s10142_s11 + $0x12c0] ss:$72 sps:$4 sm:$0xff]  }
 0x31d   : > { %6380 = vmatpush1.bf16.msra.mxu0 %v9190_v60  ;;  %6299 = vmatprep.subr.bf16.mxu1 %v9195_v61  ;;  %v9268_v60 = vld [vmem:[%s10142_s11 + $0xc8] ss:$72 sps:$4 sm:$0xff]   ;;  %v9273_v61 = vld [vmem:[%s10142_s11 + $0x1354] ss:$72 sps:$4 sm:$0xff]  }
 0x31e   : > { %6381 = vmatprep.subr.bf16.mxu0 %v9198_v62  ;;  %v9276_v62 = vld [vmem:[%s10142_s11 + $0x15c] ss:$72 sps:$4 sm:$0xff]  }
 0x320   : > { %6300 = vmatpush1.bf16.msra.mxu1 %v9193_v1  ;;  %v9271_v1 = vld [vmem:[%s10142_s11 + $0x1350] ss:$72 sps:$4 sm:$0xff]  }
 0x321   : > { %6382 = vmatpush1.bf16.msra.mxu0 %v9196_v2  ;;  %6301 = vmatprep.subr.bf16.mxu1 %v9201_v3  ;;  %v9274_v2 = vld [vmem:[%s10142_s11 + $0x158] ss:$72 sps:$4 sm:$0xff]   ;;  %v9279_v3 = vld [vmem:[%s10142_s11 + $0x13e4] ss:$72 sps:$4 sm:$0xff]  }
 0x322   : > { %6383 = vmatprep.subr.bf16.mxu0 %v9204_v4  ;;  %v9282_v4 = vld [vmem:[%s10142_s11 + $0x1ec] ss:$72 sps:$4 sm:$0xff]  }
 0x324   : > { %6302 = vmatpush1.bf16.msra.mxu1 %v9199_v5  ;;  %v9277_v5 = vld [vmem:[%s10142_s11 + $0x13e0] ss:$72 sps:$4 sm:$0xff]  }
 0x325   : > { %6384 = vmatpush1.bf16.msra.mxu0 %v9202_v6  ;;  %6303 = vmatprep.subr.bf16.mxu1 %v9207_v7  ;;  %v9280_v6 = vld [vmem:[%s10142_s11 + $0x1e8] ss:$72 sps:$4 sm:$0xff]   ;;  %v9285_v7 = vld [vmem:[%s10142_s11 + $0x1474] ss:$72 sps:$4 sm:$0xff]  }
 0x326   : > { %6385 = vmatprep.subr.bf16.mxu0 %v9210_v8  ;;  %v9288_v8 = vld [vmem:[%s10142_s11 + $0x27c] ss:$72 sps:$4 sm:$0xff]  }
 0x328   : > { %6304 = vmatpush1.bf16.msra.mxu1 %v9205_v9  ;;  %v9283_v9 = vld [vmem:[%s10142_s11 + $0x1470] ss:$72 sps:$4 sm:$0xff]  }
 0x329   : > { %6386 = vmatpush1.bf16.msra.mxu0 %v9208_v10  ;;  %6305 = vmatprep.subr.bf16.mxu1 %v9213_v11  ;;  %v9286_v10 = vld [vmem:[%s10142_s11 + $0x278] ss:$72 sps:$4 sm:$0xff]   ;;  %v9291_v11 = vld [vmem:[%s10142_s11 + $0x1504] ss:$72 sps:$4 sm:$0xff]  }
 0x32a   : > { %6387 = vmatprep.subr.bf16.mxu0 %v9216_v12  ;;  %v9294_v12 = vld [vmem:[%s10142_s11 + $0x30c] ss:$72 sps:$4 sm:$0xff]  }
 0x32c   : > { %6306 = vmatpush1.bf16.msra.mxu1 %v9211_v13  ;;  %v9289_v13 = vld [vmem:[%s10142_s11 + $0x1500] ss:$72 sps:$4 sm:$0xff]  }
 0x32d   : > { %6388 = vmatpush1.bf16.msra.mxu0 %v9214_v15  ;;  %6307 = vmatprep.subr.bf16.mxu1 %v9219_v19  ;;  %v9292_v15 = vld [vmem:[%s10142_s11 + $0x308] ss:$72 sps:$4 sm:$0xff]   ;;  %v9297_v19 = vld [vmem:[%s10142_s11 + $0x1594] ss:$72 sps:$4 sm:$0xff]  }
 0x32e   : > { %6389 = vmatprep.subr.bf16.mxu0 %v9222_v20  ;;  %v9300_v20 = vld [vmem:[%s10142_s11 + $0x39c] ss:$72 sps:$4 sm:$0xff]  }
 0x330   : > { %6308 = vmatpush1.bf16.msra.mxu1 %v9217_v21 }
 0x331   : > { %6390 = vmatpush1.bf16.msra.mxu0 %v9220_v22  ;;  %6309 = vmatprep.subr.bf16.mxu1 %v9225_v63 }
 0x332   : > { %6391 = vmatprep.subr.bf16.mxu0 %v9228_v24  ;;  %v9295_v24 = vld [vmem:[%s10142_s11 + $0x1590] ss:$72 sps:$4 sm:$0xff]  }
 0x334   : > { %6310 = vmatpush1.bf16.msra.mxu1 %v9223_v0  ;;  %v9298_v0 = vld [vmem:[%s10142_s11 + $0x398] ss:$72 sps:$4 sm:$0xff]  }
 0x335   : > { %6392 = vmatpush1.bf16.msra.mxu0 %v9226_v25  ;;  %6311 = vmatprep.subr.bf16.mxu1 %v9231_v26  ;;  %v9303_v26 = vld [vmem:[%s10142_s11 + $0x1624] ss:$72 sps:$4 sm:$0xff]  }
 0x336   : > { %6393 = vmatprep.subr.bf16.mxu0 %v9234_v27  ;;  %v9306_v27 = vld [vmem:[%s10142_s11 + $0x42c] ss:$72 sps:$4 sm:$0xff]  }
 0x338   : > { %6312 = vmatpush1.bf16.msra.mxu1 %v9229_v28  ;;  %v9301_v28 = vld [vmem:[%s10142_s11 + $0x1620] ss:$72 sps:$4 sm:$0xff]  }
 0x339   : > { %6394 = vmatpush1.bf16.msra.mxu0 %v9232_v29  ;;  %6313 = vmatprep.subr.bf16.mxu1 %v9237_v30  ;;  %v9304_v29 = vld [vmem:[%s10142_s11 + $0x428] ss:$72 sps:$4 sm:$0xff]   ;;  %v9309_v30 = vld [vmem:[%s10142_s11 + $0x16b4] ss:$72 sps:$4 sm:$0xff]  }
 0x33a   : > { %6395 = vmatprep.subr.bf16.mxu0 %v9240_v31  ;;  %v9312_v31 = vld [vmem:[%s10142_s11 + $0x4bc] ss:$72 sps:$4 sm:$0xff]  }
 0x33c   : > { %6314 = vmatpush1.bf16.msra.mxu1 %v9235_v32  ;;  %v9307_v32 = vld [vmem:[%s10142_s11 + $0x16b0] ss:$72 sps:$4 sm:$0xff]  }
 0x33d   : > { %6396 = vmatpush1.bf16.msra.mxu0 %v9238_v33  ;;  %6315 = vmatprep.subr.bf16.mxu1 %v9243_v36  ;;  %v9310_v33 = vld [vmem:[%s10142_s11 + $0x4b8] ss:$72 sps:$4 sm:$0xff]   ;;  %v9315_v36 = vld [vmem:[%s10142_s11 + $0x1744] ss:$72 sps:$4 sm:$0xff]  }
 0x33e   : > { %6397 = vmatprep.subr.bf16.mxu0 %v9246_v37  ;;  %v9318_v37 = vld [vmem:[%s10142_s11 + $0x54c] ss:$72 sps:$4 sm:$0xff]  }
 0x340   : > { %6316 = vmatpush1.bf16.msra.mxu1 %v9241_v38  ;;  %v9313_v38 = vld [vmem:[%s10142_s11 + $0x1740] ss:$72 sps:$4 sm:$0xff]  }
 0x341   : > { %6398 = vmatpush1.bf16.msra.mxu0 %v9244_v39  ;;  %6317 = vmatprep.subr.bf16.mxu1 %v9249_v40  ;;  %v9316_v39 = vld [vmem:[%s10142_s11 + $0x548] ss:$72 sps:$4 sm:$0xff]   ;;  %v9321_v40 = vld [vmem:[%s10142_s11 + $0x17d4] ss:$72 sps:$4 sm:$0xff]  }
 0x342   : > { %6399 = vmatprep.subr.bf16.mxu0 %v9252_v42  ;;  %v9324_v42 = vld [vmem:[%s10142_s11 + $0x5dc] ss:$72 sps:$4 sm:$0xff]  }
 0x344   : > { %6318 = vmatpush1.bf16.msra.mxu1 %v9247_v43  ;;  %v9319_v43 = vld [vmem:[%s10142_s11 + $0x17d0] ss:$72 sps:$4 sm:$0xff]  }
 0x345   : > { %6400 = vmatpush1.bf16.msra.mxu0 %v9250_v44  ;;  %6319 = vmatprep.subr.bf16.mxu1 %v9255_v45  ;;  %v9322_v44 = vld [vmem:[%s10142_s11 + $0x5d8] ss:$72 sps:$4 sm:$0xff]   ;;  %v9327_v45 = vld [vmem:[%s10142_s11 + $0x1864] ss:$72 sps:$4 sm:$0xff]  }
 0x346   : > { %6401 = vmatprep.subr.bf16.mxu0 %v9258_v46  ;;  %v9330_v46 = vld [vmem:[%s10142_s11 + $0x66c] ss:$72 sps:$4 sm:$0xff]  }
 0x348   : > { %6320 = vmatpush1.bf16.msra.mxu1 %v9253_v47  ;;  %v9325_v47 = vld [vmem:[%s10142_s11 + $0x1860] ss:$72 sps:$4 sm:$0xff]  }
 0x349   : > { %6402 = vmatpush1.bf16.msra.mxu0 %v9256_v48  ;;  %6453 = vmatprep.subr.bf16.mxu1 %v9264_v52  ;;  %v9328_v48 = vld [vmem:[%s10142_s11 + $0x668] ss:$72 sps:$4 sm:$0xff]   ;;  %v9336_v52 = vld [vmem:[%s10142_s11 + $0x6fc] ss:$72 sps:$4 sm:$0xff]  }
 0x34a   : > { %6412 = vmatprep.subr.bf16.mxu0 %v9261_v51  ;;  %v9333_v51 = vld [vmem:[%s10142_s11 + $0x18f4] ss:$72 sps:$4 sm:$0xff]  }
 0x34b   : > { %6322 = vmatmul.mubr.bf16.vlgmr.msra.gmra.mrb[12].mxu1 %v10347_v23 }
 0x34c   : > { %6404 = vmatmul.mubr.bf16.vlgmr.msra.gmra.mrb[12].mxu0 %v10275_v17  ;;  %6454 = vmatpush1.bf16.msra.mxu1 %v9262_v55  ;;  %v9334_v55 = vld [vmem:[%s10142_s11 + $0x6f8] ss:$72 sps:$4 sm:$0xff]  }
 0x34d   : > { %6413 = vmatpush1.bf16.msra.mxu0 %v9259_v54  ;;  %6455 = vmatprep.subr.bf16.mxu1 %v9270_v58  ;;  %v9331_v54 = vld [vmem:[%s10142_s11 + $0x18f0] ss:$72 sps:$4 sm:$0xff]   ;;  %v9342_v58 = vld [vmem:[%s10142_s11 + $0x78c] ss:$72 sps:$4 sm:$0xff]  }
 0x34e   : > { %6414 = vmatprep.subr.bf16.mxu0 %v9267_v56  ;;  %6444 = vmatprep.mubr.bf16.mxu0 %v10303_v41  ;;  %v9339_v56 = vld [vmem:[%s10142_s11 + $0x1984] ss:$72 sps:$4 sm:$0xff]  }
 0x34f   : > { %6485 = vmatprep.mubr.bf16.mxu1 %v10242_v53 }
 0x350   : > { %6456 = vmatpush1.bf16.msra.mxu1 %v9268_v60  ;;  %v9340_v60 = vld [vmem:[%s10142_s11 + $0x788] ss:$72 sps:$4 sm:$0xff]  }
 0x351   : > { %6415 = vmatpush1.bf16.msra.mxu0 %v9265_v59  ;;  %6457 = vmatprep.subr.bf16.mxu1 %v9276_v62  ;;  %v9337_v59 = vld [vmem:[%s10142_s11 + $0x1980] ss:$72 sps:$4 sm:$0xff]   ;;  %v9348_v62 = vld [vmem:[%s10142_s11 + $0x81c] ss:$72 sps:$4 sm:$0xff]  }
 0x352   : > { %6416 = vmatprep.subr.bf16.mxu0 %v9273_v61  ;;  %v9345_v61 = vld [vmem:[%s10142_s11 + $0x1a14] ss:$72 sps:$4 sm:$0xff]  }
 0x354   : > { %6458 = vmatpush1.bf16.msra.mxu1 %v9274_v2  ;;  %v9346_v2 = vld [vmem:[%s10142_s11 + $0x818] ss:$72 sps:$4 sm:$0xff]  }
 0x355   : > { %6417 = vmatpush1.bf16.msra.mxu0 %v9271_v1  ;;  %6459 = vmatprep.subr.bf16.mxu1 %v9282_v4  ;;  %v9343_v1 = vld [vmem:[%s10142_s11 + $0x1a10] ss:$72 sps:$4 sm:$0xff]   ;;  %v9354_v4 = vld [vmem:[%s10142_s11 + $0x8ac] ss:$72 sps:$4 sm:$0xff]  }
 0x356   : > { %6418 = vmatprep.subr.bf16.mxu0 %v9279_v3  ;;  %v9351_v3 = vld [vmem:[%s10142_s11 + $0x1aa4] ss:$72 sps:$4 sm:$0xff]  }
 0x358   : > { %6460 = vmatpush1.bf16.msra.mxu1 %v9280_v6  ;;  %v9352_v6 = vld [vmem:[%s10142_s11 + $0x8a8] ss:$72 sps:$4 sm:$0xff]  }
 0x359   : > { %6419 = vmatpush1.bf16.msra.mxu0 %v9277_v5  ;;  %6461 = vmatprep.subr.bf16.mxu1 %v9288_v8  ;;  %v9349_v5 = vld [vmem:[%s10142_s11 + $0x1aa0] ss:$72 sps:$4 sm:$0xff]   ;;  %v9360_v8 = vld [vmem:[%s10142_s11 + $0x44] ss:$72 sps:$4 sm:$0xff]  }
 0x35a   : > { %6420 = vmatprep.subr.bf16.mxu0 %v9285_v7  ;;  %v9357_v7 = vld [vmem:[%s10142_s11 + $0x93c] ss:$72 sps:$4 sm:$0xff]  }
 0x35c   : > { %6462 = vmatpush1.bf16.msra.mxu1 %v9286_v10  ;;  %v9358_v10 = vld [vmem:[%s10142_s11 + $0x40] ss:$72 sps:$4 sm:$0xff]  }
 0x35d   : > { %6421 = vmatpush1.bf16.msra.mxu0 %v9283_v9  ;;  %6463 = vmatprep.subr.bf16.mxu1 %v9294_v12  ;;  %v9355_v9 = vld [vmem:[%s10142_s11 + $0x938] ss:$72 sps:$4 sm:$0xff]   ;;  %v9366_v12 = vld [vmem:[%s10142_s11 + $0xd4] ss:$72 sps:$4 sm:$0xff]  }
 0x35e   : > { %6422 = vmatprep.subr.bf16.mxu0 %v9291_v11  ;;  %v10939_v21 = vpop.f32.mrb[8].mxu1  ;;  %v9363_v11 = vld [vmem:[%s10142_s11 + $0x9cc] ss:$72 sps:$4 sm:$0xff]  }
 0x35f   : > { %v10941_v22 = vpop.f32.mrb[9].mxu1 }
 0x360   : > { %v6081_v63 = vpop.f32.mrb[10].mxu1  ;;  %6464 = vmatpush1.bf16.msra.mxu1 %v9292_v15  ;;  %v9364_v15 = vld [vmem:[%s10142_s11 + $0xd0] ss:$72 sps:$4 sm:$0xff]  }
 0x361   : > { %6423 = vmatpush1.bf16.msra.mxu0 %v9289_v13  ;;  %v6082_v25 = vpop.f32.mrb[11].mxu1  ;;  %6465 = vmatprep.subr.bf16.mxu1 %v9300_v20  ;;  %v9361_v13 = vld [vmem:[%s10142_s11 + $0x9c8] ss:$72 sps:$4 sm:$0xff]   ;;  %v9372_v20 = vld [vmem:[%s10142_s11 + $0x164] ss:$72 sps:$4 sm:$0xff]  }
 0x362   : > { %6424 = vmatprep.subr.bf16.mxu0 %v9297_v19  ;;  %v9369_v19 = vld [vmem:[%s10142_s11 + $0xa5c] ss:$72 sps:$4 sm:$0xff]   ;;  %v9367_v63 = vld [vmem:[%s10142_s11 + $0xa58] ss:$72 sps:$4 sm:$0xff]  }
 0x363   : > { %v9378_v25 = vld [vmem:[%s10142_s11 + $0x1f4] ss:$72 sps:$4 sm:$0xff]  }
 0x364   : > { %6466 = vmatpush1.bf16.msra.mxu1 %v9298_v0  ;;  %v9375_v0 = vld [vmem:[%s10142_s11 + $0xaec] ss:$72 sps:$4 sm:$0xff]  }
 0x365   : > { %6425 = vmatpush1.bf16.msra.mxu0 %v9295_v24  ;;  %6467 = vmatprep.subr.bf16.mxu1 %v9306_v27  ;;  %v9370_v24 = vld [vmem:[%s10142_s11 + $0x160] ss:$72 sps:$4 sm:$0xff]   ;;  %v9376_v27 = vld [vmem:[%s10142_s11 + $0x1f0] ss:$72 sps:$4 sm:$0xff]  }
 0x366   : > { %6426 = vmatprep.subr.bf16.mxu0 %v9303_v26  ;;  %v9373_v26 = vld [vmem:[%s10142_s11 + $0xae8] ss:$72 sps:$4 sm:$0xff]  }
 0x368   : > { %6468 = vmatpush1.bf16.msra.mxu1 %v9304_v29  ;;  %v9379_v29 = vld [vmem:[%s10142_s11 + $0xb78] ss:$72 sps:$4 sm:$0xff]  }
 0x369   : > { %6427 = vmatpush1.bf16.msra.mxu0 %v9301_v28  ;;  %6469 = vmatprep.subr.bf16.mxu1 %v9312_v31  ;;  %v9384_v28 = vld [vmem:[%s10142_s11 + $0x284] ss:$72 sps:$4 sm:$0xff]  }
 0x36a   : > { %6428 = vmatprep.subr.bf16.mxu0 %v9309_v30  ;;  %v9382_v30 = vld [vmem:[%s10142_s11 + $0x280] ss:$72 sps:$4 sm:$0xff]   ;;  %v9387_v31 = vld [vmem:[%s10142_s11 + $0xc0c] ss:$72 sps:$4 sm:$0xff]  }
 0x36c   : > { %6470 = vmatpush1.bf16.msra.mxu1 %v9310_v33  ;;  %v9385_v33 = vld [vmem:[%s10142_s11 + $0xc08] ss:$72 sps:$4 sm:$0xff]  }
 0x36d   : > { %6429 = vmatpush1.bf16.msra.mxu0 %v9307_v32  ;;  %6471 = vmatprep.subr.bf16.mxu1 %v9318_v37  ;;  %v9390_v32 = vld [vmem:[%s10142_s11 + $0x314] ss:$72 sps:$4 sm:$0xff]  }
 0x36e   : > { %6430 = vmatprep.subr.bf16.mxu0 %v9315_v36  ;;  %v9388_v36 = vld [vmem:[%s10142_s11 + $0x310] ss:$72 sps:$4 sm:$0xff]   ;;  %v9393_v37 = vld [vmem:[%s10142_s11 + $0xc9c] ss:$72 sps:$4 sm:$0xff]  }
 0x370   : > { %6472 = vmatpush1.bf16.msra.mxu1 %v9316_v39 }
 0x371   : > { %6431 = vmatpush1.bf16.msra.mxu0 %v9313_v38  ;;  %6473 = vmatprep.subr.bf16.mxu1 %v9324_v42  ;;  %v9396_v38 = vld [vmem:[%s10142_s11 + $0x3a4] ss:$72 sps:$4 sm:$0xff]  }
 0x372   : > { %6432 = vmatprep.subr.bf16.mxu0 %v9321_v40 }
 0x374   : > { %6474 = vmatpush1.bf16.msra.mxu1 %v9322_v44  ;;  %v9394_v44 = vld [vmem:[%s10142_s11 + $0x3a0] ss:$72 sps:$4 sm:$0xff]  }
 0x375   : > { %6433 = vmatpush1.bf16.msra.mxu0 %v9319_v43  ;;  %6475 = vmatprep.subr.bf16.mxu1 %v9330_v46  ;;  %v9391_v43 = vld [vmem:[%s10142_s11 + $0xc98] ss:$72 sps:$4 sm:$0xff]   ;;  %v9399_v46 = vld [vmem:[%s10142_s11 + $0xd2c] ss:$72 sps:$4 sm:$0xff]  }
 0x376   : > { %6434 = vmatprep.subr.bf16.mxu0 %v9327_v45 }
 0x378   : > { %6476 = vmatpush1.bf16.msra.mxu1 %v9328_v48  ;;  %v9397_v48 = vld [vmem:[%s10142_s11 + $0xd28] ss:$72 sps:$4 sm:$0xff]  }
 0x379   : > { %6435 = vmatpush1.bf16.msra.mxu0 %v9325_v47  ;;  %6477 = vmatprep.subr.bf16.mxu1 %v9336_v52  ;;  %v9402_v47 = vld [vmem:[%s10142_s11 + $0x434] ss:$72 sps:$4 sm:$0xff]  }
 0x37a   : > { %6436 = vmatprep.subr.bf16.mxu0 %v9333_v51  ;;  %v9400_v51 = vld [vmem:[%s10142_s11 + $0x430] ss:$72 sps:$4 sm:$0xff]   ;;  %v9405_v52 = vld [vmem:[%s10142_s11 + $0xdbc] ss:$72 sps:$4 sm:$0xff]  }
 0x37c   : > { %6478 = vmatpush1.bf16.msra.mxu1 %v9334_v55  ;;  %v9403_v55 = vld [vmem:[%s10142_s11 + $0xdb8] ss:$72 sps:$4 sm:$0xff]  }
 0x37d   : > { %6437 = vmatpush1.bf16.msra.mxu0 %v9331_v54  ;;  %6479 = vmatprep.subr.bf16.mxu1 %v9342_v58  ;;  %v9408_v54 = vld [vmem:[%s10142_s11 + $0x4c4] ss:$72 sps:$4 sm:$0xff]  }
 0x37e   : > { %6438 = vmatprep.subr.bf16.mxu0 %v9339_v56  ;;  %v9406_v56 = vld [vmem:[%s10142_s11 + $0x4c0] ss:$72 sps:$4 sm:$0xff]   ;;  %v9411_v58 = vld [vmem:[%s10142_s11 + $0xe4c] ss:$72 sps:$4 sm:$0xff]  }
 0x380   : > { %6480 = vmatpush1.bf16.msra.mxu1 %v9340_v60  ;;  %v9409_v60 = vld [vmem:[%s10142_s11 + $0xe48] ss:$72 sps:$4 sm:$0xff]  }
 0x381   : > { %6439 = vmatpush1.bf16.msra.mxu0 %v9337_v59  ;;  %6481 = vmatprep.subr.bf16.mxu1 %v9348_v62  ;;  %v9414_v59 = vld [vmem:[%s10142_s11 + $0x554] ss:$72 sps:$4 sm:$0xff]  }
 0x382   : > { %6440 = vmatprep.subr.bf16.mxu0 %v9345_v61  ;;  %v9412_v61 = vld [vmem:[%s10142_s11 + $0x550] ss:$72 sps:$4 sm:$0xff]   ;;  %v9417_v62 = vld [vmem:[%s10142_s11 + $0xedc] ss:$72 sps:$4 sm:$0xff]  }
 0x384   : > { %6482 = vmatpush1.bf16.msra.mxu1 %v9346_v2  ;;  %v9415_v2 = vld [vmem:[%s10142_s11 + $0xed8] ss:$72 sps:$4 sm:$0xff]  }
 0x385   : > { %6441 = vmatpush1.bf16.msra.mxu0 %v9343_v1  ;;  %6483 = vmatprep.subr.bf16.mxu1 %v9354_v4  ;;  %v9420_v1 = vld [vmem:[%s10142_s11 + $0x5e4] ss:$72 sps:$4 sm:$0xff]  }
 0x386   : > { %6442 = vmatprep.subr.bf16.mxu0 %v9351_v3  ;;  %v9418_v3 = vld [vmem:[%s10142_s11 + $0x5e0] ss:$72 sps:$4 sm:$0xff]   ;;  %v9423_v4 = vld [vmem:[%s10142_s11 + $0xf6c] ss:$72 sps:$4 sm:$0xff]  }
 0x388   : > { %6484 = vmatpush1.bf16.msra.mxu1 %v9352_v6  ;;  %v9421_v6 = vld [vmem:[%s10142_s11 + $0xf68] ss:$72 sps:$4 sm:$0xff]  }
 0x389   : > { %6443 = vmatpush1.bf16.msra.mxu0 %v9349_v5  ;;  %6494 = vmatprep.subr.bf16.mxu1 %v9357_v7  ;;  %v9426_v5 = vld [vmem:[%s10142_s11 + $0x674] ss:$72 sps:$4 sm:$0xff]   ;;  %v9424_v7 = vld [vmem:[%s10142_s11 + $0x670] ss:$72 sps:$4 sm:$0xff]  }
 0x38a   : > { %6576 = vmatprep.subr.bf16.mxu0 %v9360_v8  ;;  %v9429_v8 = vld [vmem:[%s10142_s11 + $0xffc] ss:$72 sps:$4 sm:$0xff]  }
 0x38b   : > { %6486 = vmatmul.mubr.bf16.vlgmr.msra.gmra.mrb[16].mxu1 %v10273_v16 }
 0x38c   : > { %6445 = vmatmul.mubr.bf16.vlgmr.msra.gmra.mrb[12].mxu0 %v10347_v23  ;;  %6495 = vmatpush1.bf16.msra.mxu1 %v9355_v9  ;;  %v9432_v9 = vld [vmem:[%s10142_s11 + $0x704] ss:$72 sps:$4 sm:$0xff]  }
 0x38d   : > { %6577 = vmatpush1.bf16.msra.mxu0 %v9358_v10  ;;  %6496 = vmatprep.subr.bf16.mxu1 %v9363_v11  ;;  %v9427_v10 = vld [vmem:[%s10142_s11 + $0xff8] ss:$72 sps:$4 sm:$0xff]  }
 0x38e   : > { %6578 = vmatprep.subr.bf16.mxu0 %v9366_v12  ;;  %6526 = vmatprep.mubr.bf16.mxu1 %v10247_v57  ;;  %v9430_v11 = vld [vmem:[%s10142_s11 + $0x700] ss:$72 sps:$4 sm:$0xff]   ;;  %v9435_v12 = vld [vmem:[%s10142_s11 + $0x108c] ss:$72 sps:$4 sm:$0xff]  }
 0x38f   : > { %6608 = vmatprep.mubr.bf16.mxu0 %v10242_v53  ;;  %v9381_v53 = vld [vmem:[%s10142_s11 + $0xb7c] ss:$72 sps:$4 sm:$0xff]  }
 0x390   : > { %6497 = vmatpush1.bf16.msra.mxu1 %v9361_v13  ;;  %v9438_v13 = vld [vmem:[%s10142_s11 + $0x794] ss:$72 sps:$4 sm:$0xff]  }
 0x391   : > { %6579 = vmatpush1.bf16.msra.mxu0 %v9364_v15  ;;  %6498 = vmatprep.subr.bf16.mxu1 %v9369_v19  ;;  %v9433_v15 = vld [vmem:[%s10142_s11 + $0x1088] ss:$72 sps:$4 sm:$0xff]  }
 0x392   : > { %6580 = vmatprep.subr.bf16.mxu0 %v9372_v20  ;;  %v9436_v19 = vld [vmem:[%s10142_s11 + $0x790] ss:$72 sps:$4 sm:$0xff]   ;;  %v9441_v20 = vld [vmem:[%s10142_s11 + $0x111c] ss:$72 sps:$4 sm:$0xff]  }
 0x394   : > { %6499 = vmatpush1.bf16.msra.mxu1 %v9367_v63  ;;  %v9444_v63 = vld [vmem:[%s10142_s11 + $0x824] ss:$72 sps:$4 sm:$0xff]  }
 0x395   : > { %6581 = vmatpush1.bf16.msra.mxu0 %v9370_v24  ;;  %6500 = vmatprep.subr.bf16.mxu1 %v9375_v0  ;;  %v9439_v24 = vld [vmem:[%s10142_s11 + $0x1118] ss:$72 sps:$4 sm:$0xff]  }
 0x396   : > { %6582 = vmatprep.subr.bf16.mxu0 %v9378_v25  ;;  %v9442_v0 = vld [vmem:[%s10142_s11 + $0x820] ss:$72 sps:$4 sm:$0xff]   ;;  %v9447_v25 = vld [vmem:[%s10142_s11 + $0x11ac] ss:$72 sps:$4 sm:$0xff]  }
 0x398   : > { %6501 = vmatpush1.bf16.msra.mxu1 %v9373_v26  ;;  %v9450_v26 = vld [vmem:[%s10142_s11 + $0x8b4] ss:$72 sps:$4 sm:$0xff]  }
 0x399   : > { %6583 = vmatpush1.bf16.msra.mxu0 %v9376_v27  ;;  %6502 = vmatprep.subr.bf16.mxu1 %v9381_v53  ;;  %v9445_v27 = vld [vmem:[%s10142_s11 + $0x11a8] ss:$72 sps:$4 sm:$0xff]  }
 0x39a   : > { %6584 = vmatprep.subr.bf16.mxu0 %v9384_v28  ;;  %v9448_v53 = vld [vmem:[%s10142_s11 + $0x8b0] ss:$72 sps:$4 sm:$0xff]   ;;  %v9453_v28 = vld [vmem:[%s10142_s11 + $0x123c] ss:$72 sps:$4 sm:$0xff]  }
 0x39c   : > { %6503 = vmatpush1.bf16.msra.mxu1 %v9379_v29  ;;  %v9456_v29 = vld [vmem:[%s10142_s11 + $0x944] ss:$72 sps:$4 sm:$0xff]  }
 0x39d   : > { %6585 = vmatpush1.bf16.msra.mxu0 %v9382_v30  ;;  %6504 = vmatprep.subr.bf16.mxu1 %v9387_v31  ;;  %v9451_v30 = vld [vmem:[%s10142_s11 + $0x1238] ss:$72 sps:$4 sm:$0xff]  }
 0x39e   : > { %6586 = vmatprep.subr.bf16.mxu0 %v9390_v32  ;;  %v9454_v31 = vld [vmem:[%s10142_s11 + $0x940] ss:$72 sps:$4 sm:$0xff]   ;;  %v9459_v32 = vld [vmem:[%s10142_s11 + $0x12cc] ss:$72 sps:$4 sm:$0xff]  }
 0x39f   : > { %v11011_v39 = vpop.f32.mrb[8].mxu0 }
 0x3a0   : > { %v11013_v40 = vpop.f32.mrb[9].mxu0  ;;  %6505 = vmatpush1.bf16.msra.mxu1 %v9385_v33  ;;  %v9462_v33 = vld [vmem:[%s10142_s11 + $0x9d4] ss:$72 sps:$4 sm:$0xff]  }
 0x3a1   : > { %v6204_v42 = vpop.f32.mrb[10].mxu0  ;;  %6587 = vmatpush1.bf16.msra.mxu0 %v9388_v36  ;;  %6506 = vmatprep.subr.bf16.mxu1 %v9393_v37  ;;  %v9457_v36 = vld [vmem:[%s10142_s11 + $0x12c8] ss:$72 sps:$4 sm:$0xff]  }
 0x3a2   : > { %v6205_v45 = vpop.f32.mrb[11].mxu0  ;;  %6588 = vmatprep.subr.bf16.mxu0 %v9396_v38  ;;  %v9460_v37 = vld [vmem:[%s10142_s11 + $0x9d0] ss:$72 sps:$4 sm:$0xff]   ;;  %v9465_v38 = vld [vmem:[%s10142_s11 + $0x135c] ss:$72 sps:$4 sm:$0xff]  }
 0x3a3   : > { %v9468_v42 = vld [vmem:[%s10142_s11 + $0xa64] ss:$72 sps:$4 sm:$0xff]   ;;  %v9474_v45 = vld [vmem:[%s10142_s11 + $0xaf4] ss:$72 sps:$4 sm:$0xff]  }
 0x3a4   : > { %6507 = vmatpush1.bf16.msra.mxu1 %v9391_v43  ;;  %v9466_v43 = vld [vmem:[%s10142_s11 + $0xa60] ss:$72 sps:$4 sm:$0xff]  }
 0x3a5   : > { %6589 = vmatpush1.bf16.msra.mxu0 %v9394_v44  ;;  %6508 = vmatprep.subr.bf16.mxu1 %v9399_v46  ;;  %v9471_v44 = vld [vmem:[%s10142_s11 + $0x13ec] ss:$72 sps:$4 sm:$0xff]   ;;  %v9469_v46 = vld [vmem:[%s10142_s11 + $0x13e8] ss:$72 sps:$4 sm:$0xff]  }
 0x3a6   : > { %6590 = vmatprep.subr.bf16.mxu0 %v9402_v47  ;;  %v9472_v47 = vld [vmem:[%s10142_s11 + $0xaf0] ss:$72 sps:$4 sm:$0xff]  }
 0x3a8   : > { %6509 = vmatpush1.bf16.msra.mxu1 %v9397_v48  ;;  %v9480_v48 = vld [vmem:[%s10142_s11 + $0xb84] ss:$72 sps:$4 sm:$0xff]  }
 0x3a9   : > { %6591 = vmatpush1.bf16.msra.mxu0 %v9400_v51  ;;  %6510 = vmatprep.subr.bf16.mxu1 %v9405_v52  ;;  %v9475_v51 = vld [vmem:[%s10142_s11 + $0x1478] ss:$72 sps:$4 sm:$0xff]  }
 0x3aa   : > { %6592 = vmatprep.subr.bf16.mxu0 %v9408_v54  ;;  %v9478_v52 = vld [vmem:[%s10142_s11 + $0xb80] ss:$72 sps:$4 sm:$0xff]   ;;  %v9483_v54 = vld [vmem:[%s10142_s11 + $0x150c] ss:$72 sps:$4 sm:$0xff]  }
 0x3ac   : > { %6511 = vmatpush1.bf16.msra.mxu1 %v9403_v55  ;;  %v9486_v55 = vld [vmem:[%s10142_s11 + $0xc14] ss:$72 sps:$4 sm:$0xff]  }
 0x3ad   : > { %6593 = vmatpush1.bf16.msra.mxu0 %v9406_v56  ;;  %6512 = vmatprep.subr.bf16.mxu1 %v9411_v58  ;;  %v9481_v56 = vld [vmem:[%s10142_s11 + $0x1508] ss:$72 sps:$4 sm:$0xff]  }
 0x3ae   : > { %6594 = vmatprep.subr.bf16.mxu0 %v9414_v59  ;;  %v9484_v58 = vld [vmem:[%s10142_s11 + $0xc10] ss:$72 sps:$4 sm:$0xff]   ;;  %v9489_v59 = vld [vmem:[%s10142_s11 + $0x159c] ss:$72 sps:$4 sm:$0xff]  }
 0x3b0   : > { %6513 = vmatpush1.bf16.msra.mxu1 %v9409_v60  ;;  %v9492_v60 = vld [vmem:[%s10142_s11 + $0xca4] ss:$72 sps:$4 sm:$0xff]  }
 0x3b1   : > { %6595 = vmatpush1.bf16.msra.mxu0 %v9412_v61  ;;  %6514 = vmatprep.subr.bf16.mxu1 %v9417_v62  ;;  %v9487_v61 = vld [vmem:[%s10142_s11 + $0x1598] ss:$72 sps:$4 sm:$0xff]  }
 0x3b2   : > { %6596 = vmatprep.subr.bf16.mxu0 %v9420_v1  ;;  %v9490_v62 = vld [vmem:[%s10142_s11 + $0xca0] ss:$72 sps:$4 sm:$0xff]   ;;  %v9495_v1 = vld [vmem:[%s10142_s11 + $0x162c] ss:$72 sps:$4 sm:$0xff]  }
 0x3b4   : > { %6515 = vmatpush1.bf16.msra.mxu1 %v9415_v2  ;;  %v9498_v2 = vld [vmem:[%s10142_s11 + $0xd34] ss:$72 sps:$4 sm:$0xff]  }
 0x3b5   : > { %6597 = vmatpush1.bf16.msra.mxu0 %v9418_v3  ;;  %6516 = vmatprep.subr.bf16.mxu1 %v9423_v4  ;;  %v9493_v3 = vld [vmem:[%s10142_s11 + $0x1628] ss:$72 sps:$4 sm:$0xff]  }
 0x3b6   : > { %6598 = vmatprep.subr.bf16.mxu0 %v9426_v5  ;;  %v9496_v4 = vld [vmem:[%s10142_s11 + $0xd30] ss:$72 sps:$4 sm:$0xff]   ;;  %v9501_v5 = vld [vmem:[%s10142_s11 + $0x16bc] ss:$72 sps:$4 sm:$0xff]  }
 0x3b8   : > { %6517 = vmatpush1.bf16.msra.mxu1 %v9421_v6  ;;  %v9504_v6 = vld [vmem:[%s10142_s11 + $0xdc4] ss:$72 sps:$4 sm:$0xff]  }
 0x3b9   : > { %6599 = vmatpush1.bf16.msra.mxu0 %v9424_v7  ;;  %6518 = vmatprep.subr.bf16.mxu1 %v9429_v8  ;;  %v9499_v7 = vld [vmem:[%s10142_s11 + $0x16b8] ss:$72 sps:$4 sm:$0xff]  }
 0x3ba   : > { %6600 = vmatprep.subr.bf16.mxu0 %v9432_v9  ;;  %v9502_v8 = vld [vmem:[%s10142_s11 + $0xdc0] ss:$72 sps:$4 sm:$0xff]   ;;  %v9507_v9 = vld [vmem:[%s10142_s11 + $0x174c] ss:$72 sps:$4 sm:$0xff]  }
 0x3bc   : > { %6519 = vmatpush1.bf16.msra.mxu1 %v9427_v10  ;;  %v9510_v10 = vld [vmem:[%s10142_s11 + $0xe54] ss:$72 sps:$4 sm:$0xff]  }
 0x3bd   : > { %6601 = vmatpush1.bf16.msra.mxu0 %v9430_v11  ;;  %6520 = vmatprep.subr.bf16.mxu1 %v9435_v12  ;;  %v9505_v11 = vld [vmem:[%s10142_s11 + $0x1748] ss:$72 sps:$4 sm:$0xff]  }
 0x3be   : > { %6602 = vmatprep.subr.bf16.mxu0 %v9438_v13  ;;  %v9508_v12 = vld [vmem:[%s10142_s11 + $0xe50] ss:$72 sps:$4 sm:$0xff]   ;;  %v9513_v13 = vld [vmem:[%s10142_s11 + $0x17dc] ss:$72 sps:$4 sm:$0xff]  }
 0x3c0   : > { %6521 = vmatpush1.bf16.msra.mxu1 %v9433_v15  ;;  %v9516_v15 = vld [vmem:[%s10142_s11 + $0xee4] ss:$72 sps:$4 sm:$0xff]  }
 0x3c1   : > { %6603 = vmatpush1.bf16.msra.mxu0 %v9436_v19  ;;  %6522 = vmatprep.subr.bf16.mxu1 %v9441_v20  ;;  %v9511_v19 = vld [vmem:[%s10142_s11 + $0x17d8] ss:$72 sps:$4 sm:$0xff]  }
 0x3c2   : > { %6604 = vmatprep.subr.bf16.mxu0 %v9444_v63  ;;  %v9514_v20 = vld [vmem:[%s10142_s11 + $0xee0] ss:$72 sps:$4 sm:$0xff]   ;;  %v9519_v63 = vld [vmem:[%s10142_s11 + $0x186c] ss:$72 sps:$4 sm:$0xff]  }
 0x3c4   : > { %6523 = vmatpush1.bf16.msra.mxu1 %v9439_v24  ;;  %v9522_v24 = vld [vmem:[%s10142_s11 + $0xf74] ss:$72 sps:$4 sm:$0xff]  }
 0x3c5   : > { %6605 = vmatpush1.bf16.msra.mxu0 %v9442_v0  ;;  %6524 = vmatprep.subr.bf16.mxu1 %v9447_v25  ;;  %v9517_v0 = vld [vmem:[%s10142_s11 + $0x1868] ss:$72 sps:$4 sm:$0xff]  }
 0x3c6   : > { %6606 = vmatprep.subr.bf16.mxu0 %v9450_v26  ;;  %v9520_v25 = vld [vmem:[%s10142_s11 + $0xf70] ss:$72 sps:$4 sm:$0xff]   ;;  %v9525_v26 = vld [vmem:[%s10142_s11 + $0x18fc] ss:$72 sps:$4 sm:$0xff]  }
 0x3c8   : > { %6525 = vmatpush1.bf16.msra.mxu1 %v9445_v27  ;;  %v9528_v27 = vld [vmem:[%s10142_s11 + $0x1004] ss:$72 sps:$4 sm:$0xff]  }
 0x3c9   : > { %6607 = vmatpush1.bf16.msra.mxu0 %v9448_v53  ;;  %6535 = vmatprep.subr.bf16.mxu1 %v9453_v28  ;;  %v9523_v53 = vld [vmem:[%s10142_s11 + $0x18f8] ss:$72 sps:$4 sm:$0xff]  }
 0x3ca   : > { %6617 = vmatprep.subr.bf16.mxu0 %v9456_v29  ;;  %v9526_v28 = vld [vmem:[%s10142_s11 + $0x1000] ss:$72 sps:$4 sm:$0xff]   ;;  %v9531_v29 = vld [vmem:[%s10142_s11 + $0x198c] ss:$72 sps:$4 sm:$0xff]  }
 0x3cb   : > { %6527 = vmatmul.mubr.bf16.vlgmr.msra.gmra.mrb[16].mxu1 %v10275_v17 }
 0x3cc   : > { %6609 = vmatmul.mubr.bf16.vlgmr.msra.gmra.mrb[16].mxu0 %v10273_v16  ;;  %6536 = vmatpush1.bf16.msra.mxu1 %v9451_v30  ;;  %v9463_v16 = vld [vmem:[%s10142_s11 + $0x1358] ss:$72 sps:$4 sm:$0xff]   ;;  %v9534_v30 = vld [vmem:[%s10142_s11 + $0x1094] ss:$72 sps:$4 sm:$0xff]  }
 0x3cd   : > { %6618 = vmatpush1.bf16.msra.mxu0 %v9454_v31  ;;  %6537 = vmatprep.subr.bf16.mxu1 %v9459_v32  ;;  %v9529_v31 = vld [vmem:[%s10142_s11 + $0x1988] ss:$72 sps:$4 sm:$0xff]  }
 0x3ce   : > { %6619 = vmatprep.subr.bf16.mxu0 %v9462_v33  ;;  %6567 = vmatprep.mubr.bf16.mxu1 %v10303_v41  ;;  %v9532_v32 = vld [vmem:[%s10142_s11 + $0x1090] ss:$72 sps:$4 sm:$0xff]   ;;  %v9537_v33 = vld [vmem:[%s10142_s11 + $0x1a1c] ss:$72 sps:$4 sm:$0xff]  }
 0x3cf   : > { %6649 = vmatprep.mubr.bf16.mxu0 %v10247_v57  ;;  %v9477_v57 = vld [vmem:[%s10142_s11 + $0x147c] ss:$72 sps:$4 sm:$0xff]  }
 0x3d0   : > { %6538 = vmatpush1.bf16.msra.mxu1 %v9457_v36  ;;  %v9540_v36 = vld [vmem:[%s10142_s11 + $0x1124] ss:$72 sps:$4 sm:$0xff]  }
 0x3d1   : > { %6620 = vmatpush1.bf16.msra.mxu0 %v9460_v37  ;;  %6539 = vmatprep.subr.bf16.mxu1 %v9465_v38  ;;  %v9535_v37 = vld [vmem:[%s10142_s11 + $0x1a18] ss:$72 sps:$4 sm:$0xff]  }
 0x3d2   : > { %6621 = vmatprep.subr.bf16.mxu0 %v9468_v42  ;;  %v9538_v38 = vld [vmem:[%s10142_s11 + $0x1120] ss:$72 sps:$4 sm:$0xff]   ;;  %v9543_v42 = vld [vmem:[%s10142_s11 + $0x1aac] ss:$72 sps:$4 sm:$0xff]  }
 0x3d4   : > { %6540 = vmatpush1.bf16.msra.mxu1 %v9463_v16  ;;  %v9546_v16 = vld [vmem:[%s10142_s11 + $0x11b4] ss:$72 sps:$4 sm:$0xff]  }
 0x3d5   : > { %6622 = vmatpush1.bf16.msra.mxu0 %v9466_v43  ;;  %6541 = vmatprep.subr.bf16.mxu1 %v9471_v44  ;;  %v9541_v43 = vld [vmem:[%s10142_s11 + $0x1aa8] ss:$72 sps:$4 sm:$0xff]  }
 0x3d6   : > { %6623 = vmatprep.subr.bf16.mxu0 %v9474_v45  ;;  %v9544_v44 = vld [vmem:[%s10142_s11 + $0x11b0] ss:$72 sps:$4 sm:$0xff]   ;;  %v9549_v45 = vld [vmem:[%s10142_s11 + $0x1244] ss:$72 sps:$4 sm:$0xff]  }
 0x3d8   : > { %6542 = vmatpush1.bf16.msra.mxu1 %v9469_v46  ;;  %v9547_v46 = vld [vmem:[%s10142_s11 + $0x1240] ss:$72 sps:$4 sm:$0xff]  }
 0x3d9   : > { %6624 = vmatpush1.bf16.msra.mxu0 %v9472_v47  ;;  %6543 = vmatprep.subr.bf16.mxu1 %v9477_v57  ;;  %v9552_v47 = vld [vmem:[%s10142_s11 + $0x12d4] ss:$72 sps:$4 sm:$0xff]   ;;  %v9550_v57 = vld [vmem:[%s10142_s11 + $0x12d0] ss:$72 sps:$4 sm:$0xff]  }
 0x3da   : > { %6625 = vmatprep.subr.bf16.mxu0 %v9480_v48  ;;  %v9555_v48 = vld [vmem:[%s10142_s11 + $0x1364] ss:$72 sps:$4 sm:$0xff]  }
 0x3dc   : > { %6544 = vmatpush1.bf16.msra.mxu1 %v9475_v51  ;;  %v9553_v51 = vld [vmem:[%s10142_s11 + $0x1360] ss:$72 sps:$4 sm:$0xff]  }
 0x3dd   : > { %6626 = vmatpush1.bf16.msra.mxu0 %v9478_v52  ;;  %6545 = vmatprep.subr.bf16.mxu1 %v9483_v54  ;;  %v9558_v52 = vld [vmem:[%s10142_s11 + $0x13f4] ss:$72 sps:$4 sm:$0xff]   ;;  %v9556_v54 = vld [vmem:[%s10142_s11 + $0x13f0] ss:$72 sps:$4 sm:$0xff]  }
 0x3de   : > { %6627 = vmatprep.subr.bf16.mxu0 %v9486_v55  ;;  %v9561_v55 = vld [vmem:[%s10142_s11 + $0x1484] ss:$72 sps:$4 sm:$0xff]  }
 0x3e0   : > { %6546 = vmatpush1.bf16.msra.mxu1 %v9481_v56  ;;  %v9564_v56 = vld [vmem:[%s10142_s11 + $0x1514] ss:$72 sps:$4 sm:$0xff]  }
 0x3e1   : > { %6628 = vmatpush1.bf16.msra.mxu0 %v9484_v58  ;;  %6547 = vmatprep.subr.bf16.mxu1 %v9489_v59  ;;  %v9567_v58 = vld [vmem:[%s10142_s11 + $0x15a4] ss:$72 sps:$4 sm:$0xff]  }
 0x3e2   : > { %6629 = vmatprep.subr.bf16.mxu0 %v9492_v60 }
 0x3e4   : > { %6548 = vmatpush1.bf16.msra.mxu1 %v9487_v61 }
 0x3e5   : > { %6630 = vmatpush1.bf16.msra.mxu0 %v9490_v62  ;;  %6549 = vmatprep.subr.bf16.mxu1 %v9495_v1  ;;  %v9565_v62 = vld [vmem:[%s10142_s11 + $0x15a0] ss:$72 sps:$4 sm:$0xff]  }
 0x3e6   : > { %6631 = vmatprep.subr.bf16.mxu0 %v9498_v2  ;;  %v9570_v2 = vld [vmem:[%s10142_s11 + $0x1634] ss:$72 sps:$4 sm:$0xff]  }
 0x3e8   : > { %6550 = vmatpush1.bf16.msra.mxu1 %v9493_v3  ;;  %v9568_v3 = vld [vmem:[%s10142_s11 + $0x1630] ss:$72 sps:$4 sm:$0xff]  }
 0x3e9   : > { %6632 = vmatpush1.bf16.msra.mxu0 %v9496_v4  ;;  %6551 = vmatprep.subr.bf16.mxu1 %v9501_v5  ;;  %v9573_v4 = vld [vmem:[%s10142_s11 + $0x16c4] ss:$72 sps:$4 sm:$0xff]   ;;  %v9571_v5 = vld [vmem:[%s10142_s11 + $0x16c0] ss:$72 sps:$4 sm:$0xff]  }
 0x3ea   : > { %6633 = vmatprep.subr.bf16.mxu0 %v9504_v6  ;;  %v9576_v6 = vld [vmem:[%s10142_s11 + $0x1754] ss:$72 sps:$4 sm:$0xff]  }
 0x3ec   : > { %6552 = vmatpush1.bf16.msra.mxu1 %v9499_v7  ;;  %v9574_v7 = vld [vmem:[%s10142_s11 + $0x1750] ss:$72 sps:$4 sm:$0xff]  }
 0x3ed   : > { %6634 = vmatpush1.bf16.msra.mxu0 %v9502_v8  ;;  %6553 = vmatprep.subr.bf16.mxu1 %v9507_v9  ;;  %v9579_v8 = vld [vmem:[%s10142_s11 + $0x17e4] ss:$72 sps:$4 sm:$0xff]   ;;  %v9577_v9 = vld [vmem:[%s10142_s11 + $0x17e0] ss:$72 sps:$4 sm:$0xff]  }
 0x3ee   : > { %6635 = vmatprep.subr.bf16.mxu0 %v9510_v10  ;;  %v9582_v10 = vld [vmem:[%s10142_s11 + $0x1874] ss:$72 sps:$4 sm:$0xff]  }
 0x3f0   : > { %6554 = vmatpush1.bf16.msra.mxu1 %v9505_v11  ;;  %v9580_v11 = vld [vmem:[%s10142_s11 + $0x1870] ss:$72 sps:$4 sm:$0xff]  }
 0x3f1   : > { %6636 = vmatpush1.bf16.msra.mxu0 %v9508_v12  ;;  %6555 = vmatprep.subr.bf16.mxu1 %v9513_v13  ;;  %v9585_v12 = vld [vmem:[%s10142_s11 + $0x1904] ss:$72 sps:$4 sm:$0xff]   ;;  %v9583_v13 = vld [vmem:[%s10142_s11 + $0x1900] ss:$72 sps:$4 sm:$0xff]  }
 0x3f2   : > { %6637 = vmatprep.subr.bf16.mxu0 %v9516_v15  ;;  %v9588_v15 = vld [vmem:[%s10142_s11 + $0x1994] ss:$72 sps:$4 sm:$0xff]  }
 0x3f4   : > { %6556 = vmatpush1.bf16.msra.mxu1 %v9511_v19  ;;  %v9586_v19 = vld [vmem:[%s10142_s11 + $0x1990] ss:$72 sps:$4 sm:$0xff]  }
 0x3f5   : > { %6638 = vmatpush1.bf16.msra.mxu0 %v9514_v20  ;;  %6557 = vmatprep.subr.bf16.mxu1 %v9519_v63  ;;  %v9591_v20 = vld [vmem:[%s10142_s11 + $0x1a24] ss:$72 sps:$4 sm:$0xff]   ;;  %v9589_v63 = vld [vmem:[%s10142_s11 + $0x1a20] ss:$72 sps:$4 sm:$0xff]  }
 0x3f6   : > { %6639 = vmatprep.subr.bf16.mxu0 %v9522_v24  ;;  %v9594_v24 = vld [vmem:[%s10142_s11 + $0x1ab4] ss:$72 sps:$4 sm:$0xff]  }
 0x3f8   : > { %6558 = vmatpush1.bf16.msra.mxu1 %v9517_v0  ;;  %v9592_v0 = vld [vmem:[%s10142_s11 + $0x1ab0] ss:$72 sps:$4 sm:$0xff]  }
 0x3f9   : > { %6640 = vmatpush1.bf16.msra.mxu0 %v9520_v25  ;;  %6559 = vmatprep.subr.bf16.mxu1 %v9525_v26 }
 0x3fa   : > { %6641 = vmatprep.subr.bf16.mxu0 %v9528_v27 }
 0x3fc   : > { %6560 = vmatpush1.bf16.msra.mxu1 %v9523_v53 }
 0x3fd   : > { %6642 = vmatpush1.bf16.msra.mxu0 %v9526_v28  ;;  %6561 = vmatprep.subr.bf16.mxu1 %v9531_v29 }
 0x3fe   : > { %6643 = vmatprep.subr.bf16.mxu0 %v9534_v30 }
 0x400   : > { %6562 = vmatpush1.bf16.msra.mxu1 %v9529_v31 }
 0x401   : > { %6644 = vmatpush1.bf16.msra.mxu0 %v9532_v32  ;;  %6563 = vmatprep.subr.bf16.mxu1 %v9537_v33 }
 0x402   : > { %6645 = vmatprep.subr.bf16.mxu0 %v9540_v36 }
 0x404   : > { %6564 = vmatpush1.bf16.msra.mxu1 %v9535_v37 }
 0x405   : > { %6646 = vmatpush1.bf16.msra.mxu0 %v9538_v38  ;;  %6565 = vmatprep.subr.bf16.mxu1 %v9543_v42  ;;  %v6703_v42 = vld [vmem:[%s10149_s28] sm:$0xff] (!%p8116_p11) }
 0x406   : > { %6647 = vmatprep.subr.bf16.mxu0 %v9546_v16 }
 0x408   : > { %6566 = vmatpush1.bf16.msra.mxu1 %v9541_v43 }
 0x409   : > { %6648 = vmatpush1.bf16.msra.mxu0 %v9544_v44 }
 0x40a   : > { %6658 = vmatprep.subr.bf16.mxu0 %v9549_v45 }
 0x40b   : > { %6568 = vmatmul.mubr.bf16.vlgmr.msra.gmra.mrb[16].mxu1 %v10347_v23 }
 0x40c   : > { %6650 = vmatmul.mubr.bf16.vlgmr.msra.gmra.mrb[16].mxu0 %v10275_v17  ;;  %v9559_v17 = vld [vmem:[%s10142_s11 + $0x1480] ss:$72 sps:$4 sm:$0xff]  }
 0x40d   : > { %6659 = vmatpush1.bf16.msra.mxu0 %v9547_v46  ;;  %6690 = vmatprep.mubr.bf16.mxu0 %v10303_v41  ;;  %v9562_v41 = vld [vmem:[%s10142_s11 + $0x1510] ss:$72 sps:$4 sm:$0xff]  }
 0x40e   : > { %6660 = vmatprep.subr.bf16.mxu0 %v9552_v47 }
 0x411   : > { %6661 = vmatpush1.bf16.msra.mxu0 %v9550_v57 }
 0x412   : > { %6662 = vmatprep.subr.bf16.mxu0 %v9555_v48 }
 0x415   : > { %6663 = vmatpush1.bf16.msra.mxu0 %v9553_v51 }
 0x416   : > { %6664 = vmatprep.subr.bf16.mxu0 %v9558_v52 }
 0x419   : > { %6665 = vmatpush1.bf16.msra.mxu0 %v9556_v54 }
 0x41a   : > { %6666 = vmatprep.subr.bf16.mxu0 %v9561_v55 }
 0x41d   : > { %6667 = vmatpush1.bf16.msra.mxu0 %v9559_v17 }
 0x41e   : > { %6668 = vmatprep.subr.bf16.mxu0 %v9564_v56  ;;  %v11137_v59 = vpop.f32.mrb[12].mxu1 }
 0x41f   : > { %v11139_v60 = vpop.f32.mrb[13].mxu1 }
 0x420   : > { %v6327_v61 = vpop.f32.mrb[14].mxu1 }
 0x421   : > { %6669 = vmatpush1.bf16.msra.mxu0 %v9562_v41  ;;  %v6328_v1 = vpop.f32.mrb[15].mxu1  ;;  %v6704_v61 = vld [vmem:[%s10149_s28 + $0x8] sm:$0xff] (!%p8116_p11) }
 0x422   : > { %6670 = vmatprep.subr.bf16.mxu0 %v9567_v58 }
 0x425   : > { %6671 = vmatpush1.bf16.msra.mxu0 %v9565_v62 }
 0x426   : > { %6672 = vmatprep.subr.bf16.mxu0 %v9570_v2 }
 0x429   : > { %6673 = vmatpush1.bf16.msra.mxu0 %v9568_v3 }
 0x42a   : > { %6674 = vmatprep.subr.bf16.mxu0 %v9573_v4 }
 0x42d   : > { %6675 = vmatpush1.bf16.msra.mxu0 %v9571_v5 }
 0x42e   : > { %6676 = vmatprep.subr.bf16.mxu0 %v9576_v6 }
 0x431   : > { %6677 = vmatpush1.bf16.msra.mxu0 %v9574_v7 }
 0x432   : > { %6678 = vmatprep.subr.bf16.mxu0 %v9579_v8 }
 0x435   : > { %6679 = vmatpush1.bf16.msra.mxu0 %v9577_v9 }
 0x436   : > { %6680 = vmatprep.subr.bf16.mxu0 %v9582_v10 }
 0x439   : > { %6681 = vmatpush1.bf16.msra.mxu0 %v9580_v11 }
 0x43a   : > { %6682 = vmatprep.subr.bf16.mxu0 %v9585_v12 }
 0x43d   : > { %6683 = vmatpush1.bf16.msra.mxu0 %v9583_v13 }
 0x43e   : > { %6684 = vmatprep.subr.bf16.mxu0 %v9588_v15 }
 0x441   : > { %6685 = vmatpush1.bf16.msra.mxu0 %v9586_v19 }
 0x442   : > { %6686 = vmatprep.subr.bf16.mxu0 %v9591_v20  ;;  %v6705_v20 = vld [vmem:[%s10149_s28 + $0x10] sm:$0x3] (!%p8116_p11) }
 0x445   : > { %6687 = vmatpush1.bf16.msra.mxu0 %v9589_v63 }
 0x446   : > { %6688 = vmatprep.subr.bf16.mxu0 %v9594_v24 }
 0x449   : > { %6689 = vmatpush1.bf16.msra.mxu0 %v9592_v0 }
 0x44c   : > { %6691 = vmatmul.mubr.bf16.vlgmr.msra.gmra.mrb[16].mxu0 %v10347_v23  ;;  %v6709_v23 = vlaneseq (!%p8116_p11) }
 0x44e   : > { %v6710_v38 = vshrl.u32 (!%p8116_p11), %v6709_v23, 7 }
 0x450   : > { %v6711_v16 = vsub.s32 (!%p8116_p11), 0, %v6710_v38  ;;  %v6715_v43 = vsub.s32 (!%p8116_p11), 1, %v6710_v38  ;;  %v6719_v44 = vsub.s32 (!%p8116_p11), 2, %v6710_v38  ;;  %v6723_v45 = vsub.s32 (!%p8116_p11), 3, %v6710_v38 }
 0x451   : > { %v6727_v46 = vsub.s32 (!%p8116_p11), 4, %v6710_v38  ;;  %v6731_v47 = vsub.s32 (!%p8116_p11), 5, %v6710_v38  ;;  %v6735_v57 = vsub.s32 (!%p8116_p11), 6, %v6710_v38  ;;  %v6739_v48 = vsub.s32 (!%p8116_p11), 7, %v6710_v38 }
 0x452   : > { %v6712_v51 = vrot.slane (!%p8116_p11), %v6703_v42, %v6711_v16  ;;  %v6716_v52 = vrot.slane (!%p8116_p11), %v6703_v42, %v6715_v43  ;;  %v6720_v54 = vrot.slane (!%p8116_p11), %v6703_v42, %v6719_v44  ;;  %v6724_v55 = vrot.slane (!%p8116_p11), %v6703_v42, %v6723_v45 }
 0x453   : > { %v6728_v17 = vrot.slane (!%p8116_p11), %v6703_v42, %v6727_v46  ;;  %v6732_v56 = vrot.slane (!%p8116_p11), %v6703_v42, %v6731_v47  ;;  %v6736_v41 = vrot.slane (!%p8116_p11), %v6703_v42, %v6735_v57  ;;  %v6740_v58 = vrot.slane (!%p8116_p11), %v6703_v42, %v6739_v48 }
 0x454   : > { %v6799_v62 = vadd.f32 (!%p8116_p11), %v10588_v14, %v6712_v51  ;;  %v6800_v1 = vadd.f32 (!%p8116_p11), %v10591_v18, %v6716_v52  ;;  %v6801_v2 = vadd.f32 (!%p8116_p11), %v6720_v54, %v10727_v34  ;;  %v6802_v3 = vadd.f32 (!%p8116_p11), %v6724_v55, %v10729_v35 }
 0x455   : > { %v6803_v4 = vadd.f32 (!%p8116_p11), %v6728_v17, %v10799_v49  ;;  %v6804_v5 = vadd.f32 (!%p8116_p11), %v6732_v56, %v10801_v50  ;;  %v6805_v6 = vadd.f32 (!%p8116_p11), %v6736_v41, %v10939_v21  ;;  %v6806_v7 = vadd.f32 (!%p8116_p11), %v6740_v58, %v10941_v22 }
 0x456   : > { %6817 = vst [vmem:[#allocation3] sm:$0xff] (!%p8116_p11), %v6799_v62  ;;  %6818 = vst [vmem:[#allocation3 + $0x8] sm:$0xff] (!%p8116_p11), %v6800_v1  ;;  %v6744_v8 = vrot.slane (!%p8116_p11), %v6704_v61, %v6711_v16  ;;  %v6748_v9 = vrot.slane (!%p8116_p11), %v6704_v61, %v6715_v43  ;;  %v6752_v10 = vrot.slane (!%p8116_p11), %v6704_v61, %v6719_v44 }
 0x457   : > { %6819 = vst [vmem:[#allocation3 + $0x10] sm:$0xff] (!%p8116_p11), %v6801_v2  ;;  %6820 = vst [vmem:[#allocation3 + $0x18] sm:$0xff] (!%p8116_p11), %v6802_v3  ;;  %v6756_v11 = vrot.slane (!%p8116_p11), %v6704_v61, %v6723_v45  ;;  %v6760_v12 = vrot.slane (!%p8116_p11), %v6704_v61, %v6727_v46  ;;  %v6764_v13 = vrot.slane (!%p8116_p11), %v6704_v61, %v6731_v47 }
 0x458   : > { %6821 = vst [vmem:[#allocation3 + $0x20] sm:$0xff] (!%p8116_p11), %v6803_v4  ;;  %6822 = vst [vmem:[#allocation3 + $0x28] sm:$0xff] (!%p8116_p11), %v6804_v5  ;;  %v6768_v15 = vrot.slane (!%p8116_p11), %v6704_v61, %v6735_v57  ;;  %v6772_v19 = vrot.slane (!%p8116_p11), %v6704_v61, %v6739_v48  ;;  %v6807_v63 = vadd.f32 (!%p8116_p11), %v6744_v8, %v11011_v39 }
 0x459   : > { %6823 = vst [vmem:[#allocation3 + $0x30] sm:$0xff] (!%p8116_p11), %v6805_v6  ;;  %6824 = vst [vmem:[#allocation3 + $0x38] sm:$0xff] (!%p8116_p11), %v6806_v7  ;;  %v6808_v24 = vadd.f32 (!%p8116_p11), %v6748_v9, %v11013_v40  ;;  %v6809_v0 = vadd.f32 (!%p8116_p11), %v6752_v10, %v11137_v59  ;;  %v6780_v23 = vrot.slane (!%p8116_p11), %v6705_v20, %v6715_v43 }
 0x45a   : > { %6825 = vst [vmem:[#allocation3 + $0x40] sm:$0xff] (!%p8116_p11), %v6807_v63 }
 0x45b   : > { %6826 = vst [vmem:[#allocation3 + $0x48] sm:$0xff] (!%p8116_p11), %v6808_v24  ;;  %6827 = vst [vmem:[#allocation3 + $0x50] sm:$0xff] (!%p8116_p11), %v6809_v0 }
 0x45f   : > { %v11161_v25 = vpop.f32.mrb[12].mxu0 }
 0x460   : > { %v11163_v26 = vpop.f32.mrb[13].mxu0 }
 0x461   : > { %v6450_v27 = vpop.f32.mrb[14].mxu0 }
 0x462   : > { %v6451_v53 = vpop.f32.mrb[15].mxu0  ;;  %v6810_v27 = vadd.f32 (!%p8116_p11), %v6756_v11, %v11139_v60 }
 0x463   : > { %v6811_v53 = vadd.f32 (!%p8116_p11), %v6760_v12, %v11161_v25 }
 0x464   : > { %6828 = vst [vmem:[#allocation3 + $0x58] sm:$0xff] (!%p8116_p11), %v6810_v27 }
 0x465   : > { %6829 = vst [vmem:[#allocation3 + $0x60] sm:$0xff] (!%p8116_p11), %v6811_v53 }
 0x4de   : > { %v11165_v28 = vpop.f32.mrb[16].mxu1 }
 0x4df   : > { %v11167_v29 = vpop.f32.mrb[17].mxu1 }
 0x4e0   : > { %v6573_v30 = vpop.f32.mrb[18].mxu1 }
 0x4e1   : > { %v6574_v31 = vpop.f32.mrb[19].mxu1  ;;  %v6812_v30 = vadd.f32 (!%p8116_p11), %v6764_v13, %v11163_v26 }
 0x4e2   : > { %v6813_v31 = vadd.f32 (!%p8116_p11), %v6768_v15, %v11165_v28 }
 0x4e3   : > { %6830 = vst [vmem:[#allocation3 + $0x68] sm:$0xff] (!%p8116_p11), %v6812_v30 }
 0x4e4   : > { %6831 = vst [vmem:[#allocation3 + $0x70] sm:$0xff] (!%p8116_p11), %v6813_v31 }
 0x51c   : > { %6702 = sbr.rel (%p8116_p11) target bundleno = 1320 (0x528), region = 72 }
 0x51f   : > { %v11169_v32 = vpop.f32.mrb[16].mxu0 }
 0x520   : > { %v11171_v33 = vpop.f32.mrb[17].mxu0 }
 0x521   : > { %v6696_v36 = vpop.f32.mrb[18].mxu0  ;;  %v6816_v42 = vadd.f32 (!%p8116_p11), %v6780_v23, %v11171_v33 }
 0x522   : > { %v6697_v37 = vpop.f32.mrb[19].mxu0  ;;  %v6814_v36 = vadd.f32 (!%p8116_p11), %v6772_v19, %v11167_v29 }
 0x523   : > { %v6776_v37 = vrot.slane %v6705_v20, %v6711_v16  ;;  %6834 = vst [vmem:[#allocation3 + $0x88] sm:$0xff] %v6816_v42 }
 0x524   : > { %6832 = vst [vmem:[#allocation3 + $0x78] sm:$0xff] %v6814_v36 }
 0x525   : > { %v6815_v38 = vadd.f32 %v6776_v37, %v11169_v32 }
 0x527   : > { %6833 = vst [vmem:[#allocation3 + $0x80] sm:$0xff] %v6815_v38 }
 0x528 PF: > { %p8117_p1 = scmp.ne.s32.totalorder %s10164_s22, 0 }
 0x529   : > { %v6839_v44 = vld [vmem:[#allocation3] sm:$0xff] (!%p8117_p1)  ;;  %v6840_v45 = vld [vmem:[#allocation3 + $0x8] sm:$0xff] (!%p8117_p1)  ;;  %v6841_v46 = vld [vmem:[#allocation3 + $0x10] sm:$0xff] (!%p8117_p1) }
 0x52a   : > { %6838 = sbr.rel (%p8117_p1) target bundleno = 1333 (0x535), region = 76  ;;  %v6857_v16 = vadd.f32 (!%p8117_p1), %v10588_v14, %v6839_v44  ;;  %v6858_v43 = vadd.f32 (!%p8117_p1), %v10591_v18, %v6840_v45  ;;  %v6859_v47 = vadd.f32 (!%p8117_p1), %v6841_v46, %v10727_v34  ;;  %v6842_v57 = vld [vmem:[#allocation3 + $0x18] sm:$0xff] (!%p8117_p1)  ;;  %v6843_v48 = vld [vmem:[#allocation3 + $0x20] sm:$0xff] (!%p8117_p1)  ;;  %v6844_v51 = vld [vmem:[#allocation3 + $0x28] sm:$0xff] (!%p8117_p1) }
 0x52b   : > { %v6860_v52 = vadd.f32 (!%p8117_p1), %v6842_v57, %v10729_v35  ;;  %v6861_v54 = vadd.f32 (!%p8117_p1), %v6843_v48, %v10799_v49  ;;  %v6862_v55 = vadd.f32 (!%p8117_p1), %v6844_v51, %v10801_v50  ;;  %v6845_v17 = vld [vmem:[#allocation3 + $0x30] sm:$0xff] (!%p8117_p1)  ;;  %v6846_v56 = vld [vmem:[#allocation3 + $0x38] sm:$0xff] (!%p8117_p1)  ;;  %v6847_v41 = vld [vmem:[#allocation3 + $0x40] sm:$0xff] (!%p8117_p1) }
 0x52c   : > { %6875 = vst [vmem:[#allocation3] sm:$0xff] (!%p8117_p1), %v6857_v16  ;;  %6876 = vst [vmem:[#allocation3 + $0x8] sm:$0xff] (!%p8117_p1), %v6858_v43  ;;  %v6863_v14 = vadd.f32 (!%p8117_p1), %v6845_v17, %v10939_v21  ;;  %v6864_v18 = vadd.f32 (!%p8117_p1), %v6846_v56, %v10941_v22  ;;  %v6865_v34 = vadd.f32 (!%p8117_p1), %v6847_v41, %v11011_v39  ;;  %v6848_v58 = vld [vmem:[#allocation3 + $0x48] sm:$0xff] (!%p8117_p1)  ;;  %v6849_v61 = vld [vmem:[#allocation3 + $0x50] sm:$0xff] (!%p8117_p1) }
 0x52d   : > { %6877 = vst [vmem:[#allocation3 + $0x10] sm:$0xff] (!%p8117_p1), %v6859_v47  ;;  %v6850_v62 = vld [vmem:[#allocation3 + $0x58] sm:$0xff] (!%p8117_p1)  ;;  %6878 = vst [vmem:[#allocation3 + $0x18] sm:$0xff] (!%p8117_p1), %v6860_v52  ;;  %v6866_v35 = vadd.f32 (!%p8117_p1), %v6848_v58, %v11013_v40  ;;  %v6867_v49 = vadd.f32 (!%p8117_p1), %v6849_v61, %v11137_v59  ;;  %v6851_v1 = vld [vmem:[#allocation3 + $0x60] sm:$0xff] (!%p8117_p1) }
 0x52e   : > { %6879 = vst [vmem:[#allocation3 + $0x20] sm:$0xff] (!%p8117_p1), %v6861_v54  ;;  %6880 = vst [vmem:[#allocation3 + $0x28] sm:$0xff] (!%p8117_p1), %v6862_v55  ;;  %v6868_v50 = vadd.f32 (!%p8117_p1), %v6850_v62, %v11139_v60  ;;  %v6852_v2 = vld [vmem:[#allocation3 + $0x68] sm:$0xff] (!%p8117_p1)  ;;  %v6853_v3 = vld [vmem:[#allocation3 + $0x70] sm:$0xff] (!%p8117_p1)  ;;  %v6869_v21 = vadd.f32 (!%p8117_p1), %v6851_v1, %v11161_v25 }
 0x52f   : > { %6881 = vst [vmem:[#allocation3 + $0x30] sm:$0xff] (!%p8117_p1), %v6863_v14  ;;  %6882 = vst [vmem:[#allocation3 + $0x38] sm:$0xff] (!%p8117_p1), %v6864_v18  ;;  %v6870_v22 = vadd.f32 (!%p8117_p1), %v6852_v2, %v11163_v26  ;;  %v6871_v39 = vadd.f32 (!%p8117_p1), %v6853_v3, %v11165_v28  ;;  %v6854_v4 = vld [vmem:[#allocation3 + $0x78] sm:$0xff] (!%p8117_p1)  ;;  %v6855_v5 = vld [vmem:[#allocation3 + $0x80] sm:$0xff] (!%p8117_p1) }
 0x530   : > { %6883 = vst [vmem:[#allocation3 + $0x40] sm:$0xff] (!%p8117_p1), %v6865_v34  ;;  %v6856_v6 = vld [vmem:[#allocation3 + $0x88] sm:$0xff] (!%p8117_p1)  ;;  %6884 = vst [vmem:[#allocation3 + $0x48] sm:$0xff] (!%p8117_p1), %v6866_v35  ;;  %v6872_v40 = vadd.f32 (!%p8117_p1), %v6854_v4, %v11167_v29  ;;  %v6873_v59 = vadd.f32 (!%p8117_p1), %v6855_v5, %v11169_v32 }
 0x531   : > { %6885 = vst [vmem:[#allocation3 + $0x50] sm:$0xff] %v6867_v49  ;;  %6886 = vst [vmem:[#allocation3 + $0x58] sm:$0xff] %v6868_v50  ;;  %v6874_v60 = vadd.f32 %v6856_v6, %v11171_v33 }
 0x532   : > { %6887 = vst [vmem:[#allocation3 + $0x60] sm:$0xff] %v6869_v21  ;;  %6888 = vst [vmem:[#allocation3 + $0x68] sm:$0xff] %v6870_v22 }
 0x533   : > { %6889 = vst [vmem:[#allocation3 + $0x70] sm:$0xff] %v6871_v39  ;;  %6890 = vst [vmem:[#allocation3 + $0x78] sm:$0xff] %v6872_v40 }
 0x534   : > { %6891 = vst [vmem:[#allocation3 + $0x80] sm:$0xff] %v6873_v59  ;;  %6892 = vst [vmem:[#allocation3 + $0x88] sm:$0xff] %v6874_v60 }
 0x535 PF: > { %p8118_p7 = scmp.le.s32.totalorder %s10166_s9, 0 }
 0x536   : > { %v6989_v37 = vlaneseq (!%p8118_p7)  ;;  %v6987_v56 = vld [vmem:[%s10155_s30] sm:$0x3f] (!%p8118_p7)  ;;  %p8131_p9 = scmp.ne.s32.totalorder (!%p8118_p7), %s10166_s9, 1 }
 0x537   : > { %6896 = sbr.rel (%p8118_p7) target bundleno = 1700 (0x6a4), region = 80  ;;  %v6897_v25 = vld [vmem:[#allocation3] sm:$0xff] (!%p8118_p7)  ;;  %v6898_v26 = vld [vmem:[#allocation3 + $0x8] sm:$0xff] (!%p8118_p7) }
 0x538   : > { %v6899_v28 = vld [vmem:[#allocation3 + $0x10] sm:$0xff] (!%p8118_p7)  ;;  %v6900_v7 = vld [vmem:[#allocation3 + $0x18] sm:$0xff] (!%p8118_p7)  ;;  %v8119_v8 = vmul.f32 (!%p8118_p7), -1.442695, %v6897_v25  ;;  %v8120_v9 = vmul.f32 (!%p8118_p7), -1.442695, %v6898_v26 }
 0x539   : > { %v6901_v29 = vld [vmem:[#allocation3 + $0x20] sm:$0xff] (!%p8118_p7)  ;;  %v6902_v32 = vld [vmem:[#allocation3 + $0x28] sm:$0xff] (!%p8118_p7)  ;;  %v8121_v11 = vmul.f32 (!%p8118_p7), -1.442695, %v6899_v28  ;;  %v8122_v13 = vmul.f32 (!%p8118_p7), -1.442695, %v6900_v7 }
 0x53a   : > { %v6903_v10 = vld [vmem:[#allocation3 + $0x30] sm:$0xff] (!%p8118_p7)  ;;  %v6904_v33 = vld [vmem:[#allocation3 + $0x38] sm:$0xff] (!%p8118_p7)  ;;  %9595 = vpow2.f32 (!%p8118_p7), %v8119_v8  ;;  %v8123_v20 = vmul.f32 (!%p8118_p7), -1.442695, %v6901_v29  ;;  %v8124_v63 = vmul.f32 (!%p8118_p7), -1.442695, %v6902_v32 }
 0x53b   : > { %v6905_v12 = vld [vmem:[#allocation3 + $0x40] sm:$0xff] (!%p8118_p7)  ;;  %9597 = vpow2.f32 (!%p8118_p7), %v8120_v9  ;;  %v6906_v15 = vld [vmem:[#allocation3 + $0x48] sm:$0xff] (!%p8118_p7)  ;;  %v8125_v24 = vmul.f32 (!%p8118_p7), -1.442695, %v6903_v10  ;;  %v8126_v0 = vmul.f32 (!%p8118_p7), -1.442695, %v6904_v33 }
 0x53c   : > { %v6907_v19 = vld [vmem:[#allocation3 + $0x50] sm:$0xff] (!%p8118_p7)  ;;  %9599 = vpow2.f32 (!%p8118_p7), %v8121_v11  ;;  %v6908_v27 = vld [vmem:[#allocation3 + $0x58] sm:$0xff] (!%p8118_p7)  ;;  %v8127_v53 = vmul.f32 (!%p8118_p7), -1.442695, %v6905_v12  ;;  %v8128_v30 = vmul.f32 (!%p8118_p7), -1.442695, %v6906_v15 }
 0x53d   : > { %9601 = vpow2.f32 (!%p8118_p7), %v8122_v13  ;;  %v8129_v31 = vmul.f32 (!%p8118_p7), -1.442695, %v6907_v19  ;;  %v8130_v36 = vmul.f32 (!%p8118_p7), -1.442695, %v6908_v27  ;;  %v11215_v46 = vshrl.u32 (!%p8118_p7), %v6989_v37, 7  ;;  %v6909_v6 = vld [vmem:[#allocation3 + $0x60] sm:$0xff] (!%p8118_p7) }
 0x53e   : > { %9603 = vpow2.f32 %v8123_v20  ;;  %v6910_v25 = vld [vmem:[#allocation3 + $0x68] sm:$0xff]  ;;  %v6911_v8 = vld [vmem:[#allocation3 + $0x70] sm:$0xff]  ;;  %v6912_v10 = vld [vmem:[#allocation3 + $0x78] sm:$0xff]  ;;  %s8145_s11 = smul.u32 (!%p8131_p9), 48, %s10170_s23 }
 0x53f   : > { %9605 = vpow2.f32 %v8124_v63  ;;  %v6991_v55 = vsub.s32 0, %v11215_v46  ;;  %v6995_v41 = vsub.s32 1, %v11215_v46  ;;  %v6999_v34 = vsub.s32 2, %v11215_v46  ;;  %v6913_v13 = vld [vmem:[#allocation3 + $0x80] sm:$0xff]  ;;  %v6914_v63 = vld [vmem:[#allocation3 + $0x88] sm:$0xff] }
 0x540   : > { %9607 = vpow2.f32 %v8125_v24  ;;  %v7003_v62 = vsub.s32 3, %v11215_v46  ;;  %v7007_v1 = vsub.s32 4, %v11215_v46  ;;  %v7011_v22 = vsub.s32 5, %v11215_v46  ;;  %s7055_s28 = scalar_lea.vmem (!%p8131_p9), [#allocation2], %s8145_s11 }
 0x541   : > { %9609 = vpow2.f32 %v8126_v0  ;;  %v6992_v50 = vrot.slane %v6987_v56, %v6991_v55  ;;  %v6996_v21 = vrot.slane %v6987_v56, %v6995_v41  ;;  %v7000_v4 = vrot.slane %v6987_v56, %v6999_v34 }
 0x542   : > { %9611 = vpow2.f32 %v8127_v53  ;;  %v7004_v59 = vrot.slane %v6987_v56, %v7003_v62  ;;  %v7008_v26 = vrot.slane %v6987_v56, %v7007_v1  ;;  %v7012_v29 = vrot.slane %v6987_v56, %v7011_v22 }
 0x543   : > { %9613 = vpow2.f32 %v8128_v30 }
 0x544   : > { %v9596_v23 = vpop.eup %9595  ;;  %9615 = vpow2.f32 %v8129_v31 }
 0x545   : > { %v9598_v38 = vpop.eup %9597  ;;  %v6933_v42 = vadd.f32 1.0, %v9596_v23  ;;  %9617 = vpow2.f32 %v8130_v36 }
 0x546   : > { %v9600_v44 = vpop.eup %9599  ;;  %v6934_v45 = vadd.f32 1.0, %v9598_v38 }
 0x547   : > { %v9602_v16 = vpop.eup %9601  ;;  %v6935_v43 = vadd.f32 1.0, %v9600_v44  ;;  %9619 = vrcp.f32 %v6933_v42 }
 0x548   : > { %v9604_v47 = vpop.eup %9603  ;;  %v6936_v57 = vadd.f32 1.0, %v9602_v16  ;;  %9621 = vrcp.f32 %v6934_v45 }
 0x549   : > { %v9606_v48 = vpop.eup %9605  ;;  %v6937_v51 = vadd.f32 1.0, %v9604_v47  ;;  %9623 = vrcp.f32 %v6935_v43 }
 0x54a   : > { %v9608_v52 = vpop.eup %9607  ;;  %v6938_v54 = vadd.f32 1.0, %v9606_v48  ;;  %9625 = vrcp.f32 %v6936_v57 }
 0x54b   : > { %v9610_v17 = vpop.eup %9609  ;;  %9627 = vrcp.f32 %v6937_v51  ;;  %v6969_v18 = vadd.f32 1.0, %v9608_v52 }
 0x54c   : > { %v9612_v14 = vpop.eup %9611  ;;  %9629 = vrcp.f32 %v6938_v54  ;;  %v6970_v61 = vadd.f32 1.0, %v9610_v17 }
 0x54d   : > { %v9614_v58 = vpop.eup %9613  ;;  %v6971_v49 = vadd.f32 1.0, %v9612_v14  ;;  %9631 = vrcp.f32 %v6969_v18 }
 0x54e   : > { %v9616_v35 = vpop.eup %9615  ;;  %v6972_v3 = vadd.f32 1.0, %v9614_v58  ;;  %9633 = vrcp.f32 %v6970_v61 }
 0x54f   : > { %v9618_v2 = vpop.eup %9617  ;;  %v6973_v39 = vadd.f32 1.0, %v9616_v35  ;;  %9635 = vrcp.f32 %v6971_v49 }
 0x550   : > { %v6974_v40 = vadd.f32 1.0, %v9618_v2  ;;  %9637 = vrcp.f32 %v6972_v3 }
 0x551   : > { %v9620_v5 = vpop.eup %9619  ;;  %9639 = vrcp.f32 %v6973_v39 }
 0x552   : > { %v9622_v60 = vpop.eup %9621  ;;  %v7019_v28 = vmul.f32 %v9620_v5, %v6992_v50  ;;  %9641 = vrcp.f32 %v6974_v40 }
 0x553   : > { %v9624_v7 = vpop.eup %9623  ;;  %v7020_v9 = vmul.f32 %v9622_v60, %v6996_v21 }
 0x554   : > { %v9626_v32 = vpop.eup %9625  ;;  %v7021_v33 = vmul.f32 %v9624_v7, %v7000_v4  ;;  %v7025_v11 = vadd.f32 %v7019_v28, %v6909_v6 }
 0x555   : > { %v9628_v12 = vpop.eup %9627  ;;  %v7022_v15 = vmul.f32 %v9626_v32, %v7004_v59  ;;  %v7026_v19 = vadd.f32 %v7020_v9, %v6910_v25 }
 0x556   : > { %v9630_v20 = vpop.eup %9629  ;;  %v7023_v24 = vmul.f32 %v9628_v12, %v7008_v26  ;;  %v7027_v0 = vadd.f32 %v7021_v33, %v6911_v8  ;;  %9643 = vtanh.f32 %v7025_v11 }
 0x557   : > { %v7024_v27 = vmul.f32 %v9630_v20, %v7012_v29  ;;  %v7028_v53 = vadd.f32 %v7022_v15, %v6912_v10  ;;  %9645 = vtanh.f32 %v7026_v19  ;;  %v9632_v36 = vpop.eup %9631 }
 0x558   : > { %v7029_v30 = vadd.f32 %v7023_v24, %v6913_v13  ;;  %9647 = vtanh.f32 %v7027_v0  ;;  %v9634_v37 = vpop.eup %9633  ;;  %v7037_v42 = vsub.f32 1.0, %v9632_v36 }
 0x559   : > { %v7030_v31 = vadd.f32 %v7024_v27, %v6914_v63  ;;  %9649 = vtanh.f32 %v7028_v53  ;;  %v9636_v23 = vpop.eup %9635  ;;  %v7038_v45 = vsub.f32 1.0, %v9634_v37 }
 0x55a   : > { %9651 = vtanh.f32 %v7029_v30  ;;  %v9638_v38 = vpop.eup %9637  ;;  %v7039_v43 = vsub.f32 1.0, %v9636_v23 }
 0x55b   : > { %9653 = vtanh.f32 %v7030_v31  ;;  %v9640_v44 = vpop.eup %9639  ;;  %v7040_v57 = vsub.f32 1.0, %v9638_v38 }
 0x55c   : > { %v9642_v16 = vpop.eup %9641  ;;  %v7041_v51 = vsub.f32 1.0, %v9640_v44 }
 0x55d   : > { %v7042_v17 = vsub.f32 1.0, %v9642_v16 }
 0x560   : > { %v9644_v47 = vpop.eup %9643  ;;  %7052 = sbr.rel (%p8131_p9) target bundleno = 1385 (0x569), region = 84 }
 0x561   : > { %v9646_v48 = vpop.eup %9645  ;;  %v7043_v52 = vmul.f32 %v9644_v47, %v7037_v42 }
 0x562   : > { %v9648_v54 = vpop.eup %9647  ;;  %v7044_v56 = vmul.f32 %v9646_v48, %v7038_v45 }
 0x563   : > { %v9650_v14 = vpop.eup %9649  ;;  %v7045_v18 = vmul.f32 %v9648_v54, %v7039_v43  ;;  %7056 = vst [vmem:[%s7055_s28] sm:$0xff] (!%p8131_p9), %v7043_v52 }
 0x564   : > { %v9652_v58 = vpop.eup %9651  ;;  %v7046_v61 = vmul.f32 %v9650_v14, %v7040_v57  ;;  %7057 = vst [vmem:[%s7055_s28 + $0x8] sm:$0xff] (!%p8131_p9), %v7044_v56 }
 0x565   : > { %v9654_v35 = vpop.eup %9653  ;;  %v7047_v49 = vmul.f32 %v9652_v58, %v7041_v51  ;;  %7058 = vst [vmem:[%s7055_s28 + $0x10] sm:$0xff] (!%p8131_p9), %v7045_v18 }
 0x566   : > { %v7048_v50 = vmul.f32 %v9654_v35, %v7042_v17  ;;  %7059 = vst [vmem:[%s7055_s28 + $0x18] sm:$0xff] (!%p8131_p9), %v7046_v61 }
 0x567   : > { %7060 = vst [vmem:[%s7055_s28 + $0x20] sm:$0xff] %v7047_v49 }
 0x568   : > { %7061 = vst [vmem:[%s7055_s28 + $0x28] sm:$0xff] %v7048_v50 }
 0x569 PF: > { %p8133_p12 = scmp.ne.s32.totalorder %s10166_s9, 2 }
 0x56a   : > { %v7066_v2 = vld [vmem:[#allocation11] sm:$0x3f] (!%p8133_p12)  ;;  %v9870_v29 = vmov (!%p8133_p12), 0  }
 0x56b   : > { %7065 = sbr.rel (%p8133_p12) target bundleno = 1700 (0x6a4), region = 88  ;;  %v7071_v3 = vrot.slane (!%p8133_p12), %v7066_v2, %v6991_v55  ;;  %v7075_v21 = vrot.slane (!%p8133_p12), %v7066_v2, %v6995_v41  ;;  %v7079_v39 = vrot.slane (!%p8133_p12), %v7066_v2, %v6999_v34  ;;  %v7083_v4 = vrot.slane (!%p8133_p12), %v7066_v2, %v7003_v62  ;;  %9655 = vset.pattern.permute.xlu0 (!%p8133_p12), %v9870_v29  ;;  %v8134_v62 = vld [vmem:[#allocation13] ss:$0 sm:$0xff] (!%p8133_p12) }
 0x56c   : > { %v7087_v5 = vrot.slane (!%p8133_p12), %v7066_v2, %v7007_v1  ;;  %v7091_v60 = vrot.slane (!%p8133_p12), %v7066_v2, %v7011_v22 }
 0x56d   : > { %v7098_v6 = vmul.f32 (!%p8133_p12), %v7071_v3, %v7043_v52  ;;  %v7099_v40 = vmul.f32 (!%p8133_p12), %v7075_v21, %v7044_v56  ;;  %v7100_v59 = vmul.f32 (!%p8133_p12), %v7079_v39, %v7045_v18  ;;  %v7101_v25 = vmul.f32 (!%p8133_p12), %v7083_v4, %v7046_v61 }
 0x56e   : > { %v7102_v26 = vmul.f32 (!%p8133_p12), %v7087_v5, %v7047_v49  ;;  %v7103_v41 = vmul.f32 (!%p8133_p12), %v7091_v60, %v7048_v50 }
 0x56f   : > { %v7104_v55 = vadd.f32 (!%p8133_p12), %v7099_v40, %v7098_v6 }
 0x571   : > { %v7105_v28 = vadd.f32 (!%p8133_p12), %v7104_v55, %v7100_v59 }
 0x573   : > { %v7106_v7 = vadd.f32 %v7105_v28, %v7101_v25 }
 0x575   : > { %v7107_v8 = vadd.f32 %v7106_v7, %v7102_v26 }
 0x577   : > { %v7108_v34 = vadd.f32 %v7107_v8, %v7103_v41 }
 0x579   : > { %7109 = vadd.xlane.f32.xlu0 %v7108_v34 }
 0x606   : > { %v7110_v9 = vpop.xlane.xlu0 %7109 }
 0x607   : > { %v7118_v1 = vadd.f32 %v8134_v62, %v7110_v9 }
 0x609   : > { %v8135_v32 = vmul.f32 -1.442695, %v7118_v1 }
 0x60b   : > { %9656 = vpow2.f32 %v8135_v32 }
 0x615   : > { %v9657_v10 = vpop.eup %9656 }
 0x616   : > { %v7122_v33 = vadd.f32 1.0, %v9657_v10 }
 0x618   : > { %9658 = vrcp.f32 %v7122_v33 }
 0x622   : > { %v9659_v46 = vpop.eup %9658 }
 0x623   : > { %7127 = vperm.xlu0 %9655, %v9659_v46  }
 0x6a2   : > { %v7128_v22 = vpop.permute.xlu0 %7127 }
 0x6a3   : > { %7130 = vst [vmem:[%s11274_s7] sm:$0xff] %v7128_v22 }
 0x6a4 PF: > { %s11308_s27 = sld [smem:[#allocation18_spill]]  ;;  %p25_p8 = scmp.ge.s32.totalorder %s9962_s19, 18  }
 0x6a5   : > { %s11309_s11 = smov %s9852_s12  ;;  %s11310_s12 = smov %s9856_s13 }
 0x6a6   : > { %s11312_s14 = smov %s9962_s19  ;;  %27 = sbr.rel (!%p25_p8) target bundleno = 19 (0x13), region = 138 }
 0x6aa   : > { %s11311_s13 = smov %s11308_s27 }
 0x6ad   :  { %7142 = vsyncpa [#allocation7], 1 }
 0x6ae   :  { %7144 = vsyncpa [#allocation7 + $0x1], 1 }
 0x6af   :  { %7145 = vsyncpa [#allocation9], 1 }
 0x6b0   :  { %7147 = vsyncpa [#allocation9 + $0x1], 1 }
 0x6b1   :  { %7148 = vsyncpa [#allocation12], 1 }

</bundles_post_ra>
